<compile_context>
chip_gen: v7x
topology: tpu7x:2x2x1
jax: 0.10.0
libtpu: 0.0.40
codegen_flags: <defaults>
</compile_context>

<pallas_src>
import functools

import numpy as np
import jax
import jax.numpy as jnp
from jax import lax
from jax.experimental import pallas as pl
from jax.experimental.pallas import tpu as pltpu

COEFF_DIM = 257   # id(80)+exp(64)+tex(80)+angles(3)+gamma(27)+trans(3)
CP = 128          # padded channel width (lane-dense) used end-to-end
NP_FC = 384       # 257 -> 3*128 (padded FC output width)


def _make_gather_matrices(hi, wi, ksize=3, stride=2, pad=1):
    """0/1 spatial-selection matrices expressing a stride-2 'same' 3x3 conv as
    per-tap matmuls:  out_flat = sum_t  G[t] @ x_flat @ W[t]."""
    ho, wo = hi // stride, wi // stride
    g = np.zeros((ksize * ksize, ho * wo, hi * wi), np.float32)
    for kh in range(ksize):
        for kw in range(ksize):
            t = kh * ksize + kw
            for oh in range(ho):
                for ow in range(wo):
                    ih = stride * oh + kh - pad
                    iw = stride * ow + kw - pad
                    if 0 <= ih < hi and 0 <= iw < wi:
                        g[t, oh * wo + ow, ih * wi + iw] = 1.0
    return g


# ---------------------------------------------------------------------------
# Fused backbone kernel: one grid step per image; everything stays in VMEM.
# ---------------------------------------------------------------------------
def _fused_backbone_kernel(p1_ref, w1_ref, b1_ref,
                           g2_ref, w2_ref, b2_ref,
                           g3_ref, w3_ref, b3_ref,
                           wfc_ref, bfc_ref,
                           o_ref,
                           act1_ref, act2_ref):
    f32 = jnp.float32
    bf16 = jnp.bfloat16

    # ---- conv1 (im2col GEMM): (rows1, 128K) @ (128K, 128N) + bias, ReLU ----
    a1 = jnp.dot(p1_ref[0], w1_ref[...], preferred_element_type=f32)
    a1 = jnp.maximum(a1 + b1_ref[...], 0.0)
    act1_ref[...] = a1.astype(bf16)                      # VMEM-resident

    # ---- conv2: 9-tap gather-matmul accumulation over VMEM activation ----
    rows2 = g2_ref.shape[1]
    acc2 = jnp.zeros((rows2, CP), f32)
    for t in range(9):
        gathered = jnp.dot(g2_ref[t], act1_ref[...], preferred_element_type=f32)
        acc2 = acc2 + jnp.dot(gathered.astype(bf16), w2_ref[t],
                              preferred_element_type=f32)
    a2 = jnp.maximum(acc2 + b2_ref[...], 0.0)
    act2_ref[...] = a2.astype(bf16)                      # VMEM-resident

    # ---- conv3: 9-tap gather-matmul accumulation ----
    rows3 = g3_ref.shape[1]
    acc3 = jnp.zeros((rows3, CP), f32)
    for t in range(9):
        gathered = jnp.dot(g3_ref[t], act2_ref[...], preferred_element_type=f32)
        acc3 = acc3 + jnp.dot(gathered.astype(bf16), w3_ref[t],
                              preferred_element_type=f32)
    a3 = jnp.maximum(acc3 + b3_ref[...], 0.0)            # (rows3, 128)

    # ---- fused epilogue: global average pool over spatial rows + FC head ----
    pooled = jnp.mean(a3, axis=0, keepdims=True)         # (1, 128)
    coeff = jnp.dot(pooled.astype(bf16), wfc_ref[...],
                    preferred_element_type=f32) + bfc_ref[...]   # (1, 384)
    o_ref[...] = coeff.reshape(1, 1, -1)


def _fused_backbone(p1, params):
    """p1: (B, rows1, 128) bf16 layer-1 im2col rows; returns (B, 384) f32."""
    (w1p, b1p, g2, w2p, b2p, g3, w3p, b3p, wfcp, bfcp) = params
    B, rows1, kp = p1.shape
    rows2 = g2.shape[1]

    out = pl.pallas_call(
        _fused_backbone_kernel,
        out_shape=jax.ShapeDtypeStruct((B, 1, NP_FC), jnp.float32),
        grid=(B,),
        in_specs=[
            pl.BlockSpec((1, rows1, kp), lambda b: (b, 0, 0)),
            pl.BlockSpec(w1p.shape, lambda b: (0, 0)),
            pl.BlockSpec(b1p.shape, lambda b: (0, 0)),
            pl.BlockSpec(g2.shape, lambda b: (0, 0, 0)),
            pl.BlockSpec(w2p.shape, lambda b: (0, 0, 0)),
            pl.BlockSpec(b2p.shape, lambda b: (0, 0)),
            pl.BlockSpec(g3.shape, lambda b: (0, 0, 0)),
            pl.BlockSpec(w3p.shape, lambda b: (0, 0, 0)),
            pl.BlockSpec(b3p.shape, lambda b: (0, 0)),
            pl.BlockSpec(wfcp.shape, lambda b: (0, 0)),
            pl.BlockSpec(bfcp.shape, lambda b: (0, 0)),
        ],
        out_specs=pl.BlockSpec((1, 1, NP_FC), lambda b: (b, 0, 0)),
        scratch_shapes=[
            pltpu.VMEM((rows1, CP), jnp.bfloat16),   # conv1 activation
            pltpu.VMEM((rows2, CP), jnp.bfloat16),   # conv2 activation
        ],
        compiler_params=pltpu.CompilerParams(
            dimension_semantics=("parallel",)),      # one image per TC on v7x
    )(p1, w1p, b1p, g2, w2p, b2p, g3, w3p, b3p, wfcp, bfcp)
    return out[:, 0, :]


# ---------------------------------------------------------------------------
# Full forward (jitted): preprocessing glue + fused Pallas backbone
# ---------------------------------------------------------------------------
@jax.jit
def _recon_forward(params, batched_images, batched_lm5):
    B, C, H, W = batched_images.shape

    # landmark y-flip (lm[:, -1] = H - 1 - lm[:, -1])
    lm = batched_lm5.at[..., 1].set(H - 1 - batched_lm5[..., 1])
    # TODO(synk): align_img / trans_params_extract (PIL 5-point similarity
    # warp) has no Pallas equivalent; identity alignment is used and the
    # /255 normalization is folded into the conv1 weights.
    trans_params = jnp.tile(
        jnp.array([W, H, 1.0, 0.0, 0.0], jnp.float32)[None, :], (B, 1))

    # Layer-1 im2col (NCHW in -> NHWC patch rows) on the raw [0,255] pixels.
    patches = lax.conv_general_dilated_patches(
        batched_images, filter_shape=(3, 3), window_strides=(2, 2),
        padding=((1, 1), (1, 1)),
        dimension_numbers=("NCHW", "OIHW", "NHWC"))        # (B, H/2, W/2, C*9)
    k = patches.shape[-1]
    p1 = jnp.pad(
        patches.reshape(B, (H // 2) * (W // 2), k).astype(jnp.bfloat16),
        ((0, 0), (0, 0), (0, CP - k)))                     # K padded to 128

    batch_coeff = _fused_backbone(p1, params)[:, :COEFF_DIM]

    # aligned image (identity warp) back to uint8 NHWC — rounded & clamped
    batch_align_img = jnp.clip(jnp.round(batched_images), 0, 255).astype(
        jnp.uint8).transpose(0, 2, 3, 1)

    return batch_coeff, batch_align_img, trans_params, lm


# ---------------------------------------------------------------------------
# Reconstructor (JAX / Pallas version)
# ---------------------------------------------------------------------------
class ReconstructorPallas:
    def __init__(self, key, input_hw=(32, 32)):
        H, W = input_hw
        assert H % 8 == 0 and W % 8 == 0
        ks = jax.random.split(key, 8)

        def conv_init(k, o, i, kh, kw):
            fan_in = i * kh * kw
            return (jax.random.normal(k, (o, i, kh, kw), jnp.float32)
                    * np.sqrt(2.0 / fan_in))

        # raw (reference) parameters, PyTorch OIHW layout
        self.w1 = conv_init(ks[0], 16, 3, 3, 3)
        self.b1 = jnp.zeros((16,), jnp.float32)
        self.w2 = conv_init(ks[1], 32, 16, 3, 3)
        self.b2 = jnp.zeros((32,), jnp.float32)
        self.w3 = conv_init(ks[2], 64, 32, 3, 3)
        self.b3 = jnp.zeros((64,), jnp.float32)
        self.wfc = (jax.random.normal(ks[3], (64, COEFF_DIM), jnp.float32)
                    * np.sqrt(1.0 / 64.0))
        self.bfc = jnp.zeros((COEFF_DIM,), jnp.float32)
        # deterministic stand-in for load_lm3d(opt.bfm_folder)
        self.lm3d_std = jax.random.uniform(ks[4], (5, 3), jnp.float32)

        # --------- pre-padded / bf16 kernel parameters (built once) ---------
        def pad2(x, shape):
            out = np.zeros(shape, np.float32)
            out[:x.shape[0], :x.shape[1]] = x
            return out

        # conv1 as GEMM: (Ci,kh,kw)-ordered rows; /255 normalization folded in
        w1m = np.asarray(self.w1).reshape(16, 27).T / 255.0
        w1p = jnp.asarray(pad2(w1m, (CP, CP)), jnp.bfloat16)
        b1p = jnp.asarray(pad2(np.asarray(self.b1)[None, :], (1, CP)),
                          jnp.float32)

        def tap_weights(w_oihw):
            o, i, kh, kw = w_oihw.shape
            w_np = np.asarray(w_oihw)
            out = np.zeros((kh * kw, CP, CP), np.float32)
            for ki in range(kh):
                for kj in range(kw):
                    out[ki * kw + kj, :i, :o] = w_np[:, :, ki, kj].T
            return jnp.asarray(out, jnp.bfloat16)

        w2p = tap_weights(self.w2)
        b2p = jnp.asarray(pad2(np.asarray(self.b2)[None, :], (1, CP)),
                          jnp.float32)
        w3p = tap_weights(self.w3)
        b3p = jnp.asarray(pad2(np.asarray(self.b3)[None, :], (1, CP)),
                          jnp.float32)
        wfcp = jnp.asarray(pad2(np.asarray(self.wfc), (CP, NP_FC)),
                           jnp.bfloat16)
        bfcp = jnp.asarray(pad2(np.asarray(self.bfc)[None, :], (1, NP_FC)),
                           jnp.float32)

        # conv-as-matmul spatial selection matrices (0/1, exact in bf16)
        g2 = jnp.asarray(_make_gather_matrices(H // 2, W // 2), jnp.bfloat16)
        g3 = jnp.asarray(_make_gather_matrices(H // 4, W // 4), jnp.bfloat16)

        self.params = (w1p, b1p, g2, w2p, b2p, g3, w3p, b3p, wfcp, bfcp)

    def recon_coeff(self, batched_images, batched_lm5):
        """batched_images: (B, 3, H, W) float32 in [0, 255]; lm5: (B, 5, 2)."""
        return _recon_forward(self.params, batched_images, batched_lm5)

    def __call__(self, batched_images, batched_lm5):
        coeff, align_img, trans_params, _ = self.recon_coeff(
            batched_images, batched_lm5)
        return coeff, align_img, trans_params


# ---------------------------------------------------------------------------
# Pure-JAX f32 reference of the backbone (for the runtime correctness check)
# ---------------------------------------------------------------------------
def _reference_forward(model, batched_images):
    x = batched_images.transpose(0, 2, 3, 1).astype(jnp.float32) / 255.0

    def conv(x, w_oihw, b):
        w_hwio = jnp.transpose(w_oihw, (2, 3, 1, 0))
        y = lax.conv_general_dilated(
            x, w_hwio, (2, 2), ((1, 1), (1, 1)),
            dimension_numbers=("NHWC", "HWIO", "NHWC"))
        return jnp.maximum(y + b, 0.0)

    x = conv(x, model.w1, model.b1)
    x = conv(x, model.w2, model.b2)
    x = conv(x, model.w3, model.b3)
    pooled = x.mean(axis=(1, 2))                           # (B, 64)
    return pooled @ model.wfc + model.bfc


if __name__ == "__main__":
    key = jax.random.PRNGKey(0)
    k_model, k_img, k_lm = jax.random.split(key, 3)

    B, C, H, W = 2, 3, 32, 32
    batched_images = jax.random.uniform(
        k_img, (B, C, H, W), jnp.float32, minval=0.0, maxval=255.0)
    batched_lm5 = jax.random.uniform(
        k_lm, (B, 5, 2), jnp.float32, minval=0.0, maxval=float(H - 1))

    model = ReconstructorPallas(k_model, input_hw=(H, W))
    coeff, align_img, trans_params = model(batched_images, batched_lm5)
    jax.block_until_ready((coeff, align_img, trans_params))

    assert coeff.shape == (B, COEFF_DIM)
    assert align_img.shape == (B, H, W, C) and align_img.dtype == jnp.uint8
    assert trans_params.shape == (B, 5)
    assert bool(jnp.all(jnp.isfinite(coeff)))

    # tolerance-assert the fused bf16 Pallas backbone against a pure-JAX f32 ref
    ref = _reference_forward(model, batched_images)
    np.testing.assert_allclose(np.asarray(coeff), np.asarray(ref),
                               rtol=1e-1, atol=5e-2)

    print("KERNEL_OK")
</pallas_src>

<mosaic_0001>
module attributes {stable_mosaic.version = 11 : i64} {
  func.func @_fused_backbone_kernel(%arg0: i32, %arg1: memref<1x256x128xbf16, #tpu.memory_space<vmem>>, %arg2: memref<128x128xbf16, #tpu.memory_space<vmem>>, %arg3: memref<1x128xf32, #tpu.memory_space<vmem>>, %arg4: memref<9x64x256xbf16, #tpu.memory_space<vmem>>, %arg5: memref<9x128x128xbf16, #tpu.memory_space<vmem>>, %arg6: memref<1x128xf32, #tpu.memory_space<vmem>>, %arg7: memref<9x16x64xbf16, #tpu.memory_space<vmem>>, %arg8: memref<9x128x128xbf16, #tpu.memory_space<vmem>>, %arg9: memref<1x128xf32, #tpu.memory_space<vmem>>, %arg10: memref<128x384xbf16, #tpu.memory_space<vmem>>, %arg11: memref<1x384xf32, #tpu.memory_space<vmem>>, %arg12: memref<1x1x384xf32, #tpu.memory_space<vmem>>, %arg13: memref<256x128xbf16, #tpu.memory_space<vmem>>, %arg14: memref<64x128xbf16, #tpu.memory_space<vmem>>) attributes {dimension_semantics = [#tpu.dimension_semantics<parallel>], iteration_bounds = array<i64: 2>, scalar_prefetch = 0 : i64, scratch_operands = 2 : i64, tpu.core_type = #tpu.core_type<tc>, window_params = [{transform_indices = @transform_0, window_bounds = array<i64: 1, 256, 128>}, {pipeline_mode = #tpu.pipeline_mode<synchronous>, transform_indices = @transform_1, window_bounds = array<i64: 128, 128>}, {pipeline_mode = #tpu.pipeline_mode<synchronous>, transform_indices = @transform_2, window_bounds = array<i64: 1, 128>}, {pipeline_mode = #tpu.pipeline_mode<synchronous>, transform_indices = @transform_3, window_bounds = array<i64: 9, 64, 256>}, {pipeline_mode = #tpu.pipeline_mode<synchronous>, transform_indices = @transform_4, window_bounds = array<i64: 9, 128, 128>}, {pipeline_mode = #tpu.pipeline_mode<synchronous>, transform_indices = @transform_5, window_bounds = array<i64: 1, 128>}, {pipeline_mode = #tpu.pipeline_mode<synchronous>, transform_indices = @transform_6, window_bounds = array<i64: 9, 16, 64>}, {pipeline_mode = #tpu.pipeline_mode<synchronous>, transform_indices = @transform_7, window_bounds = array<i64: 9, 128, 128>}, {pipeline_mode = #tpu.pipeline_mode<synchronous>, transform_indices = @transform_8, window_bounds = array<i64: 1, 128>}, {pipeline_mode = #tpu.pipeline_mode<synchronous>, transform_indices = @transform_9, window_bounds = array<i64: 128, 384>}, {pipeline_mode = #tpu.pipeline_mode<synchronous>, transform_indices = @transform_10, window_bounds = array<i64: 1, 384>}, {transform_indices = @transform_11, window_bounds = array<i64: 1, 1, 384>}]} {
    %c0 = arith.constant 0 : index
    %c0_0 = arith.constant 0 : index
    %c0_1 = arith.constant 0 : index
    %0 = vector.load %arg1[%c0, %c0_0, %c0_1] : memref<1x256x128xbf16, #tpu.memory_space<vmem>>, vector<1x256x128xbf16>
    %1 = vector.shape_cast %0 : vector<1x256x128xbf16> to vector<256x128xbf16>
    %c0_2 = arith.constant 0 : index
    %c0_3 = arith.constant 0 : index
    %2 = vector.load %arg2[%c0_2, %c0_3] : memref<128x128xbf16, #tpu.memory_space<vmem>>, vector<128x128xbf16>
    %cst = arith.constant dense<0.000000e+00> : vector<256x128xf32>
    %3 = tpu.matmul %1, %2, %cst {dimension_numbers = #tpu.dot_dimension_numbers<[1], [0], [0], [1], [0, 0, 1, 1], [], []>} : vector<256x128xbf16>, vector<128x128xbf16>, vector<256x128xf32> -> vector<256x128xf32>
    %c0_4 = arith.constant 0 : index
    %c0_5 = arith.constant 0 : index
    %4 = vector.load %arg3[%c0_4, %c0_5] : memref<1x128xf32, #tpu.memory_space<vmem>>, vector<1x128xf32>
    %5 = vector.broadcast %4 : vector<1x128xf32> to vector<256x128xf32>
    %6 = arith.addf %3, %5 : vector<256x128xf32>
    %cst_6 = arith.constant 0.000000e+00 : f32
    %7 = vector.broadcast %cst_6 : f32 to vector<256x128xf32>
    %8 = arith.maximumf %6, %7 : vector<256x128xf32>
    %9 = arith.truncf %8 : vector<256x128xf32> to vector<256x128xbf16>
    %c0_7 = arith.constant 0 : index
    %c0_8 = arith.constant 0 : index
    %10 = vector.load %arg13[%c0_7, %c0_8] : memref<256x128xbf16, #tpu.memory_space<vmem>>, vector<256x128xbf16>
    tpu.vector_store %arg13[%c0_7, %c0_8], %9 {strides = array<i32>} : memref<256x128xbf16, #tpu.memory_space<vmem>>, vector<256x128xbf16>,
    %cst_9 = arith.constant 0.000000e+00 : f32
    %11 = vector.broadcast %cst_9 : f32 to vector<64x128xf32>
    %c0_10 = arith.constant 0 : index
    %c0_11 = arith.constant 0 : index
    %c0_12 = arith.constant 0 : index
    %12 = vector.load %arg4[%c0_10, %c0_11, %c0_12] : memref<9x64x256xbf16, #tpu.memory_space<vmem>>, vector<1x64x256xbf16>
    %13 = vector.shape_cast %12 : vector<1x64x256xbf16> to vector<64x256xbf16>
    %c0_13 = arith.constant 0 : index
    %c0_14 = arith.constant 0 : index
    %14 = vector.load %arg13[%c0_13, %c0_14] : memref<256x128xbf16, #tpu.memory_space<vmem>>, vector<256x128xbf16>
    %cst_15 = arith.constant dense<0.000000e+00> : vector<64x128xf32>
    %15 = tpu.matmul %13, %14, %cst_15 {dimension_numbers = #tpu.dot_dimension_numbers<[1], [0], [0], [1], [0, 0, 1, 1], [], []>} : vector<64x256xbf16>, vector<256x128xbf16>, vector<64x128xf32> -> vector<64x128xf32>
    %16 = arith.truncf %15 : vector<64x128xf32> to vector<64x128xbf16>
    %c0_16 = arith.constant 0 : index
    %c0_17 = arith.constant 0 : index
    %c0_18 = arith.constant 0 : index
    %17 = vector.load %arg5[%c0_16, %c0_17, %c0_18] : memref<9x128x128xbf16, #tpu.memory_space<vmem>>, vector<1x128x128xbf16>
    %18 = vector.shape_cast %17 : vector<1x128x128xbf16> to vector<128x128xbf16>
    %cst_19 = arith.constant dense<0.000000e+00> : vector<64x128xf32>
    %19 = tpu.matmul %16, %18, %cst_19 {dimension_numbers = #tpu.dot_dimension_numbers<[1], [0], [0], [1], [0, 0, 1, 1], [], []>} : vector<64x128xbf16>, vector<128x128xbf16>, vector<64x128xf32> -> vector<64x128xf32>
    %20 = arith.addf %11, %19 : vector<64x128xf32>
    %c1 = arith.constant 1 : index
    %c0_20 = arith.constant 0 : index
    %c0_21 = arith.constant 0 : index
    %21 = vector.load %arg4[%c1, %c0_20, %c0_21] : memref<9x64x256xbf16, #tpu.memory_space<vmem>>, vector<1x64x256xbf16>
    %22 = vector.shape_cast %21 : vector<1x64x256xbf16> to vector<64x256xbf16>
    %c0_22 = arith.constant 0 : index
    %c0_23 = arith.constant 0 : index
    %23 = vector.load %arg13[%c0_22, %c0_23] : memref<256x128xbf16, #tpu.memory_space<vmem>>, vector<256x128xbf16>
    %cst_24 = arith.constant dense<0.000000e+00> : vector<64x128xf32>
    %24 = tpu.matmul %22, %23, %cst_24 {dimension_numbers = #tpu.dot_dimension_numbers<[1], [0], [0], [1], [0, 0, 1, 1], [], []>} : vector<64x256xbf16>, vector<256x128xbf16>, vector<64x128xf32> -> vector<64x128xf32>
    %25 = arith.truncf %24 : vector<64x128xf32> to vector<64x128xbf16>
    %c1_25 = arith.constant 1 : index
    %c0_26 = arith.constant 0 : index
    %c0_27 = arith.constant 0 : index
    %26 = vector.load %arg5[%c1_25, %c0_26, %c0_27] : memref<9x128x128xbf16, #tpu.memory_space<vmem>>, vector<1x128x128xbf16>
    %27 = vector.shape_cast %26 : vector<1x128x128xbf16> to vector<128x128xbf16>
    %cst_28 = arith.constant dense<0.000000e+00> : vector<64x128xf32>
    %28 = tpu.matmul %25, %27, %cst_28 {dimension_numbers = #tpu.dot_dimension_numbers<[1], [0], [0], [1], [0, 0, 1, 1], [], []>} : vector<64x128xbf16>, vector<128x128xbf16>, vector<64x128xf32> -> vector<64x128xf32>
    %29 = arith.addf %20, %28 : vector<64x128xf32>
    %c2 = arith.constant 2 : index
    %c0_29 = arith.constant 0 : index
    %c0_30 = arith.constant 0 : index
    %30 = vector.load %arg4[%c2, %c0_29, %c0_30] : memref<9x64x256xbf16, #tpu.memory_space<vmem>>, vector<1x64x256xbf16>
    %31 = vector.shape_cast %30 : vector<1x64x256xbf16> to vector<64x256xbf16>
    %c0_31 = arith.constant 0 : index
    %c0_32 = arith.constant 0 : index
    %32 = vector.load %arg13[%c0_31, %c0_32] : memref<256x128xbf16, #tpu.memory_space<vmem>>, vector<256x128xbf16>
    %cst_33 = arith.constant dense<0.000000e+00> : vector<64x128xf32>
    %33 = tpu.matmul %31, %32, %cst_33 {dimension_numbers = #tpu.dot_dimension_numbers<[1], [0], [0], [1], [0, 0, 1, 1], [], []>} : vector<64x256xbf16>, vector<256x128xbf16>, vector<64x128xf32> -> vector<64x128xf32>
    %34 = arith.truncf %33 : vector<64x128xf32> to vector<64x128xbf16>
    %c2_34 = arith.constant 2 : index
    %c0_35 = arith.constant 0 : index
    %c0_36 = arith.constant 0 : index
    %35 = vector.load %arg5[%c2_34, %c0_35, %c0_36] : memref<9x128x128xbf16, #tpu.memory_space<vmem>>, vector<1x128x128xbf16>
    %36 = vector.shape_cast %35 : vector<1x128x128xbf16> to vector<128x128xbf16>
    %cst_37 = arith.constant dense<0.000000e+00> : vector<64x128xf32>
    %37 = tpu.matmul %34, %36, %cst_37 {dimension_numbers = #tpu.dot_dimension_numbers<[1], [0], [0], [1], [0, 0, 1, 1], [], []>} : vector<64x128xbf16>, vector<128x128xbf16>, vector<64x128xf32> -> vector<64x128xf32>
    %38 = arith.addf %29, %37 : vector<64x128xf32>
    %c3 = arith.constant 3 : index
    %c0_38 = arith.constant 0 : index
    %c0_39 = arith.constant 0 : index
    %39 = vector.load %arg4[%c3, %c0_38, %c0_39] : memref<9x64x256xbf16, #tpu.memory_space<vmem>>, vector<1x64x256xbf16>
    %40 = vector.shape_cast %39 : vector<1x64x256xbf16> to vector<64x256xbf16>
    %c0_40 = arith.constant 0 : index
    %c0_41 = arith.constant 0 : index
    %41 = vector.load %arg13[%c0_40, %c0_41] : memref<256x128xbf16, #tpu.memory_space<vmem>>, vector<256x128xbf16>
    %cst_42 = arith.constant dense<0.000000e+00> : vector<64x128xf32>
    %42 = tpu.matmul %40, %41, %cst_42 {dimension_numbers = #tpu.dot_dimension_numbers<[1], [0], [0], [1], [0, 0, 1, 1], [], []>} : vector<64x256xbf16>, vector<256x128xbf16>, vector<64x128xf32> -> vector<64x128xf32>
    %43 = arith.truncf %42 : vector<64x128xf32> to vector<64x128xbf16>
    %c3_43 = arith.constant 3 : index
    %c0_44 = arith.constant 0 : index
    %c0_45 = arith.constant 0 : index
    %44 = vector.load %arg5[%c3_43, %c0_44, %c0_45] : memref<9x128x128xbf16, #tpu.memory_space<vmem>>, vector<1x128x128xbf16>
    %45 = vector.shape_cast %44 : vector<1x128x128xbf16> to vector<128x128xbf16>
    %cst_46 = arith.constant dense<0.000000e+00> : vector<64x128xf32>
    %46 = tpu.matmul %43, %45, %cst_46 {dimension_numbers = #tpu.dot_dimension_numbers<[1], [0], [0], [1], [0, 0, 1, 1], [], []>} : vector<64x128xbf16>, vector<128x128xbf16>, vector<64x128xf32> -> vector<64x128xf32>
    %47 = arith.addf %38, %46 : vector<64x128xf32>
    %c4 = arith.constant 4 : index
    %c0_47 = arith.constant 0 : index
    %c0_48 = arith.constant 0 : index
    %48 = vector.load %arg4[%c4, %c0_47, %c0_48] : memref<9x64x256xbf16, #tpu.memory_space<vmem>>, vector<1x64x256xbf16>
    %49 = vector.shape_cast %48 : vector<1x64x256xbf16> to vector<64x256xbf16>
    %c0_49 = arith.constant 0 : index
    %c0_50 = arith.constant 0 : index
    %50 = vector.load %arg13[%c0_49, %c0_50] : memref<256x128xbf16, #tpu.memory_space<vmem>>, vector<256x128xbf16>
    %cst_51 = arith.constant dense<0.000000e+00> : vector<64x128xf32>
    %51 = tpu.matmul %49, %50, %cst_51 {dimension_numbers = #tpu.dot_dimension_numbers<[1], [0], [0], [1], [0, 0, 1, 1], [], []>} : vector<64x256xbf16>, vector<256x128xbf16>, vector<64x128xf32> -> vector<64x128xf32>
    %52 = arith.truncf %51 : vector<64x128xf32> to vector<64x128xbf16>
    %c4_52 = arith.constant 4 : index
    %c0_53 = arith.constant 0 : index
    %c0_54 = arith.constant 0 : index
    %53 = vector.load %arg5[%c4_52, %c0_53, %c0_54] : memref<9x128x128xbf16, #tpu.memory_space<vmem>>, vector<1x128x128xbf16>
    %54 = vector.shape_cast %53 : vector<1x128x128xbf16> to vector<128x128xbf16>
    %cst_55 = arith.constant dense<0.000000e+00> : vector<64x128xf32>
    %55 = tpu.matmul %52, %54, %cst_55 {dimension_numbers = #tpu.dot_dimension_numbers<[1], [0], [0], [1], [0, 0, 1, 1], [], []>} : vector<64x128xbf16>, vector<128x128xbf16>, vector<64x128xf32> -> vector<64x128xf32>
    %56 = arith.addf %47, %55 : vector<64x128xf32>
    %c5 = arith.constant 5 : index
    %c0_56 = arith.constant 0 : index
    %c0_57 = arith.constant 0 : index
    %57 = vector.load %arg4[%c5, %c0_56, %c0_57] : memref<9x64x256xbf16, #tpu.memory_space<vmem>>, vector<1x64x256xbf16>
    %58 = vector.shape_cast %57 : vector<1x64x256xbf16> to vector<64x256xbf16>
    %c0_58 = arith.constant 0 : index
    %c0_59 = arith.constant 0 : index
    %59 = vector.load %arg13[%c0_58, %c0_59] : memref<256x128xbf16, #tpu.memory_space<vmem>>, vector<256x128xbf16>
    %cst_60 = arith.constant dense<0.000000e+00> : vector<64x128xf32>
    %60 = tpu.matmul %58, %59, %cst_60 {dimension_numbers = #tpu.dot_dimension_numbers<[1], [0], [0], [1], [0, 0, 1, 1], [], []>} : vector<64x256xbf16>, vector<256x128xbf16>, vector<64x128xf32> -> vector<64x128xf32>
    %61 = arith.truncf %60 : vector<64x128xf32> to vector<64x128xbf16>
    %c5_61 = arith.constant 5 : index
    %c0_62 = arith.constant 0 : index
    %c0_63 = arith.constant 0 : index
    %62 = vector.load %arg5[%c5_61, %c0_62, %c0_63] : memref<9x128x128xbf16, #tpu.memory_space<vmem>>, vector<1x128x128xbf16>
    %63 = vector.shape_cast %62 : vector<1x128x128xbf16> to vector<128x128xbf16>
    %cst_64 = arith.constant dense<0.000000e+00> : vector<64x128xf32>
    %64 = tpu.matmul %61, %63, %cst_64 {dimension_numbers = #tpu.dot_dimension_numbers<[1], [0], [0], [1], [0, 0, 1, 1], [], []>} : vector<64x128xbf16>, vector<128x128xbf16>, vector<64x128xf32> -> vector<64x128xf32>
    %65 = arith.addf %56, %64 : vector<64x128xf32>
    %c6 = arith.constant 6 : index
    %c0_65 = arith.constant 0 : index
    %c0_66 = arith.constant 0 : index
    %66 = vector.load %arg4[%c6, %c0_65, %c0_66] : memref<9x64x256xbf16, #tpu.memory_space<vmem>>, vector<1x64x256xbf16>
    %67 = vector.shape_cast %66 : vector<1x64x256xbf16> to vector<64x256xbf16>
    %c0_67 = arith.constant 0 : index
    %c0_68 = arith.constant 0 : index
    %68 = vector.load %arg13[%c0_67, %c0_68] : memref<256x128xbf16, #tpu.memory_space<vmem>>, vector<256x128xbf16>
    %cst_69 = arith.constant dense<0.000000e+00> : vector<64x128xf32>
    %69 = tpu.matmul %67, %68, %cst_69 {dimension_numbers = #tpu.dot_dimension_numbers<[1], [0], [0], [1], [0, 0, 1, 1], [], []>} : vector<64x256xbf16>, vector<256x128xbf16>, vector<64x128xf32> -> vector<64x128xf32>
    %70 = arith.truncf %69 : vector<64x128xf32> to vector<64x128xbf16>
    %c6_70 = arith.constant 6 : index
    %c0_71 = arith.constant 0 : index
    %c0_72 = arith.constant 0 : index
    %71 = vector.load %arg5[%c6_70, %c0_71, %c0_72] : memref<9x128x128xbf16, #tpu.memory_space<vmem>>, vector<1x128x128xbf16>
    %72 = vector.shape_cast %71 : vector<1x128x128xbf16> to vector<128x128xbf16>
    %cst_73 = arith.constant dense<0.000000e+00> : vector<64x128xf32>
    %73 = tpu.matmul %70, %72, %cst_73 {dimension_numbers = #tpu.dot_dimension_numbers<[1], [0], [0], [1], [0, 0, 1, 1], [], []>} : vector<64x128xbf16>, vector<128x128xbf16>, vector<64x128xf32> -> vector<64x128xf32>
    %74 = arith.addf %65, %73 : vector<64x128xf32>
    %c7 = arith.constant 7 : index
    %c0_74 = arith.constant 0 : index
    %c0_75 = arith.constant 0 : index
    %75 = vector.load %arg4[%c7, %c0_74, %c0_75] : memref<9x64x256xbf16, #tpu.memory_space<vmem>>, vector<1x64x256xbf16>
    %76 = vector.shape_cast %75 : vector<1x64x256xbf16> to vector<64x256xbf16>
    %c0_76 = arith.constant 0 : index
    %c0_77 = arith.constant 0 : index
    %77 = vector.load %arg13[%c0_76, %c0_77] : memref<256x128xbf16, #tpu.memory_space<vmem>>, vector<256x128xbf16>
    %cst_78 = arith.constant dense<0.000000e+00> : vector<64x128xf32>
    %78 = tpu.matmul %76, %77, %cst_78 {dimension_numbers = #tpu.dot_dimension_numbers<[1], [0], [0], [1], [0, 0, 1, 1], [], []>} : vector<64x256xbf16>, vector<256x128xbf16>, vector<64x128xf32> -> vector<64x128xf32>
    %79 = arith.truncf %78 : vector<64x128xf32> to vector<64x128xbf16>
    %c7_79 = arith.constant 7 : index
    %c0_80 = arith.constant 0 : index
    %c0_81 = arith.constant 0 : index
    %80 = vector.load %arg5[%c7_79, %c0_80, %c0_81] : memref<9x128x128xbf16, #tpu.memory_space<vmem>>, vector<1x128x128xbf16>
    %81 = vector.shape_cast %80 : vector<1x128x128xbf16> to vector<128x128xbf16>
    %cst_82 = arith.constant dense<0.000000e+00> : vector<64x128xf32>
    %82 = tpu.matmul %79, %81, %cst_82 {dimension_numbers = #tpu.dot_dimension_numbers<[1], [0], [0], [1], [0, 0, 1, 1], [], []>} : vector<64x128xbf16>, vector<128x128xbf16>, vector<64x128xf32> -> vector<64x128xf32>
    %83 = arith.addf %74, %82 : vector<64x128xf32>
    %c8 = arith.constant 8 : index
    %c0_83 = arith.constant 0 : index
    %c0_84 = arith.constant 0 : index
    %84 = vector.load %arg4[%c8, %c0_83, %c0_84] : memref<9x64x256xbf16, #tpu.memory_space<vmem>>, vector<1x64x256xbf16>
    %85 = vector.shape_cast %84 : vector<1x64x256xbf16> to vector<64x256xbf16>
    %c0_85 = arith.constant 0 : index
    %c0_86 = arith.constant 0 : index
    %86 = vector.load %arg13[%c0_85, %c0_86] : memref<256x128xbf16, #tpu.memory_space<vmem>>, vector<256x128xbf16>
    %cst_87 = arith.constant dense<0.000000e+00> : vector<64x128xf32>
    %87 = tpu.matmul %85, %86, %cst_87 {dimension_numbers = #tpu.dot_dimension_numbers<[1], [0], [0], [1], [0, 0, 1, 1], [], []>} : vector<64x256xbf16>, vector<256x128xbf16>, vector<64x128xf32> -> vector<64x128xf32>
    %88 = arith.truncf %87 : vector<64x128xf32> to vector<64x128xbf16>
    %c8_88 = arith.constant 8 : index
    %c0_89 = arith.constant 0 : index
    %c0_90 = arith.constant 0 : index
    %89 = vector.load %arg5[%c8_88, %c0_89, %c0_90] : memref<9x128x128xbf16, #tpu.memory_space<vmem>>, vector<1x128x128xbf16>
    %90 = vector.shape_cast %89 : vector<1x128x128xbf16> to vector<128x128xbf16>
    %cst_91 = arith.constant dense<0.000000e+00> : vector<64x128xf32>
    %91 = tpu.matmul %88, %90, %cst_91 {dimension_numbers = #tpu.dot_dimension_numbers<[1], [0], [0], [1], [0, 0, 1, 1], [], []>} : vector<64x128xbf16>, vector<128x128xbf16>, vector<64x128xf32> -> vector<64x128xf32>
    %92 = arith.addf %83, %91 : vector<64x128xf32>
    %c0_92 = arith.constant 0 : index
    %c0_93 = arith.constant 0 : index
    %93 = vector.load %arg6[%c0_92, %c0_93] : memref<1x128xf32, #tpu.memory_space<vmem>>, vector<1x128xf32>
    %94 = vector.broadcast %93 : vector<1x128xf32> to vector<64x128xf32>
    %95 = arith.addf %92, %94 : vector<64x128xf32>
    %cst_94 = arith.constant 0.000000e+00 : f32
    %96 = vector.broadcast %cst_94 : f32 to vector<64x128xf32>
    %97 = arith.maximumf %95, %96 : vector<64x128xf32>
    %98 = arith.truncf %97 : vector<64x128xf32> to vector<64x128xbf16>
    %c0_95 = arith.constant 0 : index
    %c0_96 = arith.constant 0 : index
    %99 = vector.load %arg14[%c0_95, %c0_96] : memref<64x128xbf16, #tpu.memory_space<vmem>>, vector<64x128xbf16>
    tpu.vector_store %arg14[%c0_95, %c0_96], %98 {strides = array<i32>} : memref<64x128xbf16, #tpu.memory_space<vmem>>, vector<64x128xbf16>,
    %cst_97 = arith.constant 0.000000e+00 : f32
    %100 = vector.broadcast %cst_97 : f32 to vector<16x128xf32>
    %c0_98 = arith.constant 0 : index
    %c0_99 = arith.constant 0 : index
    %c0_100 = arith.constant 0 : index
    %101 = vector.load %arg7[%c0_98, %c0_99, %c0_100] : memref<9x16x64xbf16, #tpu.memory_space<vmem>>, vector<1x16x64xbf16>
    %102 = vector.shape_cast %101 : vector<1x16x64xbf16> to vector<16x64xbf16>
    %c0_101 = arith.constant 0 : index
    %c0_102 = arith.constant 0 : index
    %103 = vector.load %arg14[%c0_101, %c0_102] : memref<64x128xbf16, #tpu.memory_space<vmem>>, vector<64x128xbf16>
    %cst_103 = arith.constant dense<0.000000e+00> : vector<16x128xf32>
    %104 = tpu.matmul %102, %103, %cst_103 {dimension_numbers = #tpu.dot_dimension_numbers<[1], [0], [0], [1], [0, 0, 1, 1], [], []>} : vector<16x64xbf16>, vector<64x128xbf16>, vector<16x128xf32> -> vector<16x128xf32>
    %105 = arith.truncf %104 : vector<16x128xf32> to vector<16x128xbf16>
    %c0_104 = arith.constant 0 : index
    %c0_105 = arith.constant 0 : index
    %c0_106 = arith.constant 0 : index
    %106 = vector.load %arg8[%c0_104, %c0_105, %c0_106] : memref<9x128x128xbf16, #tpu.memory_space<vmem>>, vector<1x128x128xbf16>
    %107 = vector.shape_cast %106 : vector<1x128x128xbf16> to vector<128x128xbf16>
    %cst_107 = arith.constant dense<0.000000e+00> : vector<16x128xf32>
    %108 = tpu.matmul %105, %107, %cst_107 {dimension_numbers = #tpu.dot_dimension_numbers<[1], [0], [0], [1], [0, 0, 1, 1], [], []>} : vector<16x128xbf16>, vector<128x128xbf16>, vector<16x128xf32> -> vector<16x128xf32>
    %109 = arith.addf %100, %108 : vector<16x128xf32>
    %c1_108 = arith.constant 1 : index
    %c0_109 = arith.constant 0 : index
    %c0_110 = arith.constant 0 : index
    %110 = vector.load %arg7[%c1_108, %c0_109, %c0_110] : memref<9x16x64xbf16, #tpu.memory_space<vmem>>, vector<1x16x64xbf16>
    %111 = vector.shape_cast %110 : vector<1x16x64xbf16> to vector<16x64xbf16>
    %c0_111 = arith.constant 0 : index
    %c0_112 = arith.constant 0 : index
    %112 = vector.load %arg14[%c0_111, %c0_112] : memref<64x128xbf16, #tpu.memory_space<vmem>>, vector<64x128xbf16>
    %cst_113 = arith.constant dense<0.000000e+00> : vector<16x128xf32>
    %113 = tpu.matmul %111, %112, %cst_113 {dimension_numbers = #tpu.dot_dimension_numbers<[1], [0], [0], [1], [0, 0, 1, 1], [], []>} : vector<16x64xbf16>, vector<64x128xbf16>, vector<16x128xf32> -> vector<16x128xf32>
    %114 = arith.truncf %113 : vector<16x128xf32> to vector<16x128xbf16>
    %c1_114 = arith.constant 1 : index
    %c0_115 = arith.constant 0 : index
    %c0_116 = arith.constant 0 : index
    %115 = vector.load %arg8[%c1_114, %c0_115, %c0_116] : memref<9x128x128xbf16, #tpu.memory_space<vmem>>, vector<1x128x128xbf16>
    %116 = vector.shape_cast %115 : vector<1x128x128xbf16> to vector<128x128xbf16>
    %cst_117 = arith.constant dense<0.000000e+00> : vector<16x128xf32>
    %117 = tpu.matmul %114, %116, %cst_117 {dimension_numbers = #tpu.dot_dimension_numbers<[1], [0], [0], [1], [0, 0, 1, 1], [], []>} : vector<16x128xbf16>, vector<128x128xbf16>, vector<16x128xf32> -> vector<16x128xf32>
    %118 = arith.addf %109, %117 : vector<16x128xf32>
    %c2_118 = arith.constant 2 : index
    %c0_119 = arith.constant 0 : index
    %c0_120 = arith.constant 0 : index
    %119 = vector.load %arg7[%c2_118, %c0_119, %c0_120] : memref<9x16x64xbf16, #tpu.memory_space<vmem>>, vector<1x16x64xbf16>
    %120 = vector.shape_cast %119 : vector<1x16x64xbf16> to vector<16x64xbf16>
    %c0_121 = arith.constant 0 : index
    %c0_122 = arith.constant 0 : index
    %121 = vector.load %arg14[%c0_121, %c0_122] : memref<64x128xbf16, #tpu.memory_space<vmem>>, vector<64x128xbf16>
    %cst_123 = arith.constant dense<0.000000e+00> : vector<16x128xf32>
    %122 = tpu.matmul %120, %121, %cst_123 {dimension_numbers = #tpu.dot_dimension_numbers<[1], [0], [0], [1], [0, 0, 1, 1], [], []>} : vector<16x64xbf16>, vector<64x128xbf16>, vector<16x128xf32> -> vector<16x128xf32>
    %123 = arith.truncf %122 : vector<16x128xf32> to vector<16x128xbf16>
    %c2_124 = arith.constant 2 : index
    %c0_125 = arith.constant 0 : index
    %c0_126 = arith.constant 0 : index
    %124 = vector.load %arg8[%c2_124, %c0_125, %c0_126] : memref<9x128x128xbf16, #tpu.memory_space<vmem>>, vector<1x128x128xbf16>
    %125 = vector.shape_cast %124 : vector<1x128x128xbf16> to vector<128x128xbf16>
    %cst_127 = arith.constant dense<0.000000e+00> : vector<16x128xf32>
    %126 = tpu.matmul %123, %125, %cst_127 {dimension_numbers = #tpu.dot_dimension_numbers<[1], [0], [0], [1], [0, 0, 1, 1], [], []>} : vector<16x128xbf16>, vector<128x128xbf16>, vector<16x128xf32> -> vector<16x128xf32>
    %127 = arith.addf %118, %126 : vector<16x128xf32>
    %c3_128 = arith.constant 3 : index
    %c0_129 = arith.constant 0 : index
    %c0_130 = arith.constant 0 : index
    %128 = vector.load %arg7[%c3_128, %c0_129, %c0_130] : memref<9x16x64xbf16, #tpu.memory_space<vmem>>, vector<1x16x64xbf16>
    %129 = vector.shape_cast %128 : vector<1x16x64xbf16> to vector<16x64xbf16>
    %c0_131 = arith.constant 0 : index
    %c0_132 = arith.constant 0 : index
    %130 = vector.load %arg14[%c0_131, %c0_132] : memref<64x128xbf16, #tpu.memory_space<vmem>>, vector<64x128xbf16>
    %cst_133 = arith.constant dense<0.000000e+00> : vector<16x128xf32>
    %131 = tpu.matmul %129, %130, %cst_133 {dimension_numbers = #tpu.dot_dimension_numbers<[1], [0], [0], [1], [0, 0, 1, 1], [], []>} : vector<16x64xbf16>, vector<64x128xbf16>, vector<16x128xf32> -> vector<16x128xf32>
    %132 = arith.truncf %131 : vector<16x128xf32> to vector<16x128xbf16>
    %c3_134 = arith.constant 3 : index
    %c0_135 = arith.constant 0 : index
    %c0_136 = arith.constant 0 : index
    %133 = vector.load %arg8[%c3_134, %c0_135, %c0_136] : memref<9x128x128xbf16, #tpu.memory_space<vmem>>, vector<1x128x128xbf16>
    %134 = vector.shape_cast %133 : vector<1x128x128xbf16> to vector<128x128xbf16>
    %cst_137 = arith.constant dense<0.000000e+00> : vector<16x128xf32>
    %135 = tpu.matmul %132, %134, %cst_137 {dimension_numbers = #tpu.dot_dimension_numbers<[1], [0], [0], [1], [0, 0, 1, 1], [], []>} : vector<16x128xbf16>, vector<128x128xbf16>, vector<16x128xf32> -> vector<16x128xf32>
    %136 = arith.addf %127, %135 : vector<16x128xf32>
    %c4_138 = arith.constant 4 : index
    %c0_139 = arith.constant 0 : index
    %c0_140 = arith.constant 0 : index
    %137 = vector.load %arg7[%c4_138, %c0_139, %c0_140] : memref<9x16x64xbf16, #tpu.memory_space<vmem>>, vector<1x16x64xbf16>
    %138 = vector.shape_cast %137 : vector<1x16x64xbf16> to vector<16x64xbf16>
    %c0_141 = arith.constant 0 : index
    %c0_142 = arith.constant 0 : index
    %139 = vector.load %arg14[%c0_141, %c0_142] : memref<64x128xbf16, #tpu.memory_space<vmem>>, vector<64x128xbf16>
    %cst_143 = arith.constant dense<0.000000e+00> : vector<16x128xf32>
    %140 = tpu.matmul %138, %139, %cst_143 {dimension_numbers = #tpu.dot_dimension_numbers<[1], [0], [0], [1], [0, 0, 1, 1], [], []>} : vector<16x64xbf16>, vector<64x128xbf16>, vector<16x128xf32> -> vector<16x128xf32>
    %141 = arith.truncf %140 : vector<16x128xf32> to vector<16x128xbf16>
    %c4_144 = arith.constant 4 : index
    %c0_145 = arith.constant 0 : index
    %c0_146 = arith.constant 0 : index
    %142 = vector.load %arg8[%c4_144, %c0_145, %c0_146] : memref<9x128x128xbf16, #tpu.memory_space<vmem>>, vector<1x128x128xbf16>
    %143 = vector.shape_cast %142 : vector<1x128x128xbf16> to vector<128x128xbf16>
    %cst_147 = arith.constant dense<0.000000e+00> : vector<16x128xf32>
    %144 = tpu.matmul %141, %143, %cst_147 {dimension_numbers = #tpu.dot_dimension_numbers<[1], [0], [0], [1], [0, 0, 1, 1], [], []>} : vector<16x128xbf16>, vector<128x128xbf16>, vector<16x128xf32> -> vector<16x128xf32>
    %145 = arith.addf %136, %144 : vector<16x128xf32>
    %c5_148 = arith.constant 5 : index
    %c0_149 = arith.constant 0 : index
    %c0_150 = arith.constant 0 : index
    %146 = vector.load %arg7[%c5_148, %c0_149, %c0_150] : memref<9x16x64xbf16, #tpu.memory_space<vmem>>, vector<1x16x64xbf16>
    %147 = vector.shape_cast %146 : vector<1x16x64xbf16> to vector<16x64xbf16>
    %c0_151 = arith.constant 0 : index
    %c0_152 = arith.constant 0 : index
    %148 = vector.load %arg14[%c0_151, %c0_152] : memref<64x128xbf16, #tpu.memory_space<vmem>>, vector<64x128xbf16>
    %cst_153 = arith.constant dense<0.000000e+00> : vector<16x128xf32>
    %149 = tpu.matmul %147, %148, %cst_153 {dimension_numbers = #tpu.dot_dimension_numbers<[1], [0], [0], [1], [0, 0, 1, 1], [], []>} : vector<16x64xbf16>, vector<64x128xbf16>, vector<16x128xf32> -> vector<16x128xf32>
    %150 = arith.truncf %149 : vector<16x128xf32> to vector<16x128xbf16>
    %c5_154 = arith.constant 5 : index
    %c0_155 = arith.constant 0 : index
    %c0_156 = arith.constant 0 : index
    %151 = vector.load %arg8[%c5_154, %c0_155, %c0_156] : memref<9x128x128xbf16, #tpu.memory_space<vmem>>, vector<1x128x128xbf16>
    %152 = vector.shape_cast %151 : vector<1x128x128xbf16> to vector<128x128xbf16>
    %cst_157 = arith.constant dense<0.000000e+00> : vector<16x128xf32>
    %153 = tpu.matmul %150, %152, %cst_157 {dimension_numbers = #tpu.dot_dimension_numbers<[1], [0], [0], [1], [0, 0, 1, 1], [], []>} : vector<16x128xbf16>, vector<128x128xbf16>, vector<16x128xf32> -> vector<16x128xf32>
    %154 = arith.addf %145, %153 : vector<16x128xf32>
    %c6_158 = arith.constant 6 : index
    %c0_159 = arith.constant 0 : index
    %c0_160 = arith.constant 0 : index
    %155 = vector.load %arg7[%c6_158, %c0_159, %c0_160] : memref<9x16x64xbf16, #tpu.memory_space<vmem>>, vector<1x16x64xbf16>
    %156 = vector.shape_cast %155 : vector<1x16x64xbf16> to vector<16x64xbf16>
    %c0_161 = arith.constant 0 : index
    %c0_162 = arith.constant 0 : index
    %157 = vector.load %arg14[%c0_161, %c0_162] : memref<64x128xbf16, #tpu.memory_space<vmem>>, vector<64x128xbf16>
    %cst_163 = arith.constant dense<0.000000e+00> : vector<16x128xf32>
    %158 = tpu.matmul %156, %157, %cst_163 {dimension_numbers = #tpu.dot_dimension_numbers<[1], [0], [0], [1], [0, 0, 1, 1], [], []>} : vector<16x64xbf16>, vector<64x128xbf16>, vector<16x128xf32> -> vector<16x128xf32>
    %159 = arith.truncf %158 : vector<16x128xf32> to vector<16x128xbf16>
    %c6_164 = arith.constant 6 : index
    %c0_165 = arith.constant 0 : index
    %c0_166 = arith.constant 0 : index
    %160 = vector.load %arg8[%c6_164, %c0_165, %c0_166] : memref<9x128x128xbf16, #tpu.memory_space<vmem>>, vector<1x128x128xbf16>
    %161 = vector.shape_cast %160 : vector<1x128x128xbf16> to vector<128x128xbf16>
    %cst_167 = arith.constant dense<0.000000e+00> : vector<16x128xf32>
    %162 = tpu.matmul %159, %161, %cst_167 {dimension_numbers = #tpu.dot_dimension_numbers<[1], [0], [0], [1], [0, 0, 1, 1], [], []>} : vector<16x128xbf16>, vector<128x128xbf16>, vector<16x128xf32> -> vector<16x128xf32>
    %163 = arith.addf %154, %162 : vector<16x128xf32>
    %c7_168 = arith.constant 7 : index
    %c0_169 = arith.constant 0 : index
    %c0_170 = arith.constant 0 : index
    %164 = vector.load %arg7[%c7_168, %c0_169, %c0_170] : memref<9x16x64xbf16, #tpu.memory_space<vmem>>, vector<1x16x64xbf16>
    %165 = vector.shape_cast %164 : vector<1x16x64xbf16> to vector<16x64xbf16>
    %c0_171 = arith.constant 0 : index
    %c0_172 = arith.constant 0 : index
    %166 = vector.load %arg14[%c0_171, %c0_172] : memref<64x128xbf16, #tpu.memory_space<vmem>>, vector<64x128xbf16>
    %cst_173 = arith.constant dense<0.000000e+00> : vector<16x128xf32>
    %167 = tpu.matmul %165, %166, %cst_173 {dimension_numbers = #tpu.dot_dimension_numbers<[1], [0], [0], [1], [0, 0, 1, 1], [], []>} : vector<16x64xbf16>, vector<64x128xbf16>, vector<16x128xf32> -> vector<16x128xf32>
    %168 = arith.truncf %167 : vector<16x128xf32> to vector<16x128xbf16>
    %c7_174 = arith.constant 7 : index
    %c0_175 = arith.constant 0 : index
    %c0_176 = arith.constant 0 : index
    %169 = vector.load %arg8[%c7_174, %c0_175, %c0_176] : memref<9x128x128xbf16, #tpu.memory_space<vmem>>, vector<1x128x128xbf16>
    %170 = vector.shape_cast %169 : vector<1x128x128xbf16> to vector<128x128xbf16>
    %cst_177 = arith.constant dense<0.000000e+00> : vector<16x128xf32>
    %171 = tpu.matmul %168, %170, %cst_177 {dimension_numbers = #tpu.dot_dimension_numbers<[1], [0], [0], [1], [0, 0, 1, 1], [], []>} : vector<16x128xbf16>, vector<128x128xbf16>, vector<16x128xf32> -> vector<16x128xf32>
    %172 = arith.addf %163, %171 : vector<16x128xf32>
    %c8_178 = arith.constant 8 : index
    %c0_179 = arith.constant 0 : index
    %c0_180 = arith.constant 0 : index
    %173 = vector.load %arg7[%c8_178, %c0_179, %c0_180] : memref<9x16x64xbf16, #tpu.memory_space<vmem>>, vector<1x16x64xbf16>
    %174 = vector.shape_cast %173 : vector<1x16x64xbf16> to vector<16x64xbf16>
    %c0_181 = arith.constant 0 : index
    %c0_182 = arith.constant 0 : index
    %175 = vector.load %arg14[%c0_181, %c0_182] : memref<64x128xbf16, #tpu.memory_space<vmem>>, vector<64x128xbf16>
    %cst_183 = arith.constant dense<0.000000e+00> : vector<16x128xf32>
    %176 = tpu.matmul %174, %175, %cst_183 {dimension_numbers = #tpu.dot_dimension_numbers<[1], [0], [0], [1], [0, 0, 1, 1], [], []>} : vector<16x64xbf16>, vector<64x128xbf16>, vector<16x128xf32> -> vector<16x128xf32>
    %177 = arith.truncf %176 : vector<16x128xf32> to vector<16x128xbf16>
    %c8_184 = arith.constant 8 : index
    %c0_185 = arith.constant 0 : index
    %c0_186 = arith.constant 0 : index
    %178 = vector.load %arg8[%c8_184, %c0_185, %c0_186] : memref<9x128x128xbf16, #tpu.memory_space<vmem>>, vector<1x128x128xbf16>
    %179 = vector.shape_cast %178 : vector<1x128x128xbf16> to vector<128x128xbf16>
    %cst_187 = arith.constant dense<0.000000e+00> : vector<16x128xf32>
    %180 = tpu.matmul %177, %179, %cst_187 {dimension_numbers = #tpu.dot_dimension_numbers<[1], [0], [0], [1], [0, 0, 1, 1], [], []>} : vector<16x128xbf16>, vector<128x128xbf16>, vector<16x128xf32> -> vector<16x128xf32>
    %181 = arith.addf %172, %180 : vector<16x128xf32>
    %c0_188 = arith.constant 0 : index
    %c0_189 = arith.constant 0 : index
    %182 = vector.load %arg9[%c0_188, %c0_189] : memref<1x128xf32, #tpu.memory_space<vmem>>, vector<1x128xf32>
    %183 = vector.broadcast %182 : vector<1x128xf32> to vector<16x128xf32>
    %184 = arith.addf %181, %183 : vector<16x128xf32>
    %cst_190 = arith.constant 0.000000e+00 : f32
    %185 = vector.broadcast %cst_190 : f32 to vector<16x128xf32>
    %186 = arith.maximumf %184, %185 : vector<16x128xf32>
    %cst_191 = arith.constant dense<0.000000e+00> : vector<128xf32>
    %187 = vector.multi_reduction <add>, %186, %cst_191 [0] : vector<16x128xf32> to vector<128xf32>
    %188 = vector.shape_cast %187 : vector<128xf32> to vector<1x128xf32>
    %cst_192 = arith.constant 1.600000e+01 : f32
    %189 = vector.broadcast %cst_192 : f32 to vector<1x128xf32>
    %190 = arith.divf %188, %189 : vector<1x128xf32>
    %191 = arith.truncf %190 : vector<1x128xf32> to vector<1x128xbf16>
    %c0_193 = arith.constant 0 : index
    %c0_194 = arith.constant 0 : index
    %192 = vector.load %arg10[%c0_193, %c0_194] : memref<128x384xbf16, #tpu.memory_space<vmem>>, vector<128x384xbf16>
    %cst_195 = arith.constant dense<0.000000e+00> : vector<1x384xf32>
    %193 = tpu.matmul %191, %192, %cst_195 {dimension_numbers = #tpu.dot_dimension_numbers<[1], [0], [0], [1], [0, 0, 1, 1], [], []>} : vector<1x128xbf16>, vector<128x384xbf16>, vector<1x384xf32> -> vector<1x384xf32>
    %c0_196 = arith.constant 0 : index
    %c0_197 = arith.constant 0 : index
    %194 = vector.load %arg11[%c0_196, %c0_197] : memref<1x384xf32, #tpu.memory_space<vmem>>, vector<1x384xf32>
    %195 = arith.addf %193, %194 : vector<1x384xf32>
    %196 = vector.shape_cast %195 : vector<1x384xf32> to vector<1x1x384xf32>
    %c0_198 = arith.constant 0 : index
    %c0_199 = arith.constant 0 : index
    %c0_200 = arith.constant 0 : index
    %197 = vector.load %arg12[%c0_198, %c0_199, %c0_200] : memref<1x1x384xf32, #tpu.memory_space<vmem>>, vector<1x1x384xf32>
    tpu.vector_store %arg12[%c0_198, %c0_199, %c0_200], %196 {strides = array<i32>} : memref<1x1x384xf32, #tpu.memory_space<vmem>>, vector<1x1x384xf32>,
    return
  }
  func.func @transform_0(%arg0: i32) -> (i32, i32, i32) {
    %c0_i32 = arith.constant 0 : i32
    %c0_i32_0 = arith.constant 0 : i32
    %c0_i32_1 = arith.constant 0 : i32
    return %arg0, %c0_i32, %c0_i32_0 : i32, i32, i32
  }
  func.func @transform_1(%arg0: i32) -> (i32, i32) {
    %c0_i32 = arith.constant 0 : i32
    %c0_i32_0 = arith.constant 0 : i32
    %c0_i32_1 = arith.constant 0 : i32
    return %c0_i32, %c0_i32_0 : i32, i32
  }
  func.func @transform_2(%arg0: i32) -> (i32, i32) {
    %c0_i32 = arith.constant 0 : i32
    %c0_i32_0 = arith.constant 0 : i32
    %c0_i32_1 = arith.constant 0 : i32
    return %c0_i32, %c0_i32_0 : i32, i32
  }
  func.func @transform_3(%arg0: i32) -> (i32, i32, i32) {
    %c0_i32 = arith.constant 0 : i32
    %c0_i32_0 = arith.constant 0 : i32
    %c0_i32_1 = arith.constant 0 : i32
    %c0_i32_2 = arith.constant 0 : i32
    return %c0_i32, %c0_i32_0, %c0_i32_1 : i32, i32, i32
  }
  func.func @transform_4(%arg0: i32) -> (i32, i32, i32) {
    %c0_i32 = arith.constant 0 : i32
    %c0_i32_0 = arith.constant 0 : i32
    %c0_i32_1 = arith.constant 0 : i32
    %c0_i32_2 = arith.constant 0 : i32
    return %c0_i32, %c0_i32_0, %c0_i32_1 : i32, i32, i32
  }
  func.func @transform_5(%arg0: i32) -> (i32, i32) {
    %c0_i32 = arith.constant 0 : i32
    %c0_i32_0 = arith.constant 0 : i32
    %c0_i32_1 = arith.constant 0 : i32
    return %c0_i32, %c0_i32_0 : i32, i32
  }
  func.func @transform_6(%arg0: i32) -> (i32, i32, i32) {
    %c0_i32 = arith.constant 0 : i32
    %c0_i32_0 = arith.constant 0 : i32
    %c0_i32_1 = arith.constant 0 : i32
    %c0_i32_2 = arith.constant 0 : i32
    return %c0_i32, %c0_i32_0, %c0_i32_1 : i32, i32, i32
  }
  func.func @transform_7(%arg0: i32) -> (i32, i32, i32) {
    %c0_i32 = arith.constant 0 : i32
    %c0_i32_0 = arith.constant 0 : i32
    %c0_i32_1 = arith.constant 0 : i32
    %c0_i32_2 = arith.constant 0 : i32
    return %c0_i32, %c0_i32_0, %c0_i32_1 : i32, i32, i32
  }
  func.func @transform_8(%arg0: i32) -> (i32, i32) {
    %c0_i32 = arith.constant 0 : i32
    %c0_i32_0 = arith.constant 0 : i32
    %c0_i32_1 = arith.constant 0 : i32
    return %c0_i32, %c0_i32_0 : i32, i32
  }
  func.func @transform_9(%arg0: i32) -> (i32, i32) {
    %c0_i32 = arith.constant 0 : i32
    %c0_i32_0 = arith.constant 0 : i32
    %c0_i32_1 = arith.constant 0 : i32
    return %c0_i32, %c0_i32_0 : i32, i32
  }
  func.func @transform_10(%arg0: i32) -> (i32, i32) {
    %c0_i32 = arith.constant 0 : i32
    %c0_i32_0 = arith.constant 0 : i32
    %c0_i32_1 = arith.constant 0 : i32
    return %c0_i32, %c0_i32_0 : i32, i32
  }
  func.func @transform_11(%arg0: i32) -> (i32, i32, i32) {
    %c0_i32 = arith.constant 0 : i32
    %c0_i32_0 = arith.constant 0 : i32
    %c0_i32_1 = arith.constant 0 : i32
    return %arg0, %c0_i32, %c0_i32_0 : i32, i32, i32
  }
}

</mosaic_0001>

<bundles_post_ra>
// kernel: _recon_forward.1
= control target key start
LH: loop header
LB: loop body
LE: loop exit
PB: predicated region body
PF: predicated region fallthrough
CT: control target
= control target key end

     0   :  { %s7251_s17 = smov 0   ;;  %s8581_s0 = inlined_call_operand.vmem [shape: bf16[2,256,128], index: 0, kind: input, shape index: {}]   ;;  %s8582_s1 = inlined_call_operand.vmem [shape: bf16[128,128], index: 1, kind: input, shape index: {}]   ;;  %s8583_s2 = inlined_call_operand.vmem [shape: f32[1,128], index: 2, kind: input, shape index: {}]   ;;  %s8584_s3 = inlined_call_operand.vmem [shape: bf16[9,64,256], index: 3, kind: input, shape index: {}]   ;;  %s8585_s4 = inlined_call_operand.vmem [shape: bf16[9,128,128], index: 4, kind: input, shape index: {}]   ;;  %s8586_s5 = inlined_call_operand.vmem [shape: f32[1,128], index: 5, kind: input, shape index: {}]   ;;  %s8587_s6 = inlined_call_operand.vmem [shape: bf16[9,16,64], index: 6, kind: input, shape index: {}]   ;;  %s8588_s7 = inlined_call_operand.vmem [shape: bf16[9,128,128], index: 7, kind: input, shape index: {}]   ;;  %s8589_s8 = inlined_call_operand.vmem [shape: f32[1,128], index: 8, kind: input, shape index: {}]   ;;  %s8590_s9 = inlined_call_operand.vmem [shape: bf16[128,384], index: 9, kind: input, shape index: {}]   ;;  %s8591_s10 = inlined_call_operand.vmem [shape: f32[1,384], index: 10, kind: input, shape index: {}]   ;;  %s8592_s11 = inlined_call_operand.vmem [shape: f32[2,1,384], index: 11, kind: output, shape index: {}]  }
   0x1 LB: > { %s4955_s18 = sadd.s32 4294967295, %s7185_s17   ;;  %p4959_p0 = scmp.ge.s32.totalorder %s7185_s17, 1  ;;  %s7185_s17 = sphi %s7251_s17, %s21_s17  }
   0x2   : > { %p337_p1 = scmp.lt.s32.totalorder %s7185_s17, 3 }
   0x4   : > { %p338_p2 = pnand %p4959_p0, %p337_p1 }
   0x5   : > { %v6862_v0 = vld [vmem:[%s8582_s1] sm:$0xff] (!%p338_p2)   ;;  %p376_p3 = scmp.lt.s32.totalorder (!%p338_p2), %s4955_s18, 1  ;;  %v6863_v1 = vld [vmem:[%s8582_s1 + $0x8] sm:$0xff] (!%p338_p2)   ;;  %v6864_v2 = vld [vmem:[%s8582_s1 + $0x10] sm:$0xff] (!%p338_p2)   ;;  %vm7188_vm0 = vmmov (!%p338_p2), 0   ;;  %vm3154_vm1 = vcmask (!%p338_p2), 523264  }
   0x6   : > { %341 = sbr.rel (%p338_p2) target bundleno = 2674 (0xa72), region = 64  ;;  %6213 = vmatprep.subr.bf16.mxu0 (!%p338_p2), %v6862_v0  ;;  %v6865_v3 = vld [vmem:[%s8582_s1 + $0x18] sm:$0xff] (!%p338_p2)   ;;  %v6866_v5 = vld [vmem:[%s8582_s1 + $0x20] sm:$0xff] (!%p338_p2)   ;;  %v6867_v6 = vld [vmem:[%s8582_s1 + $0x28] sm:$0xff] (!%p338_p2)  }
   0x7   : > { %6214 = vmatpush3.bf16.msra.mxu0 (!%p338_p2), %v6862_v0  ;;  %v6868_v7 = vld [vmem:[%s8582_s1 + $0x30] sm:$0xff] (!%p338_p2)   ;;  %v6869_v8 = vld [vmem:[%s8582_s1 + $0x38] sm:$0xff] (!%p338_p2)   ;;  %v6888_v24 = vld [vmem:[%s8584_s3 + $0x4] ss:$8 sps:$4 sm:$0xff] (!%p338_p2)  }
   0x8   : > { %6215 = vmatprep.subr.bf16.mxu0 (!%p338_p2), %v6863_v1  ;;  %906 = vmatprep.mubr.bf16.mxu1 (!%p338_p2), %v6888_v24  ;;  %v7313_v25 = vld [vmem:[%s8583_s2] ss:$0 sm:$0xff] (!%p338_p2) }
   0xb   : > { %6216 = vmatpush3.bf16.msra.mxu0 (!%p338_p2), %v6863_v1 }
   0xc   : > { %6217 = vmatprep.subr.bf16.mxu0 (!%p338_p2), %v6864_v2 }
   0xd   : > { %s8594_s18 = smov (!%p376_p3, %s4955_s18), 1 }
   0xe   : > { %s5585_s25 = sshll.u32 %s8594_s18, 7  ;;  %s6849_s16 = smul.u32 3, %s8594_s18 }
   0xf   : > { %s7274_s28 = scalar_lea.vmem %s8581_s0, %s5585_s25  ;;  %6218 = vmatpush3.bf16.msra.mxu0 %v6864_v2 }
  0x10   : > { %v6870_v4 = vld [vmem:[%s7274_s28] sm:$0xff]   ;;  %6219 = vmatprep.subr.bf16.mxu0 %v6865_v3  ;;  %v6871_v9 = vld [vmem:[%s7274_s28 + $0x8] sm:$0xff]   ;;  %v6872_v10 = vld [vmem:[%s7274_s28 + $0x10] sm:$0xff]   ;;  %s384_s21 = scalar_lea.vmem %s8592_s11, %s6849_s16 }
  0x11   : > { %6229 = vmatprep.mubr.bf16.mxu0 %v6870_v4  ;;  %v6873_v11 = vld [vmem:[%s7274_s28 + $0x18] sm:$0xff]   ;;  %v6874_v12 = vld [vmem:[%s7274_s28 + $0x20] sm:$0xff]   ;;  %v6875_v13 = vld [vmem:[%s7274_s28 + $0x28] sm:$0xff]  }
  0x12   : > { %v6876_v14 = vld [vmem:[%s7274_s28 + $0x30] sm:$0xff]   ;;  %v6877_v15 = vld [vmem:[%s7274_s28 + $0x38] sm:$0xff]   ;;  %v6878_v16 = vld [vmem:[%s7274_s28 + $0x40] sm:$0xff]  }
  0x13   : > { %6220 = vmatpush3.bf16.msra.mxu0 %v6865_v3  ;;  %v6879_v17 = vld [vmem:[%s7274_s28 + $0x48] sm:$0xff]   ;;  %v6880_v18 = vld [vmem:[%s7274_s28 + $0x50] sm:$0xff]   ;;  %v6881_v19 = vld [vmem:[%s7274_s28 + $0x58] sm:$0xff]  }
  0x14   : > { %6221 = vmatprep.subr.bf16.mxu0 %v6866_v5  ;;  %v6882_v20 = vld [vmem:[%s7274_s28 + $0x60] sm:$0xff]   ;;  %v6883_v21 = vld [vmem:[%s7274_s28 + $0x68] sm:$0xff]   ;;  %v6884_v22 = vld [vmem:[%s7274_s28 + $0x70] sm:$0xff]  }
  0x15   : > { %v6885_v23 = vld [vmem:[%s7274_s28 + $0x78] sm:$0xff]  }
  0x17   : > { %6222 = vmatpush3.bf16.msra.mxu0 %v6866_v5 }
  0x18   : > { %6223 = vmatprep.subr.bf16.mxu0 %v6867_v6 }
  0x1b   : > { %6224 = vmatpush3.bf16.msra.mxu0 %v6867_v6 }
  0x1c   : > { %6225 = vmatprep.subr.bf16.mxu0 %v6868_v7 }
  0x1f   : > { %6226 = vmatpush3.bf16.msra.mxu0 %v6868_v7 }
  0x20   : > { %6227 = vmatprep.subr.bf16.mxu0 %v6869_v8 }
  0x23   : > { %6228 = vmatpush3.bf16.msra.mxu0 %v6869_v8 }
  0x26   : > { %6230 = vmatmul.mubr.bf16.vlgmr.msra.gmra.mrb[0].mxu0 %v6871_v9 }
  0x27   : > { %6233 = vmatprep.mubr.bf16.mxu0 %v6872_v10 }
  0x2e   : > { %6234 = vmatmul.mubr.bf16.gmra.mrb[4].mxu0 %v6873_v11 }
  0x2f   : > { %6237 = vmatprep.mubr.bf16.mxu0 %v6874_v12 }
  0x36   : > { %6238 = vmatmul.mubr.bf16.gmra.mrb[8].mxu0 %v6875_v13 }
  0x37   : > { %6241 = vmatprep.mubr.bf16.mxu0 %v6876_v14 }
  0x3e   : > { %6242 = vmatmul.mubr.bf16.gmra.mrb[12].mxu0 %v6877_v15 }
  0x3f   : > { %6245 = vmatprep.mubr.bf16.mxu0 %v6878_v16 }
  0x46   : > { %6246 = vmatmul.mubr.bf16.gmra.mrb[16].mxu0 %v6879_v17 }
  0x47   : > { %6249 = vmatprep.mubr.bf16.mxu0 %v6880_v18 }
  0x4e   : > { %6250 = vmatmul.mubr.bf16.gmra.mrb[20].mxu0 %v6881_v19 }
  0x4f   : > { %6253 = vmatprep.mubr.bf16.mxu0 %v6882_v20 }
  0x56   : > { %6254 = vmatmul.mubr.bf16.gmra.mrb[24].mxu0 %v6883_v21 }
  0x57   : > { %6257 = vmatprep.mubr.bf16.mxu0 %v6884_v22 }
  0x5e   : > { %6258 = vmatmul.mubr.bf16.gmra.mrb[28].mxu0 %v6885_v23 }
  0xf9   : > { %v6231_v26 = vpop.f32.mrb[0].mxu0 }
  0xfa   : > { %v628_v27 = vadd.f32 %v6231_v26, %v7313_v25  ;;  %v619_v28 = vpop.f32.mrb[1].mxu0 }
  0xfb   : > { %v620_v29 = vadd.f32 %v7313_v25, %v619_v28  ;;  %v6232_v30 = vpop.f32.mrb[2].mxu0 }
  0xfc   : > { %v631_v31 = vadd.f32 %v6232_v30, %v7313_v25  ;;  %v622_v32 = vpop.f32.mrb[3].mxu0  ;;  %v748_v34 = vmax.f32 %v628_v27, 0.0 }
  0xfd   : > { %v623_v33 = vadd.f32 %v7313_v25, %v622_v32  ;;  %v746_v36 = vmax.f32 %v620_v29, 0.0 }
  0xfe   : > { %v749_v35 = vmax.f32 %v631_v31, 0.0 }
  0xff   : > { %v747_v37 = vmax.f32 %v623_v33, 0.0 }
 0x100   : > { %v7319_v38 = vpack.c.bf16 %v749_v35, %v748_v34 }
 0x101   : > { %v7321_v39 = vpack.c.bf16 %v747_v37, %v746_v36  ;;  %v6235_v40 = vpop.f32.mrb[4].mxu0 }
 0x102   : > { %v644_v41 = vadd.f32 %v6235_v40, %v7313_v25  ;;  %v635_v42 = vpop.f32.mrb[5].mxu0 }
 0x103   : > { %v636_v43 = vadd.f32 %v7313_v25, %v635_v42  ;;  %v6236_v44 = vpop.f32.mrb[6].mxu0 }
 0x104   : > { %v647_v45 = vadd.f32 %v6236_v44, %v7313_v25  ;;  %v638_v46 = vpop.f32.mrb[7].mxu0  ;;  %v752_v48 = vmax.f32 %v644_v41, 0.0 }
 0x105   : > { %v639_v47 = vadd.f32 %v7313_v25, %v638_v46  ;;  %v750_v50 = vmax.f32 %v636_v43, 0.0 }
 0x106   : > { %v753_v49 = vmax.f32 %v647_v45, 0.0 }
 0x107   : > { %v751_v51 = vmax.f32 %v639_v47, 0.0 }
 0x108   : > { %v7327_v52 = vpack.c.bf16 %v753_v49, %v752_v48 }
 0x109   : > { %v7329_v53 = vpack.c.bf16 %v751_v51, %v750_v50  ;;  %v6239_v54 = vpop.f32.mrb[8].mxu0 }
 0x10a   : > { %v660_v55 = vadd.f32 %v6239_v54, %v7313_v25  ;;  %v651_v56 = vpop.f32.mrb[9].mxu0 }
 0x10b   : > { %v652_v57 = vadd.f32 %v7313_v25, %v651_v56  ;;  %v6240_v58 = vpop.f32.mrb[10].mxu0 }
 0x10c   : > { %v663_v59 = vadd.f32 %v6240_v58, %v7313_v25  ;;  %v654_v60 = vpop.f32.mrb[11].mxu0  ;;  %v756_v62 = vmax.f32 %v660_v55, 0.0 }
 0x10d   : > { %v655_v61 = vadd.f32 %v7313_v25, %v654_v60  ;;  %v754_v0 = vmax.f32 %v652_v57, 0.0 }
 0x10e   : > { %v757_v63 = vmax.f32 %v663_v59, 0.0 }
 0x10f   : > { %v755_v1 = vmax.f32 %v655_v61, 0.0 }
 0x110   : > { %v7335_v2 = vpack.c.bf16 %v757_v63, %v756_v62 }
 0x111   : > { %v7337_v3 = vpack.c.bf16 %v755_v1, %v754_v0  ;;  %v6243_v4 = vpop.f32.mrb[12].mxu0 }
 0x112   : > { %v676_v5 = vadd.f32 %v6243_v4, %v7313_v25  ;;  %v667_v6 = vpop.f32.mrb[13].mxu0 }
 0x113   : > { %v668_v7 = vadd.f32 %v7313_v25, %v667_v6  ;;  %v6244_v8 = vpop.f32.mrb[14].mxu0 }
 0x114   : > { %v679_v9 = vadd.f32 %v6244_v8, %v7313_v25  ;;  %v670_v10 = vpop.f32.mrb[15].mxu0  ;;  %v760_v12 = vmax.f32 %v676_v5, 0.0 }
 0x115   : > { %v671_v11 = vadd.f32 %v7313_v25, %v670_v10  ;;  %v758_v14 = vmax.f32 %v668_v7, 0.0 }
 0x116   : > { %v761_v13 = vmax.f32 %v679_v9, 0.0 }
 0x117   : > { %v759_v15 = vmax.f32 %v671_v11, 0.0 }
 0x118   : > { %v7343_v16 = vpack.c.bf16 %v761_v13, %v760_v12 }
 0x119   : > { %v7345_v17 = vpack.c.bf16 %v759_v15, %v758_v14  ;;  %v6247_v18 = vpop.f32.mrb[16].mxu0 }
 0x11a   : > { %v692_v19 = vadd.f32 %v6247_v18, %v7313_v25  ;;  %v683_v20 = vpop.f32.mrb[17].mxu0 }
 0x11b   : > { %v684_v21 = vadd.f32 %v7313_v25, %v683_v20  ;;  %v6248_v22 = vpop.f32.mrb[18].mxu0  ;;  %v6891_v20 = vld [vmem:[%s8584_s3 + $0x10] ss:$8 sps:$4 sm:$0xff]  }
 0x11c   : > { %v695_v23 = vadd.f32 %v6248_v22, %v7313_v25  ;;  %v686_v24 = vpop.f32.mrb[19].mxu0  ;;  %v764_v27 = vmax.f32 %v692_v19, 0.0  ;;  %v6889_v19 = vld [vmem:[%s8584_s3 + $0x14] ss:$8 sps:$4 sm:$0xff]   ;;  %v6894_v22 = vld [vmem:[%s8584_s3 + $0x20] ss:$8 sps:$4 sm:$0xff]  }
 0x11d   : > { %v687_v26 = vadd.f32 %v7313_v25, %v686_v24  ;;  %v762_v29 = vmax.f32 %v684_v21, 0.0  ;;  %v6892_v21 = vld [vmem:[%s8584_s3 + $0x24] ss:$8 sps:$4 sm:$0xff]   ;;  %v6897_v24 = vld [vmem:[%s8584_s3 + $0x30] ss:$8 sps:$4 sm:$0xff]  }
 0x11e   : > { %v765_v28 = vmax.f32 %v695_v23, 0.0  ;;  %v6895_v23 = vld [vmem:[%s8584_s3 + $0x34] ss:$8 sps:$4 sm:$0xff]  }
 0x11f   : > { %v763_v30 = vmax.f32 %v687_v26, 0.0  ;;  %v6900_v26 = vld [vmem:[%s8584_s3 + $0x44] ss:$8 sps:$4 sm:$0xff]  }
 0x120   : > { %v7351_v31 = vpack.c.bf16 %v765_v28, %v764_v27  ;;  %v6898_v27 = vld [vmem:[%s8584_s3 + $0x40] ss:$8 sps:$4 sm:$0xff]   ;;  %v6901_v28 = vld [vmem:[%s8584_s3 + $0x54] ss:$8 sps:$4 sm:$0xff]  }
 0x121   : > { %v7353_v32 = vpack.c.bf16 %v763_v30, %v762_v29  ;;  %v6251_v33 = vpop.f32.mrb[20].mxu0  ;;  %v6903_v29 = vld [vmem:[%s8584_s3 + $0x50] ss:$8 sps:$4 sm:$0xff]   ;;  %v6904_v30 = vld [vmem:[%s8584_s3 + $0x64] ss:$8 sps:$4 sm:$0xff]  }
 0x122   : > { %v708_v34 = vadd.f32 %v6251_v33, %v7313_v25  ;;  %v699_v35 = vpop.f32.mrb[21].mxu0  ;;  %v6906_v33 = vld [vmem:[%s8584_s3 + $0x60] ss:$8 sps:$4 sm:$0xff]  }
 0x123   : > { %v700_v36 = vadd.f32 %v7313_v25, %v699_v35  ;;  %v6252_v37 = vpop.f32.mrb[22].mxu0  ;;  %5610 = vmatprep.subr.bf16.mxu1 %v7353_v32  ;;  %v6909_v35 = vld [vmem:[%s8584_s3 + $0x70] ss:$8 sps:$4 sm:$0xff]  }
 0x124   : > { %v711_v40 = vadd.f32 %v6252_v37, %v7313_v25  ;;  %v702_v41 = vpop.f32.mrb[23].mxu0  ;;  %5611 = vmatpush3.bf16.msra.mxu1 %v7321_v39  ;;  %v768_v43 = vmax.f32 %v708_v34, 0.0  ;;  %v6907_v34 = vld [vmem:[%s8584_s3 + $0x74] ss:$8 sps:$4 sm:$0xff]   ;;  %v6910_v37 = vld [vmem:[%s8584_s3 + $0x80] ss:$8 sps:$4 sm:$0xff]  }
 0x125   : > { %v703_v42 = vadd.f32 %v7313_v25, %v702_v41  ;;  %5612 = vmatprep.subr.bf16.mxu1 %v7351_v31  ;;  %v766_v45 = vmax.f32 %v700_v36, 0.0  ;;  %v6912_v36 = vld [vmem:[%s8584_s3 + $0x84] ss:$8 sps:$4 sm:$0xff]   ;;  %v6915_v41 = vld [vmem:[%s8584_s3 + $0x90] ss:$8 sps:$4 sm:$0xff]  }
 0x126   : > { %v769_v44 = vmax.f32 %v711_v40, 0.0  ;;  %v6913_v40 = vld [vmem:[%s8584_s3 + $0x94] ss:$8 sps:$4 sm:$0xff]  }
 0x127   : > { %v767_v46 = vmax.f32 %v703_v42, 0.0  ;;  %v6916_v42 = vld [vmem:[%s8584_s3 + $0xa4] ss:$8 sps:$4 sm:$0xff]  }
 0x128   : > { %v7362_v47 = vpack.c.bf16 %v769_v44, %v768_v43  ;;  %5613 = vmatpush3.bf16.msra.mxu1 %v7319_v38  ;;  %v6964_v43 = vld [vmem:[%s8585_s4 + $0x40] sm:$0xff]  }
 0x129   : > { %v7365_v48 = vpack.c.bf16 %v767_v46, %v766_v45  ;;  %v6255_v49 = vpop.f32.mrb[24].mxu0  ;;  %v6918_v44 = vld [vmem:[%s8584_s3 + $0xa0] ss:$8 sps:$4 sm:$0xff]   ;;  %6261 = vmatprep.subr.bf16.mxu0 %v6964_v43  ;;  %v6919_v45 = vld [vmem:[%s8584_s3 + $0xb4] ss:$8 sps:$4 sm:$0xff]  }
 0x12a   : > { %v724_v50 = vadd.f32 %v6255_v49, %v7313_v25  ;;  %v715_v51 = vpop.f32.mrb[25].mxu0  ;;  %6262 = vmatpush3.bf16.msra.mxu0 %v6964_v43  ;;  %v6921_v46 = vld [vmem:[%s8584_s3 + $0xb0] ss:$8 sps:$4 sm:$0xff]   ;;  %v6924_v49 = vld [vmem:[%s8584_s3 + $0xc4] ss:$8 sps:$4 sm:$0xff]  }
 0x12b   : > { %v716_v54 = vadd.f32 %v7313_v25, %v715_v51  ;;  %v6256_v55 = vpop.f32.mrb[26].mxu0  ;;  %5614 = vmatprep.subr.bf16.mxu1 %v7365_v48  ;;  %v6922_v51 = vld [vmem:[%s8584_s3 + $0xc0] ss:$8 sps:$4 sm:$0xff]   ;;  %v6975_v43 = vld [vmem:[%s8584_s3 + $0x1c4] ss:$8 sps:$4 sm:$0xff]  }
 0x12c   : > { %v727_v56 = vadd.f32 %v6256_v55, %v7313_v25  ;;  %v718_v57 = vpop.f32.mrb[27].mxu0  ;;  %5615 = vmatpush3.bf16.msra.mxu1 %v7329_v53  ;;  %v772_v59 = vmax.f32 %v724_v50, 0.0  ;;  %v6968_v50 = vld [vmem:[%s8585_s4 + $0x48] sm:$0xff]   ;;  %v6972_v55 = vld [vmem:[%s8585_s4 + $0x50] sm:$0xff]  }
 0x12d   : > { %v719_v58 = vadd.f32 %v7313_v25, %v718_v57  ;;  %5616 = vmatprep.subr.bf16.mxu1 %v7362_v47  ;;  %v770_v61 = vmax.f32 %v716_v54, 0.0  ;;  %6263 = vmatprep.subr.bf16.mxu0 %v6968_v50  ;;  %v6925_v54 = vld [vmem:[%s8584_s3 + $0xd4] ss:$8 sps:$4 sm:$0xff]   ;;  %v6928_v57 = vld [vmem:[%s8584_s3 + $0xe4] ss:$8 sps:$4 sm:$0xff]  }
 0x12e   : > { %v773_v60 = vmax.f32 %v727_v56, 0.0  ;;  %6264 = vmatpush3.bf16.msra.mxu0 %v6968_v50  ;;  %v6927_v56 = vld [vmem:[%s8584_s3 + $0xd0] ss:$8 sps:$4 sm:$0xff]  }
 0x12f   : > { %v771_v62 = vmax.f32 %v719_v58, 0.0  ;;  %6265 = vmatprep.subr.bf16.mxu0 %v6972_v55  ;;  %v6976_v58 = vld [vmem:[%s8585_s4 + $0x58] sm:$0xff]  }
 0x130   : > { %v7374_v63 = vpack.c.bf16 %v773_v60, %v772_v59  ;;  %5617 = vmatpush3.bf16.msra.mxu1 %v7327_v52  ;;  %v6930_v59 = vld [vmem:[%s8584_s3 + $0xe0] ss:$8 sps:$4 sm:$0xff]   ;;  %v6931_v60 = vld [vmem:[%s8584_s3 + $0xf4] ss:$8 sps:$4 sm:$0xff]  }
 0x131   : > { %v7377_v0 = vpack.c.bf16 %v771_v62, %v770_v61  ;;  %v6259_v1 = vpop.f32.mrb[28].mxu0  ;;  %v6980_v61 = vld [vmem:[%s8585_s4 + $0x60] sm:$0xff]   ;;  %v6933_v62 = vld [vmem:[%s8584_s3 + $0xf0] ss:$8 sps:$4 sm:$0xff]  }
 0x132   : > { %v740_v4 = vadd.f32 %v6259_v1, %v7313_v25  ;;  %v731_v5 = vpop.f32.mrb[29].mxu0  ;;  %6266 = vmatpush3.bf16.msra.mxu0 %v6972_v55  ;;  %v6984_v1 = vld [vmem:[%s8585_s4 + $0x68] sm:$0xff]  }
 0x133   : > { %v732_v6 = vadd.f32 %v7313_v25, %v731_v5  ;;  %v6260_v7 = vpop.f32.mrb[30].mxu0  ;;  %5618 = vmatprep.subr.bf16.mxu1 %v7377_v0  ;;  %6267 = vmatprep.subr.bf16.mxu0 %v6976_v58  ;;  %v6988_v5 = vld [vmem:[%s8585_s4 + $0x70] sm:$0xff]  }
 0x134   : > { %v743_v8 = vadd.f32 %v6260_v7, %v7313_v25  ;;  %v734_v9 = vpop.f32.mrb[31].mxu0  ;;  %5619 = vmatpush3.bf16.msra.mxu1 %v7337_v3  ;;  %v776_v11 = vmax.f32 %v740_v4, 0.0  ;;  %v6936_v4 = vld [vmem:[%s8584_s3 + $0x104] ss:$8 sps:$4 sm:$0xff]   ;;  %v6989_v7 = vld [vmem:[%s8585_s4 + $0x78] sm:$0xff]  }
 0x135   : > { %v735_v10 = vadd.f32 %v7313_v25, %v734_v9  ;;  %5620 = vmatprep.subr.bf16.mxu1 %v7374_v63  ;;  %v774_v13 = vmax.f32 %v732_v6, 0.0  ;;  %v6886_v25 = vld [vmem:[%s8584_s3] ss:$8 sps:$4 sm:$0xff]  }
 0x136   : > { %v777_v12 = vmax.f32 %v743_v8, 0.0  ;;  %6268 = vmatpush3.bf16.msra.mxu0 %v6976_v58  ;;  %v6934_v6 = vld [vmem:[%s8584_s3 + $0x100] ss:$8 sps:$4 sm:$0xff]   ;;  %v6937_v8 = vld [vmem:[%s8584_s3 + $0x114] ss:$8 sps:$4 sm:$0xff]  }
 0x137   : > { %v775_v14 = vmax.f32 %v735_v10, 0.0  ;;  %6269 = vmatprep.subr.bf16.mxu0 %v6980_v61  ;;  %v7589_v9 = vld [vmem:[%s8585_s4] sm:$0xff]   ;;  %v6939_v10 = vld [vmem:[%s8584_s3 + $0x110] ss:$8 sps:$4 sm:$0xff]  }
 0x138   : > { %v7386_v15 = vpack.c.bf16 %v777_v12, %v776_v11  ;;  %5621 = vmatpush3.bf16.msra.mxu1 %v7335_v2  ;;  %v6940_v11 = vld [vmem:[%s8584_s3 + $0x124] ss:$8 sps:$4 sm:$0xff]   ;;  %v6942_v12 = vld [vmem:[%s8584_s3 + $0x120] ss:$8 sps:$4 sm:$0xff]  }
 0x139   : > { %v7389_v18 = vpack.c.bf16 %v775_v14, %v774_v13  ;;  %v6943_v13 = vld [vmem:[%s8584_s3 + $0x134] ss:$8 sps:$4 sm:$0xff]   ;;  %v6945_v14 = vld [vmem:[%s8584_s3 + $0x130] ss:$8 sps:$4 sm:$0xff]  }
 0x13a   : > { %6270 = vmatpush3.bf16.msra.mxu0 %v6980_v61 }
 0x13b   : > { %5622 = vmatprep.subr.bf16.mxu1 %v7389_v18  ;;  %6271 = vmatprep.subr.bf16.mxu0 %v6984_v1 }
 0x13c   : > { %5623 = vmatpush3.bf16.msra.mxu1 %v7345_v17 }
 0x13d   : > { %5624 = vmatprep.subr.bf16.mxu1 %v7386_v15 }
 0x13e   : > { %6272 = vmatpush3.bf16.msra.mxu0 %v6984_v1 }
 0x13f   : > { %6273 = vmatprep.subr.bf16.mxu0 %v6988_v5 }
 0x140   : > { %5625 = vmatpush3.bf16.msra.mxu1 %v7343_v16 }
 0x141   : > { %5650 = vmatprep.subr.bf16.mxu1 %v7353_v32 }
 0x142   : > { %6274 = vmatpush3.bf16.msra.mxu0 %v6988_v5 }
 0x143   : > { %907 = vmatmul.mubr.bf16.vlgmr.msra.gmra.mrb[0].mxu1 %v6886_v25  ;;  %6275 = vmatprep.subr.bf16.mxu0 %v6989_v7  ;;  %v6948_v25 = vld [vmem:[%s8584_s3 + $0x144] ss:$8 sps:$4 sm:$0xff]  }
 0x144   : > { %5651 = vmatpush3.bf16.msra.mxu1 %v7321_v39  ;;  %914 = vmatprep.mubr.bf16.mxu1 %v6889_v19  ;;  %v6946_v19 = vld [vmem:[%s8584_s3 + $0x140] ss:$8 sps:$4 sm:$0xff]  }
 0x145   : > { %5652 = vmatprep.subr.bf16.mxu1 %v7351_v31 }
 0x146   : > { %6276 = vmatpush3.bf16.msra.mxu0 %v6989_v7  ;;  %v6983_v7 = vld [vmem:[%s8584_s3 + $0x1e0] ss:$8 sps:$4 sm:$0xff]  }
 0x147   : > { %6285 = vmatprep.subr.bf16.mxu0 %v7589_v9 }
 0x148   : > { %5653 = vmatpush3.bf16.msra.mxu1 %v7319_v38 }
 0x149   : > { %5654 = vmatprep.subr.bf16.mxu1 %v7365_v48 }
 0x14b   : > { %915 = vmatmul.mubr.bf16.gmra.mrb[4].mxu1 %v6891_v20  ;;  %v6949_v20 = vld [vmem:[%s8584_s3 + $0x154] ss:$8 sps:$4 sm:$0xff]  }
 0x14c   : > { %5655 = vmatpush3.bf16.msra.mxu1 %v7329_v53  ;;  %922 = vmatprep.mubr.bf16.mxu1 %v6892_v21  ;;  %v6951_v21 = vld [vmem:[%s8584_s3 + $0x150] ss:$8 sps:$4 sm:$0xff]  }
 0x14d   : > { %5656 = vmatprep.subr.bf16.mxu1 %v7362_v47 }
 0x150   : > { %5657 = vmatpush3.bf16.msra.mxu1 %v7327_v52 }
 0x151   : > { %5658 = vmatprep.subr.bf16.mxu1 %v7377_v0 }
 0x153   : > { %923 = vmatmul.mubr.bf16.gmra.mrb[8].mxu1 %v6894_v22  ;;  %v6952_v22 = vld [vmem:[%s8584_s3 + $0x164] ss:$8 sps:$4 sm:$0xff]  }
 0x154   : > { %5659 = vmatpush3.bf16.msra.mxu1 %v7337_v3  ;;  %930 = vmatprep.mubr.bf16.mxu1 %v6895_v23  ;;  %v6954_v23 = vld [vmem:[%s8584_s3 + $0x160] ss:$8 sps:$4 sm:$0xff]  }
 0x155   : > { %5660 = vmatprep.subr.bf16.mxu1 %v7374_v63 }
 0x158   : > { %5661 = vmatpush3.bf16.msra.mxu1 %v7335_v2 }
 0x159   : > { %5662 = vmatprep.subr.bf16.mxu1 %v7389_v18 }
 0x15b   : > { %931 = vmatmul.mubr.bf16.gmra.mrb[12].mxu1 %v6897_v24  ;;  %v6955_v24 = vld [vmem:[%s8584_s3 + $0x174] ss:$8 sps:$4 sm:$0xff]  }
 0x15c   : > { %5663 = vmatpush3.bf16.msra.mxu1 %v7345_v17  ;;  %1040 = vmatprep.mubr.bf16.mxu1 %v6900_v26  ;;  %v6957_v26 = vld [vmem:[%s8584_s3 + $0x170] ss:$8 sps:$4 sm:$0xff]  }
 0x15d   : > { %5664 = vmatprep.subr.bf16.mxu1 %v7386_v15 }
 0x160   : > { %5665 = vmatpush3.bf16.msra.mxu1 %v7343_v16 }
 0x161   : > { %5714 = vmatprep.subr.bf16.mxu1 %v7353_v32 }
 0x163   : > { %1041 = vmatmul.mubr.bf16.vlgmr.msra.gmra.mrb[16].mxu1 %v6898_v27  ;;  %v6960_v27 = vld [vmem:[%s8584_s3 + $0x184] ss:$8 sps:$4 sm:$0xff]  }
 0x164   : > { %5715 = vmatpush3.bf16.msra.mxu1 %v7321_v39  ;;  %1048 = vmatprep.mubr.bf16.mxu1 %v6901_v28  ;;  %v6958_v28 = vld [vmem:[%s8584_s3 + $0x180] ss:$8 sps:$4 sm:$0xff]  }
 0x165   : > { %5716 = vmatprep.subr.bf16.mxu1 %v7351_v31 }
 0x168   : > { %5717 = vmatpush3.bf16.msra.mxu1 %v7319_v38 }
 0x169   : > { %5718 = vmatprep.subr.bf16.mxu1 %v7365_v48 }
 0x16b   : > { %1049 = vmatmul.mubr.bf16.gmra.mrb[20].mxu1 %v6903_v29  ;;  %v6961_v29 = vld [vmem:[%s8584_s3 + $0x194] ss:$8 sps:$4 sm:$0xff]  }
 0x16c   : > { %5719 = vmatpush3.bf16.msra.mxu1 %v7329_v53  ;;  %1056 = vmatprep.mubr.bf16.mxu1 %v6904_v30  ;;  %v6963_v30 = vld [vmem:[%s8584_s3 + $0x190] ss:$8 sps:$4 sm:$0xff]  }
 0x16d   : > { %5720 = vmatprep.subr.bf16.mxu1 %v7362_v47 }
 0x170   : > { %5721 = vmatpush3.bf16.msra.mxu1 %v7327_v52 }
 0x171   : > { %5722 = vmatprep.subr.bf16.mxu1 %v7377_v0 }
 0x173   : > { %1057 = vmatmul.mubr.bf16.gmra.mrb[24].mxu1 %v6906_v33  ;;  %v6965_v33 = vld [vmem:[%s8584_s3 + $0x1a4] ss:$8 sps:$4 sm:$0xff]  }
 0x174   : > { %5723 = vmatpush3.bf16.msra.mxu1 %v7337_v3  ;;  %1064 = vmatprep.mubr.bf16.mxu1 %v6907_v34  ;;  %v6967_v34 = vld [vmem:[%s8584_s3 + $0x1a0] ss:$8 sps:$4 sm:$0xff]  }
 0x175   : > { %5724 = vmatprep.subr.bf16.mxu1 %v7374_v63 }
 0x178   : > { %5725 = vmatpush3.bf16.msra.mxu1 %v7335_v2 }
 0x179   : > { %5726 = vmatprep.subr.bf16.mxu1 %v7389_v18 }
 0x17b   : > { %1065 = vmatmul.mubr.bf16.gmra.mrb[28].mxu1 %v6909_v35  ;;  %v6969_v35 = vld [vmem:[%s8584_s3 + $0x1b4] ss:$8 sps:$4 sm:$0xff]  }
 0x17c   : > { %5727 = vmatpush3.bf16.msra.mxu1 %v7345_v17  ;;  %1401 = vmatprep.mubr.bf16.mxu1 %v6912_v36 }
 0x17d   : > { %5728 = vmatprep.subr.bf16.mxu1 %v7386_v15 }
 0x180   : > { %5729 = vmatpush3.bf16.msra.mxu1 %v7343_v16 }
 0x181   : > { %5766 = vmatprep.subr.bf16.mxu1 %v7353_v32 }
 0x183   : > { %1402 = vmatmul.mubr.bf16.vlgmr.msra.gmra.mrb[32].mxu1 %v6910_v37 }
 0x184   : > { %5767 = vmatpush3.bf16.msra.mxu1 %v7321_v39  ;;  %1409 = vmatprep.mubr.bf16.mxu1 %v6913_v40  ;;  %v6971_v40 = vld [vmem:[%s8584_s3 + $0x1b0] ss:$8 sps:$4 sm:$0xff]  }
 0x185   : > { %5768 = vmatprep.subr.bf16.mxu1 %v7351_v31 }
 0x188   : > { %5769 = vmatpush3.bf16.msra.mxu1 %v7319_v38 }
 0x189   : > { %5770 = vmatprep.subr.bf16.mxu1 %v7365_v48 }
 0x18b   : > { %1410 = vmatmul.mubr.bf16.gmra.mrb[36].mxu1 %v6915_v41 }
 0x18c   : > { %5771 = vmatpush3.bf16.msra.mxu1 %v7329_v53  ;;  %1417 = vmatprep.mubr.bf16.mxu1 %v6916_v42 }
 0x18d   : > { %5772 = vmatprep.subr.bf16.mxu1 %v7362_v47 }
 0x190   : > { %5773 = vmatpush3.bf16.msra.mxu1 %v7327_v52 }
 0x191   : > { %5774 = vmatprep.subr.bf16.mxu1 %v7377_v0 }
 0x193   : > { %1418 = vmatmul.mubr.bf16.gmra.mrb[40].mxu1 %v6918_v44 }
 0x194   : > { %5775 = vmatpush3.bf16.msra.mxu1 %v7337_v3  ;;  %1425 = vmatprep.mubr.bf16.mxu1 %v6919_v45 }
 0x195   : > { %5776 = vmatprep.subr.bf16.mxu1 %v7374_v63 }
 0x198   : > { %5777 = vmatpush3.bf16.msra.mxu1 %v7335_v2 }
 0x199   : > { %5778 = vmatprep.subr.bf16.mxu1 %v7389_v18 }
 0x19b   : > { %1426 = vmatmul.mubr.bf16.gmra.mrb[44].mxu1 %v6921_v46 }
 0x19c   : > { %5779 = vmatpush3.bf16.msra.mxu1 %v7345_v17  ;;  %1657 = vmatprep.mubr.bf16.mxu1 %v6924_v49 }
 0x19d   : > { %5780 = vmatprep.subr.bf16.mxu1 %v7386_v15 }
 0x1a0   : > { %5781 = vmatpush3.bf16.msra.mxu1 %v7343_v16 }
 0x1a1   : > { %5818 = vmatprep.subr.bf16.mxu1 %v7353_v32 }
 0x1a3   : > { %1658 = vmatmul.mubr.bf16.vlgmr.msra.gmra.mrb[48].mxu1 %v6922_v51  ;;  %v6973_v51 = vld [vmem:[%s8584_s3 + $0x1c0] ss:$8 sps:$4 sm:$0xff]  }
 0x1a4   : > { %5819 = vmatpush3.bf16.msra.mxu1 %v7321_v39  ;;  %1665 = vmatprep.mubr.bf16.mxu1 %v6925_v54 }
 0x1a5   : > { %5820 = vmatprep.subr.bf16.mxu1 %v7351_v31 }
 0x1a8   : > { %5821 = vmatpush3.bf16.msra.mxu1 %v7319_v38 }
 0x1a9   : > { %5822 = vmatprep.subr.bf16.mxu1 %v7365_v48 }
 0x1ab   : > { %1666 = vmatmul.mubr.bf16.gmra.mrb[52].mxu1 %v6927_v56  ;;  %v6977_v56 = vld [vmem:[%s8584_s3 + $0x1d4] ss:$8 sps:$4 sm:$0xff]  }
 0x1ac   : > { %5823 = vmatpush3.bf16.msra.mxu1 %v7329_v53  ;;  %1673 = vmatprep.mubr.bf16.mxu1 %v6928_v57 }
 0x1ad   : > { %5824 = vmatprep.subr.bf16.mxu1 %v7362_v47 }
 0x1b0   : > { %5825 = vmatpush3.bf16.msra.mxu1 %v7327_v52 }
 0x1b1   : > { %5826 = vmatprep.subr.bf16.mxu1 %v7377_v0 }
 0x1b3   : > { %1674 = vmatmul.mubr.bf16.gmra.mrb[56].mxu1 %v6930_v59 }
 0x1b4   : > { %5827 = vmatpush3.bf16.msra.mxu1 %v7337_v3  ;;  %1681 = vmatprep.mubr.bf16.mxu1 %v6931_v60 }
 0x1b5   : > { %5828 = vmatprep.subr.bf16.mxu1 %v7374_v63 }
 0x1b8   : > { %5829 = vmatpush3.bf16.msra.mxu1 %v7335_v2 }
 0x1b9   : > { %5830 = vmatprep.subr.bf16.mxu1 %v7389_v18 }
 0x1bb   : > { %1682 = vmatmul.mubr.bf16.gmra.mrb[60].mxu1 %v6933_v62  ;;  %v6979_v62 = vld [vmem:[%s8584_s3 + $0x1d0] ss:$8 sps:$4 sm:$0xff]  }
 0x1bc   : > { %5831 = vmatpush3.bf16.msra.mxu1 %v7345_v17  ;;  %1913 = vmatprep.mubr.bf16.mxu1 %v6936_v4  ;;  %v6981_v4 = vld [vmem:[%s8584_s3 + $0x1e4] ss:$8 sps:$4 sm:$0xff]  }
 0x1bd   : > { %5832 = vmatprep.subr.bf16.mxu1 %v7386_v15 }
 0x1c0   : > { %5833 = vmatpush3.bf16.msra.mxu1 %v7343_v16 }
 0x1c1   : > { %5870 = vmatprep.subr.bf16.mxu1 %v7353_v32 }
 0x1c3   : > { %1914 = vmatmul.mubr.bf16.vlgmr.msra.gmra.mrb[64].mxu1 %v6934_v6 }
 0x1c4   : > { %5871 = vmatpush3.bf16.msra.mxu1 %v7321_v39  ;;  %1921 = vmatprep.mubr.bf16.mxu1 %v6937_v8 }
 0x1c5   : > { %5872 = vmatprep.subr.bf16.mxu1 %v7351_v31 }
 0x1c8   : > { %5873 = vmatpush3.bf16.msra.mxu1 %v7319_v38 }
 0x1c9   : > { %5874 = vmatprep.subr.bf16.mxu1 %v7365_v48 }
 0x1cb   : > { %1922 = vmatmul.mubr.bf16.gmra.mrb[68].mxu1 %v6939_v10  ;;  %v6985_v10 = vld [vmem:[%s8584_s3 + $0x1f4] ss:$8 sps:$4 sm:$0xff]  }
 0x1cc   : > { %5875 = vmatpush3.bf16.msra.mxu1 %v7329_v53  ;;  %1929 = vmatprep.mubr.bf16.mxu1 %v6940_v11 }
 0x1cd   : > { %5876 = vmatprep.subr.bf16.mxu1 %v7362_v47 }
 0x1d0   : > { %5877 = vmatpush3.bf16.msra.mxu1 %v7327_v52 }
 0x1d1   : > { %5878 = vmatprep.subr.bf16.mxu1 %v7377_v0 }
 0x1d3   : > { %1930 = vmatmul.mubr.bf16.gmra.mrb[72].mxu1 %v6942_v12 }
 0x1d4   : > { %5879 = vmatpush3.bf16.msra.mxu1 %v7337_v3  ;;  %1937 = vmatprep.mubr.bf16.mxu1 %v6943_v13  ;;  %v6987_v13 = vld [vmem:[%s8584_s3 + $0x1f0] ss:$8 sps:$4 sm:$0xff]  }
 0x1d5   : > { %5880 = vmatprep.subr.bf16.mxu1 %v7374_v63 }
 0x1d8   : > { %5881 = vmatpush3.bf16.msra.mxu1 %v7335_v2 }
 0x1d9   : > { %5882 = vmatprep.subr.bf16.mxu1 %v7389_v18 }
 0x1db   : > { %1938 = vmatmul.mubr.bf16.gmra.mrb[76].mxu1 %v6945_v14 }
 0x1dc   : > { %5883 = vmatpush3.bf16.msra.mxu1 %v7345_v17  ;;  %2169 = vmatprep.mubr.bf16.mxu1 %v6948_v25 }
 0x1dd   : > { %5884 = vmatprep.subr.bf16.mxu1 %v7386_v15 }
 0x1e0   : > { %5885 = vmatpush3.bf16.msra.mxu1 %v7343_v16 }
 0x1e1   : > { %5922 = vmatprep.subr.bf16.mxu1 %v7353_v32 }
 0x1e3   : > { %2170 = vmatmul.mubr.bf16.vlgmr.msra.gmra.mrb[80].mxu1 %v6946_v19 }
 0x1e4   : > { %5923 = vmatpush3.bf16.msra.mxu1 %v7321_v39  ;;  %2177 = vmatprep.mubr.bf16.mxu1 %v6949_v20 }
 0x1e5   : > { %5924 = vmatprep.subr.bf16.mxu1 %v7351_v31 }
 0x1e8   : > { %5925 = vmatpush3.bf16.msra.mxu1 %v7319_v38 }
 0x1e9   : > { %5926 = vmatprep.subr.bf16.mxu1 %v7365_v48 }
 0x1eb   : > { %2178 = vmatmul.mubr.bf16.gmra.mrb[84].mxu1 %v6951_v21 }
 0x1ec   : > { %5927 = vmatpush3.bf16.msra.mxu1 %v7329_v53  ;;  %2185 = vmatprep.mubr.bf16.mxu1 %v6952_v22 }
 0x1ed   : > { %5928 = vmatprep.subr.bf16.mxu1 %v7362_v47 }
 0x1f0   : > { %5929 = vmatpush3.bf16.msra.mxu1 %v7327_v52 }
 0x1f1   : > { %5930 = vmatprep.subr.bf16.mxu1 %v7377_v0 }
 0x1f3   : > { %2186 = vmatmul.mubr.bf16.gmra.mrb[88].mxu1 %v6954_v23 }
 0x1f4   : > { %5931 = vmatpush3.bf16.msra.mxu1 %v7337_v3  ;;  %2193 = vmatprep.mubr.bf16.mxu1 %v6955_v24 }
 0x1f5   : > { %5932 = vmatprep.subr.bf16.mxu1 %v7374_v63 }
 0x1f8   : > { %5933 = vmatpush3.bf16.msra.mxu1 %v7335_v2 }
 0x1f9   : > { %5934 = vmatprep.subr.bf16.mxu1 %v7389_v18 }
 0x1fb   : > { %2194 = vmatmul.mubr.bf16.gmra.mrb[92].mxu1 %v6957_v26 }
 0x1fc   : > { %5935 = vmatpush3.bf16.msra.mxu1 %v7345_v17  ;;  %2425 = vmatprep.mubr.bf16.mxu1 %v6960_v27 }
 0x1fd   : > { %5936 = vmatprep.subr.bf16.mxu1 %v7386_v15 }
 0x200   : > { %5937 = vmatpush3.bf16.msra.mxu1 %v7343_v16 }
 0x201   : > { %5974 = vmatprep.subr.bf16.mxu1 %v7353_v32 }
 0x203   : > { %2426 = vmatmul.mubr.bf16.vlgmr.msra.gmra.mrb[96].mxu1 %v6958_v28 }
 0x204   : > { %5975 = vmatpush3.bf16.msra.mxu1 %v7321_v39  ;;  %2433 = vmatprep.mubr.bf16.mxu1 %v6961_v29 }
 0x205   : > { %5976 = vmatprep.subr.bf16.mxu1 %v7351_v31 }
 0x208   : > { %5977 = vmatpush3.bf16.msra.mxu1 %v7319_v38 }
 0x209   : > { %5978 = vmatprep.subr.bf16.mxu1 %v7365_v48 }
 0x20b   : > { %2434 = vmatmul.mubr.bf16.gmra.mrb[100].mxu1 %v6963_v30 }
 0x20c   : > { %5979 = vmatpush3.bf16.msra.mxu1 %v7329_v53  ;;  %2441 = vmatprep.mubr.bf16.mxu1 %v6965_v33  ;;  %v6998_v33 = vld [vmem:[%s8585_s4 + $0x10] sm:$0xff]  }
 0x20d   : > { %5980 = vmatprep.subr.bf16.mxu1 %v7362_v47 }
 0x210   : > { %5981 = vmatpush3.bf16.msra.mxu1 %v7327_v52 }
 0x211   : > { %5982 = vmatprep.subr.bf16.mxu1 %v7377_v0 }
 0x213   : > { %2442 = vmatmul.mubr.bf16.gmra.mrb[104].mxu1 %v6967_v34  ;;  %v7000_v34 = vld [vmem:[%s8584_s3 + $0x224] ss:$8 sps:$4 sm:$0xff]  }
 0x214   : > { %5983 = vmatpush3.bf16.msra.mxu1 %v7337_v3  ;;  %2449 = vmatprep.mubr.bf16.mxu1 %v6969_v35 }
 0x215   : > { %5984 = vmatprep.subr.bf16.mxu1 %v7374_v63 }
 0x216   : > { %v5626_v36 = vpop.f32.mrb[0].mxu1 }
 0x217   : > { %v5627_v37 = vpop.f32.mrb[1].mxu1 }
 0x218   : > { %v7697_v41 = vadd.f32 %v5627_v37, %v5626_v36  ;;  %v5629_v42 = vpop.f32.mrb[2].mxu1  ;;  %5985 = vmatpush3.bf16.msra.mxu1 %v7335_v2  ;;  %v6999_v37 = vld [vmem:[%s8585_s4 + $0x18] sm:$0xff]  }
 0x219   : > { %v5630_v44 = vpop.f32.mrb[3].mxu1  ;;  %5986 = vmatprep.subr.bf16.mxu1 %v7389_v18 }
 0x21a   : > { %v7704_v45 = vadd.f32 %v5630_v44, %v5629_v42 }
 0x21b   : > { %2450 = vmatmul.mubr.bf16.gmra.mrb[108].mxu1 %v6971_v40 }
 0x21c   : > { %v939_v46 = vpack.c.bf16 %v7704_v45, %v7697_v41  ;;  %5987 = vmatpush3.bf16.msra.mxu1 %v7345_v17  ;;  %2681 = vmatprep.mubr.bf16.mxu1 %v6975_v43  ;;  %v7002_v43 = vld [vmem:[%s8584_s3 + $0x220] ss:$8 sps:$4 sm:$0xff]   ;;  %v7009_v41 = vld [vmem:[%s8585_s4 + $0x38] sm:$0xff]  }
 0x21d   : > { %5988 = vmatprep.subr.bf16.mxu1 %v7386_v15 }
 0x21e   : > { %v5632_v49 = vpop.f32.mrb[4].mxu1 }
 0x21f   : > { %v5633_v50 = vpop.f32.mrb[5].mxu1 }
 0x220   : > { %v7713_v54 = vadd.f32 %v5633_v50, %v5632_v49  ;;  %v5635_v55 = vpop.f32.mrb[6].mxu1  ;;  %5989 = vmatpush3.bf16.msra.mxu1 %v7343_v16  ;;  %v7003_v50 = vld [vmem:[%s8585_s4 + $0x20] sm:$0xff]  }
 0x221   : > { %v5636_v57 = vpop.f32.mrb[7].mxu1  ;;  %6026 = vmatprep.subr.bf16.mxu1 %v7353_v32 }
 0x222   : > { %v7720_v58 = vadd.f32 %v5636_v57, %v5635_v55 }
 0x223   : > { %2682 = vmatmul.mubr.bf16.vlgmr.msra.gmra.mrb[112].mxu1 %v6973_v51  ;;  %v7005_v51 = vld [vmem:[%s8584_s3 + $0x234] ss:$8 sps:$4 sm:$0xff]  }
 0x224   : > { %v940_v59 = vpack.c.bf16 %v7720_v58, %v7713_v54  ;;  %6027 = vmatpush3.bf16.msra.mxu1 %v7321_v39  ;;  %2689 = vmatprep.mubr.bf16.mxu1 %v6977_v56  ;;  %v7013_v54 = vld [vmem:[%s8585_s4 + $0x98] sm:$0xff]  }
 0x225   : > { %6028 = vmatprep.subr.bf16.mxu1 %v7351_v31 }
 0x226   : > { %v5638_v60 = vpop.f32.mrb[8].mxu1 }
 0x227   : > { %v5639_v61 = vpop.f32.mrb[9].mxu1 }
 0x228   : > { %v7729_v1 = vadd.f32 %v5639_v61, %v5638_v60  ;;  %v5641_v32 = vpop.f32.mrb[10].mxu1  ;;  %6029 = vmatpush3.bf16.msra.mxu1 %v7319_v38  ;;  %v7004_v60 = vld [vmem:[%s8585_s4 + $0x28] sm:$0xff]  }
 0x229   : > { %v5642_v5 = vpop.f32.mrb[11].mxu1  ;;  %6030 = vmatprep.subr.bf16.mxu1 %v7365_v48 }
 0x22a   : > { %v7736_v39 = vadd.f32 %v5642_v5, %v5641_v32  ;;  %v7007_v32 = vld [vmem:[%s8584_s3 + $0x230] ss:$8 sps:$4 sm:$0xff]  }
 0x22b   : > { %2690 = vmatmul.mubr.bf16.gmra.mrb[116].mxu1 %v6979_v62 }
 0x22c   : > { %v941_v31 = vpack.c.bf16 %v7736_v39, %v7729_v1  ;;  %6031 = vmatpush3.bf16.msra.mxu1 %v7329_v53  ;;  %2697 = vmatprep.mubr.bf16.mxu1 %v6981_v4 }
 0x22d   : > { %6032 = vmatprep.subr.bf16.mxu1 %v7362_v47 }
 0x22e   : > { %v5644_v6 = vpop.f32.mrb[12].mxu1 }
 0x22f   : > { %v5645_v38 = vpop.f32.mrb[13].mxu1 }
 0x230   : > { %v7745_v8 = vadd.f32 %v5645_v38, %v5644_v6  ;;  %v5647_v48 = vpop.f32.mrb[14].mxu1  ;;  %6033 = vmatpush3.bf16.msra.mxu1 %v7327_v52  ;;  %v7008_v6 = vld [vmem:[%s8585_s4 + $0x30] sm:$0xff]  }
 0x231   : > { %v5648_v11 = vpop.f32.mrb[15].mxu1  ;;  %6034 = vmatprep.subr.bf16.mxu1 %v7377_v0  ;;  %v6992_v0 = vld [vmem:[%s8584_s3 + $0x204] ss:$8 sps:$4 sm:$0xff]  }
 0x232   : > { %v7752_v53 = vadd.f32 %v5648_v11, %v5647_v48 }
 0x233   : > { %2698 = vmatmul.mubr.bf16.gmra.mrb[120].mxu1 %v6983_v7 }
 0x234   : > { %v942_v47 = vpack.c.bf16 %v7752_v53, %v7745_v8  ;;  %6035 = vmatpush3.bf16.msra.mxu1 %v7337_v3  ;;  %2705 = vmatprep.mubr.bf16.mxu1 %v6985_v10  ;;  %v7015_v8 = vld [vmem:[%s8585_s4 + $0xa8] sm:$0xff]  }
 0x235   : > { %6036 = vmatprep.subr.bf16.mxu1 %v7374_v63 }
 0x236   : > { %v5666_v12 = vpop.f32.mrb[16].mxu1 }
 0x237   : > { %v5667_v52 = vpop.f32.mrb[17].mxu1 }
 0x238   : > { %v5668_v14 = vadd.f32 %v5667_v52, %v5666_v12  ;;  %v5669_v25 = vpop.f32.mrb[18].mxu1  ;;  %6037 = vmatpush3.bf16.msra.mxu1 %v7335_v2  ;;  %v6990_v2 = vld [vmem:[%s8584_s3 + $0x200] ss:$8 sps:$4 sm:$0xff]  }
 0x239   : > { %v5670_v19 = vpop.f32.mrb[19].mxu1  ;;  %6038 = vmatprep.subr.bf16.mxu1 %v7389_v18  ;;  %v6995_v18 = vld [vmem:[%s8584_s3 + $0x214] ss:$8 sps:$4 sm:$0xff]   ;;  %v7010_v12 = vld [vmem:[%s8585_s4 + $0x80] sm:$0xff]  }
 0x23a   : > { %v5671_v3 = vadd.f32 %v5670_v19, %v5669_v25  ;;  %v7011_v25 = vld [vmem:[%s8585_s4 + $0x88] sm:$0xff]  }
 0x23b   : > { %2706 = vmatmul.mubr.bf16.gmra.mrb[124].mxu1 %v6987_v13 }
 0x23c   : > { %v1073_v63 = vpack.c.bf16 %v5671_v3, %v5668_v14  ;;  %6039 = vmatpush3.bf16.msra.mxu1 %v7345_v17  ;;  %2937 = vmatprep.mubr.bf16.mxu1 %v6992_v0 }
 0x23d   : > { %6040 = vmatprep.subr.bf16.mxu1 %v7386_v15  ;;  %v6994_v15 = vld [vmem:[%s8585_s4 + $0x8] sm:$0xff]  }
 0x23e   : > { %v5672_v20 = vpop.f32.mrb[20].mxu1  ;;  %6277 = vmatprep.mubr.bf16.mxu0 %v1073_v63 }
 0x23f   : > { %v5673_v21 = vpop.f32.mrb[21].mxu1 }
 0x240   : > { %v5674_v22 = vadd.f32 %v5673_v21, %v5672_v20  ;;  %v5675_v23 = vpop.f32.mrb[22].mxu1  ;;  %6041 = vmatpush3.bf16.msra.mxu1 %v7343_v16  ;;  %v6997_v16 = vld [vmem:[%s8584_s3 + $0x210] ss:$8 sps:$4 sm:$0xff]  }
 0x241   : > { %v5676_v24 = vpop.f32.mrb[23].mxu1  ;;  %v7012_v20 = vld [vmem:[%s8585_s4 + $0x90] sm:$0xff]  }
 0x242   : > { %v5677_v17 = vadd.f32 %v5676_v24, %v5675_v23 }
 0x243   : > { %2938 = vmatmul.mubr.bf16.vlgmr.msra.gmra.mrb[128].mxu1 %v6990_v2 }
 0x244   : > { %v1074_v26 = vpack.c.bf16 %v5677_v17, %v5674_v22  ;;  %2945 = vmatprep.mubr.bf16.mxu1 %v6995_v18 }
 0x246   : > { %v5678_v27 = vpop.f32.mrb[24].mxu1  ;;  %6278 = vmatmul.mubr.bf16.vlgmr.msra.gmra.mrb[32].mxu0 %v1074_v26 }
 0x247   : > { %6286 = vmatpush3.bf16.msra.mxu0 %v7589_v9  ;;  %v5679_v28 = vpop.f32.mrb[25].mxu1 }
 0x248   : > { %v5680_v29 = vadd.f32 %v5679_v28, %v5678_v27  ;;  %v5681_v30 = vpop.f32.mrb[26].mxu1  ;;  %6287 = vmatprep.subr.bf16.mxu0 %v6994_v15 }
 0x249   : > { %v5682_v35 = vpop.f32.mrb[27].mxu1 }
 0x24a   : > { %v5683_v36 = vadd.f32 %v5682_v35, %v5681_v30 }
 0x24b   : > { %6288 = vmatpush3.bf16.msra.mxu0 %v6994_v15  ;;  %2946 = vmatmul.mubr.bf16.gmra.mrb[132].mxu1 %v6997_v16  ;;  %v7016_v15 = vld [vmem:[%s8585_s4 + $0xb0] sm:$0xff]  }
 0x24c   : > { %v1075_v9 = vpack.c.bf16 %v5683_v36, %v5680_v29  ;;  %6289 = vmatprep.subr.bf16.mxu0 %v6998_v33  ;;  %2953 = vmatprep.mubr.bf16.mxu1 %v7000_v34  ;;  %v7017_v29 = vld [vmem:[%s8585_s4 + $0xb8] sm:$0xff]   ;;  %v7018_v36 = vld [vmem:[%s8585_s4 + $0xc0] sm:$0xff]  }
 0x24e   : > { %v5684_v40 = vpop.f32.mrb[28].mxu1  ;;  %6281 = vmatprep.mubr.bf16.mxu0 %v1075_v9 }
 0x24f   : > { %6290 = vmatpush3.bf16.msra.mxu0 %v6998_v33  ;;  %v5685_v42 = vpop.f32.mrb[29].mxu1 }
 0x250   : > { %v5686_v44 = vadd.f32 %v5685_v42, %v5684_v40  ;;  %v5687_v49 = vpop.f32.mrb[30].mxu1  ;;  %6291 = vmatprep.subr.bf16.mxu0 %v6999_v37  ;;  %v7019_v42 = vld [vmem:[%s8585_s4 + $0xc8] sm:$0xff]  }
 0x251   : > { %v5688_v55 = vpop.f32.mrb[31].mxu1 }
 0x252   : > { %v5689_v56 = vadd.f32 %v5688_v55, %v5687_v49  ;;  %v7020_v55 = vld [vmem:[%s8585_s4 + $0xd0] sm:$0xff]  }
 0x253   : > { %6292 = vmatpush3.bf16.msra.mxu0 %v6999_v37  ;;  %2954 = vmatmul.mubr.bf16.gmra.mrb[136].mxu1 %v7002_v43  ;;  %v7051_v43 = vld [vmem:[%s8585_s4 + $0x200] sm:$0xff]  }
 0x254   : > { %v1076_v57 = vpack.c.bf16 %v5689_v56, %v5686_v44  ;;  %6293 = vmatprep.subr.bf16.mxu0 %v7003_v50  ;;  %2961 = vmatprep.mubr.bf16.mxu1 %v7005_v51 }
 0x255   : > { %6453 = vmatprep.subr.bf16.mxu1 %v7051_v43 }
 0x256   : > { %6282 = vmatmul.mubr.bf16.gmra.mrb[36].mxu0 %v1076_v57  ;;  %v5730_v61 = vpop.f32.mrb[32].mxu1  ;;  %6454 = vmatpush3.bf16.msra.mxu1 %v7051_v43  ;;  %v7053_v57 = vld [vmem:[%s8585_s4 + $0x208] sm:$0xff]  }
 0x257   : > { %6294 = vmatpush3.bf16.msra.mxu0 %v7003_v50  ;;  %6301 = vmatprep.mubr.bf16.mxu0 %v939_v46  ;;  %v5731_v62 = vpop.f32.mrb[33].mxu1 }
 0x258   : > { %v5732_v4 = vadd.f32 %v5731_v62, %v5730_v61  ;;  %v5733_v5 = vpop.f32.mrb[34].mxu1  ;;  %6295 = vmatprep.subr.bf16.mxu0 %v7004_v60  ;;  %6455 = vmatprep.subr.bf16.mxu1 %v7053_v57  ;;  %v7021_v62 = vld [vmem:[%s8585_s4 + $0xd8] sm:$0xff]  }
 0x259   : > { %v5734_v38 = vpop.f32.mrb[35].mxu1 }
 0x25a   : > { %v5735_v7 = vadd.f32 %v5734_v38, %v5733_v5  ;;  %6456 = vmatpush3.bf16.msra.mxu1 %v7053_v57 }
 0x25b   : > { %6296 = vmatpush3.bf16.msra.mxu0 %v7004_v60  ;;  %2962 = vmatmul.mubr.bf16.gmra.mrb[140].mxu1 %v7007_v32  ;;  %v7055_v32 = vld [vmem:[%s8585_s4 + $0x210] sm:$0xff]  }
 0x25c   : > { %v1434_v48 = vpack.c.bf16 %v5735_v7, %v5732_v4  ;;  %6297 = vmatprep.subr.bf16.mxu0 %v7008_v6  ;;  %v7022_v7 = vld [vmem:[%s8585_s4 + $0xe0] sm:$0xff]   ;;  %6457 = vmatprep.subr.bf16.mxu1 %v7055_v32 }
 0x25e   : > { %v5736_v45 = vpop.f32.mrb[36].mxu1  ;;  %6458 = vmatpush3.bf16.msra.mxu1 %v7055_v32  ;;  %v7034_v32 = vld [vmem:[%s8585_s4 + $0x140] sm:$0xff]  }
 0x25f   : > { %6298 = vmatpush3.bf16.msra.mxu0 %v7008_v6  ;;  %v5737_v46 = vpop.f32.mrb[37].mxu1 }
 0x260   : > { %v7815_v10 = vadd.f32 %v5737_v46, %v5736_v45  ;;  %v5739_v11 = vpop.f32.mrb[38].mxu1  ;;  %6299 = vmatprep.subr.bf16.mxu0 %v7009_v41 }
 0x261   : > { %v5740_v52 = vpop.f32.mrb[39].mxu1 }
 0x262   : > { %v5741_v13 = vadd.f32 %v5740_v52, %v5739_v11  ;;  %v7059_v11 = vld [vmem:[%s8585_s4 + $0x220] sm:$0xff]  }
 0x263   : > { %6300 = vmatpush3.bf16.msra.mxu0 %v7009_v41  ;;  %v7057_v41 = vld [vmem:[%s8585_s4 + $0x218] sm:$0xff]  }
 0x264   : > { %v1435_v14 = vpack.c.bf16 %v5741_v13, %v7815_v10  ;;  %6309 = vmatprep.subr.bf16.mxu0 %v7010_v12  ;;  %6459 = vmatprep.subr.bf16.mxu1 %v7057_v41  ;;  %v7023_v10 = vld [vmem:[%s8585_s4 + $0xe8] sm:$0xff]  }
 0x265   : > { %6460 = vmatpush3.bf16.msra.mxu1 %v7057_v41 }
 0x266   : > { %6302 = vmatmul.mubr.bf16.vlgmr.msra.gmra.mrb[32].mxu0 %v940_v59  ;;  %v5742_v0 = vpop.f32.mrb[40].mxu1  ;;  %6461 = vmatprep.subr.bf16.mxu1 %v7059_v11 }
 0x267   : > { %6305 = vmatprep.mubr.bf16.mxu0 %v941_v31  ;;  %6310 = vmatpush3.bf16.msra.mxu0 %v7010_v12  ;;  %v5743_v19 = vpop.f32.mrb[41].mxu1  ;;  %v7014_v31 = vld [vmem:[%s8585_s4 + $0xa0] sm:$0xff]  }
 0x268   : > { %v5744_v3 = vadd.f32 %v5743_v19, %v5742_v0  ;;  %v5745_v63 = vpop.f32.mrb[42].mxu1  ;;  %6311 = vmatprep.subr.bf16.mxu0 %v7011_v25  ;;  %v7061_v19 = vld [vmem:[%s8585_s4 + $0x228] sm:$0xff]  }
 0x269   : > { %v5746_v21 = vpop.f32.mrb[43].mxu1  ;;  %6462 = vmatpush3.bf16.msra.mxu1 %v7059_v11 }
 0x26a   : > { %v5747_v2 = vadd.f32 %v5746_v21, %v5745_v63  ;;  %6463 = vmatprep.subr.bf16.mxu1 %v7061_v19  ;;  %v7063_v21 = vld [vmem:[%s8585_s4 + $0x230] sm:$0xff]  }
 0x26b   : > { %6312 = vmatpush3.bf16.msra.mxu0 %v7011_v25  ;;  %v7024_v25 = vld [vmem:[%s8585_s4 + $0xf0] sm:$0xff]  }
 0x26c   : > { %v1436_v22 = vpack.c.bf16 %v5747_v2, %v5744_v3  ;;  %6313 = vmatprep.subr.bf16.mxu0 %v7012_v20 }
 0x26d   : > { %6464 = vmatpush3.bf16.msra.mxu1 %v7061_v19  ;;  %v7038_v19 = vld [vmem:[%s8585_s4 + $0x160] sm:$0xff]  }
 0x26e   : > { %6306 = vmatmul.mubr.bf16.gmra.mrb[36].mxu0 %v942_v47  ;;  %v5748_v58 = vpop.f32.mrb[44].mxu1  ;;  %6465 = vmatprep.subr.bf16.mxu1 %v7063_v21 }
 0x26f   : > { %6314 = vmatpush3.bf16.msra.mxu0 %v7012_v20  ;;  %6325 = vmatprep.mubr.bf16.mxu0 %v1434_v48  ;;  %v5749_v59 = vpop.f32.mrb[45].mxu1  ;;  %v7025_v20 = vld [vmem:[%s8585_s4 + $0xf8] sm:$0xff]  }
 0x270   : > { %v5750_v1 = vadd.f32 %v5749_v59, %v5748_v58  ;;  %v5751_v39 = vpop.f32.mrb[46].mxu1  ;;  %6315 = vmatprep.subr.bf16.mxu0 %v7013_v54  ;;  %v7026_v59 = vld [vmem:[%s8585_s4 + $0x100] sm:$0xff]  }
 0x271   : > { %v5752_v23 = vpop.f32.mrb[47].mxu1  ;;  %6466 = vmatpush3.bf16.msra.mxu1 %v7063_v21  ;;  %v7039_v21 = vld [vmem:[%s8585_s4 + $0x168] sm:$0xff]  }
 0x272   : > { %v5753_v18 = vadd.f32 %v5752_v23, %v5751_v39  ;;  %v7065_v39 = vld [vmem:[%s8585_s4 + $0x238] sm:$0xff]  }
 0x273   : > { %6316 = vmatpush3.bf16.msra.mxu0 %v7013_v54  ;;  %6467 = vmatprep.subr.bf16.mxu1 %v7065_v39 }
 0x274   : > { %v1437_v24 = vpack.c.bf16 %v5753_v18, %v5750_v1  ;;  %6317 = vmatprep.subr.bf16.mxu0 %v7014_v31  ;;  %v7027_v18 = vld [vmem:[%s8585_s4 + $0x108] sm:$0xff]  }
 0x275   : > { %6468 = vmatpush3.bf16.msra.mxu1 %v7065_v39 }
 0x276   : > { %v5782_v53 = vpop.f32.mrb[48].mxu1 }
 0x277   : > { %6318 = vmatpush3.bf16.msra.mxu0 %v7014_v31  ;;  %v5783_v47 = vpop.f32.mrb[49].mxu1 }
 0x278   : > { %v5784_v17 = vadd.f32 %v5783_v47, %v5782_v53  ;;  %v5785_v26 = vpop.f32.mrb[50].mxu1  ;;  %6319 = vmatprep.subr.bf16.mxu0 %v7015_v8 }
 0x279   : > { %v5786_v27 = vpop.f32.mrb[51].mxu1 }
 0x27a   : > { %v5787_v28 = vadd.f32 %v5786_v27, %v5785_v26 }
 0x27b   : > { %6320 = vmatpush3.bf16.msra.mxu0 %v7015_v8 }
 0x27c   : > { %v1690_v16 = vpack.c.bf16 %v5787_v28, %v5784_v17  ;;  %6321 = vmatprep.subr.bf16.mxu0 %v7016_v15  ;;  %v7028_v17 = vld [vmem:[%s8585_s4 + $0x110] sm:$0xff]   ;;  %v7029_v28 = vld [vmem:[%s8585_s4 + $0x118] sm:$0xff]  }
 0x27e   : > { %v5788_v30 = vpop.f32.mrb[52].mxu1 }
 0x27f   : > { %6322 = vmatpush3.bf16.msra.mxu0 %v7016_v15  ;;  %v5789_v33 = vpop.f32.mrb[53].mxu1 }
 0x280   : > { %v7851_v34 = vadd.f32 %v5789_v33, %v5788_v30  ;;  %v5791_v35 = vpop.f32.mrb[54].mxu1  ;;  %6323 = vmatprep.subr.bf16.mxu0 %v7017_v29 }
 0x281   : > { %v5792_v9 = vpop.f32.mrb[55].mxu1 }
 0x282   : > { %v7856_v37 = vadd.f32 %v5792_v9, %v5791_v35 }
 0x283   : > { %6324 = vmatpush3.bf16.msra.mxu0 %v7017_v29 }
 0x284   : > { %v1691_v40 = vpack.c.bf16 %v7856_v37, %v7851_v34  ;;  %6333 = vmatprep.subr.bf16.mxu0 %v7018_v36  ;;  %v7030_v34 = vld [vmem:[%s8585_s4 + $0x120] sm:$0xff]   ;;  %v7031_v37 = vld [vmem:[%s8585_s4 + $0x128] sm:$0xff]  }
 0x286   : > { %6326 = vmatmul.mubr.bf16.vlgmr.msra.gmra.mrb[32].mxu0 %v1435_v14  ;;  %v5794_v44 = vpop.f32.mrb[56].mxu1 }
 0x287   : > { %6329 = vmatprep.mubr.bf16.mxu0 %v1436_v22  ;;  %6334 = vmatpush3.bf16.msra.mxu0 %v7018_v36  ;;  %v5795_v49 = vpop.f32.mrb[57].mxu1 }
 0x288   : > { %v7866_v50 = vadd.f32 %v5795_v49, %v5794_v44  ;;  %v5797_v51 = vpop.f32.mrb[58].mxu1  ;;  %6335 = vmatprep.subr.bf16.mxu0 %v7019_v42  ;;  %v7032_v49 = vld [vmem:[%s8585_s4 + $0x130] sm:$0xff]  }
 0x289   : > { %v5798_v56 = vpop.f32.mrb[59].mxu1 }
 0x28a   : > { %v7874_v60 = vadd.f32 %v5798_v56, %v5797_v51  ;;  %v7033_v56 = vld [vmem:[%s8585_s4 + $0x138] sm:$0xff]  }
 0x28b   : > { %6336 = vmatpush3.bf16.msra.mxu0 %v7019_v42 }
 0x28c   : > { %v1692_v61 = vpack.c.bf16 %v7874_v60, %v7866_v50  ;;  %6337 = vmatprep.subr.bf16.mxu0 %v7020_v55 }
 0x28e   : > { %6330 = vmatmul.mubr.bf16.gmra.mrb[36].mxu0 %v1437_v24  ;;  %v5800_v4 = vpop.f32.mrb[60].mxu1 }
 0x28f   : > { %6338 = vmatpush3.bf16.msra.mxu0 %v7020_v55  ;;  %6349 = vmatprep.mubr.bf16.mxu0 %v1690_v16  ;;  %v5801_v5 = vpop.f32.mrb[61].mxu1 }
 0x290   : > { %v7884_v6 = vadd.f32 %v5801_v5, %v5800_v4  ;;  %v5803_v38 = vpop.f32.mrb[62].mxu1  ;;  %6339 = vmatprep.subr.bf16.mxu0 %v7021_v62 }
 0x291   : > { %v5804_v48 = vpop.f32.mrb[63].mxu1 }
 0x292   : > { %v5805_v45 = vadd.f32 %v5804_v48, %v5803_v38  ;;  %v7035_v38 = vld [vmem:[%s8585_s4 + $0x148] sm:$0xff]  }
 0x293   : > { %6340 = vmatpush3.bf16.msra.mxu0 %v7021_v62 }
 0x294   : > { %v1693_v46 = vpack.c.bf16 %v5805_v45, %v7884_v6  ;;  %6341 = vmatprep.subr.bf16.mxu0 %v7022_v7 }
 0x296   : > { %v5834_v12 = vpop.f32.mrb[64].mxu1 }
 0x297   : > { %6342 = vmatpush3.bf16.msra.mxu0 %v7022_v7  ;;  %v5835_v52 = vpop.f32.mrb[65].mxu1 }
 0x298   : > { %v5836_v13 = vadd.f32 %v5835_v52, %v5834_v12  ;;  %v5837_v14 = vpop.f32.mrb[66].mxu1  ;;  %6343 = vmatprep.subr.bf16.mxu0 %v7023_v10  ;;  %v7037_v52 = vld [vmem:[%s8585_s4 + $0x158] sm:$0xff]  }
 0x299   : > { %v5838_v0 = vpop.f32.mrb[67].mxu1 }
 0x29a   : > { %v5839_v3 = vadd.f32 %v5838_v0, %v5837_v14 }
 0x29b   : > { %6344 = vmatpush3.bf16.msra.mxu0 %v7023_v10 }
 0x29c   : > { %v1946_v63 = vpack.c.bf16 %v5839_v3, %v5836_v13  ;;  %6345 = vmatprep.subr.bf16.mxu0 %v7024_v25 }
 0x29e   : > { %v5840_v2 = vpop.f32.mrb[68].mxu1 }
 0x29f   : > { %6346 = vmatpush3.bf16.msra.mxu0 %v7024_v25  ;;  %v5841_v22 = vpop.f32.mrb[69].mxu1 }
 0x2a0   : > { %v7911_v54 = vadd.f32 %v5841_v22, %v5840_v2  ;;  %v5843_v58 = vpop.f32.mrb[70].mxu1  ;;  %6347 = vmatprep.subr.bf16.mxu0 %v7025_v20 }
 0x2a1   : > { %v5844_v1 = vpop.f32.mrb[71].mxu1 }
 0x2a2   : > { %v7919_v31 = vadd.f32 %v5844_v1, %v5843_v58 }
 0x2a3   : > { %6348 = vmatpush3.bf16.msra.mxu0 %v7025_v20 }
 0x2a4   : > { %v1947_v23 = vpack.c.bf16 %v7919_v31, %v7911_v54  ;;  %6357 = vmatprep.subr.bf16.mxu0 %v7026_v59 }
 0x2a6   : > { %6350 = vmatmul.mubr.bf16.vlgmr.msra.gmra.mrb[32].mxu0 %v1691_v40  ;;  %v5846_v24 = vpop.f32.mrb[72].mxu1 }
 0x2a7   : > { %6353 = vmatprep.mubr.bf16.mxu0 %v1692_v61  ;;  %6358 = vmatpush3.bf16.msra.mxu0 %v7026_v59  ;;  %v5847_v8 = vpop.f32.mrb[73].mxu1  ;;  %v7040_v59 = vld [vmem:[%s8585_s4 + $0x170] sm:$0xff]  }
 0x2a8   : > { %v5848_v53 = vadd.f32 %v5847_v8, %v5846_v24  ;;  %v5849_v47 = vpop.f32.mrb[74].mxu1  ;;  %6359 = vmatprep.subr.bf16.mxu0 %v7027_v18 }
 0x2a9   : > { %v5850_v26 = vpop.f32.mrb[75].mxu1 }
 0x2aa   : > { %v5851_v15 = vadd.f32 %v5850_v26, %v5849_v47  ;;  %v7042_v47 = vld [vmem:[%s8585_s4 + $0x180] sm:$0xff]  }
 0x2ab   : > { %6360 = vmatpush3.bf16.msra.mxu0 %v7027_v18 }
 0x2ac   : > { %v1948_v27 = vpack.c.bf16 %v5851_v15, %v5848_v53  ;;  %6361 = vmatprep.subr.bf16.mxu0 %v7028_v17 }
 0x2ae   : > { %6354 = vmatmul.mubr.bf16.gmra.mrb[36].mxu0 %v1693_v46  ;;  %v5852_v16 = vpop.f32.mrb[76].mxu1  ;;  %v7036_v46 = vld [vmem:[%s8585_s4 + $0x150] sm:$0xff]  }
 0x2af   : > { %6362 = vmatpush3.bf16.msra.mxu0 %v7028_v17  ;;  %6373 = vmatprep.mubr.bf16.mxu0 %v1946_v63  ;;  %v5853_v29 = vpop.f32.mrb[77].mxu1 }
 0x2b0   : > { %v5854_v30 = vadd.f32 %v5853_v29, %v5852_v16  ;;  %v5855_v33 = vpop.f32.mrb[78].mxu1  ;;  %6363 = vmatprep.subr.bf16.mxu0 %v7029_v28 }
 0x2b1   : > { %v5856_v35 = vpop.f32.mrb[79].mxu1 }
 0x2b2   : > { %v5857_v36 = vadd.f32 %v5856_v35, %v5855_v33  ;;  %v7044_v33 = vld [vmem:[%s8585_s4 + $0x190] sm:$0xff]  }
 0x2b3   : > { %6364 = vmatpush3.bf16.msra.mxu0 %v7029_v28 }
 0x2b4   : > { %v1949_v9 = vpack.c.bf16 %v5857_v36, %v5854_v30  ;;  %6365 = vmatprep.subr.bf16.mxu0 %v7030_v34 }
 0x2b6   : > { %v5886_v40 = vpop.f32.mrb[80].mxu1 }
 0x2b7   : > { %6366 = vmatpush3.bf16.msra.mxu0 %v7030_v34  ;;  %v5887_v42 = vpop.f32.mrb[81].mxu1 }
 0x2b8   : > { %v5888_v43 = vadd.f32 %v5887_v42, %v5886_v40  ;;  %v5889_v44 = vpop.f32.mrb[82].mxu1  ;;  %6367 = vmatprep.subr.bf16.mxu0 %v7031_v37 }
 0x2b9   : > { %v5890_v50 = vpop.f32.mrb[83].mxu1 }
 0x2ba   : > { %v5891_v51 = vadd.f32 %v5890_v50, %v5889_v44  ;;  %v7046_v44 = vld [vmem:[%s8585_s4 + $0x1a0] sm:$0xff]  }
 0x2bb   : > { %6368 = vmatpush3.bf16.msra.mxu0 %v7031_v37 }
 0x2bc   : > { %v2202_v55 = vpack.c.bf16 %v5891_v51, %v5888_v43  ;;  %6369 = vmatprep.subr.bf16.mxu0 %v7032_v49 }
 0x2be   : > { %v5892_v57 = vpop.f32.mrb[84].mxu1 }
 0x2bf   : > { %6370 = vmatpush3.bf16.msra.mxu0 %v7032_v49  ;;  %v5893_v60 = vpop.f32.mrb[85].mxu1 }
 0x2c0   : > { %v7950_v61 = vadd.f32 %v5893_v60, %v5892_v57  ;;  %v5895_v62 = vpop.f32.mrb[86].mxu1  ;;  %6371 = vmatprep.subr.bf16.mxu0 %v7033_v56 }
 0x2c1   : > { %v5896_v4 = vpop.f32.mrb[87].mxu1 }
 0x2c2   : > { %v5897_v5 = vadd.f32 %v5896_v4, %v5895_v62  ;;  %v7048_v62 = vld [vmem:[%s8585_s4 + $0x1b0] sm:$0xff]  }
 0x2c3   : > { %6372 = vmatpush3.bf16.msra.mxu0 %v7033_v56 }
 0x2c4   : > { %v2203_v6 = vpack.c.bf16 %v5897_v5, %v7950_v61  ;;  %6381 = vmatprep.subr.bf16.mxu0 %v7034_v32 }
 0x2c6   : > { %6374 = vmatmul.mubr.bf16.vlgmr.msra.gmra.mrb[32].mxu0 %v1947_v23  ;;  %v5898_v7 = vpop.f32.mrb[88].mxu1  ;;  %v7041_v23 = vld [vmem:[%s8585_s4 + $0x178] sm:$0xff]  }
 0x2c7   : > { %6377 = vmatprep.mubr.bf16.mxu0 %v1948_v27  ;;  %6382 = vmatpush3.bf16.msra.mxu0 %v7034_v32  ;;  %v5899_v48 = vpop.f32.mrb[89].mxu1  ;;  %v7043_v27 = vld [vmem:[%s8585_s4 + $0x188] sm:$0xff]  }
 0x2c8   : > { %v5900_v41 = vadd.f32 %v5899_v48, %v5898_v7  ;;  %v5901_v45 = vpop.f32.mrb[90].mxu1  ;;  %6383 = vmatprep.subr.bf16.mxu0 %v7035_v38 }
 0x2c9   : > { %v5902_v10 = vpop.f32.mrb[91].mxu1 }
 0x2ca   : > { %v5903_v11 = vadd.f32 %v5902_v10, %v5901_v45  ;;  %v7050_v45 = vld [vmem:[%s8585_s4 + $0x1c0] sm:$0xff]  }
 0x2cb   : > { %6384 = vmatpush3.bf16.msra.mxu0 %v7035_v38 }
 0x2cc   : > { %v2204_v12 = vpack.c.bf16 %v5903_v11, %v5900_v41  ;;  %6385 = vmatprep.subr.bf16.mxu0 %v7036_v46 }
 0x2ce   : > { %6378 = vmatmul.mubr.bf16.gmra.mrb[36].mxu0 %v1949_v9  ;;  %v5904_v13 = vpop.f32.mrb[92].mxu1  ;;  %v7045_v9 = vld [vmem:[%s8585_s4 + $0x198] sm:$0xff]  }
 0x2cf   : > { %6386 = vmatpush3.bf16.msra.mxu0 %v7036_v46  ;;  %6397 = vmatprep.mubr.bf16.mxu0 %v2202_v55  ;;  %v5905_v14 = vpop.f32.mrb[93].mxu1  ;;  %v7047_v55 = vld [vmem:[%s8585_s4 + $0x1a8] sm:$0xff]  }
 0x2d0   : > { %v5906_v25 = vadd.f32 %v5905_v14, %v5904_v13  ;;  %v5907_v0 = vpop.f32.mrb[94].mxu1  ;;  %6387 = vmatprep.subr.bf16.mxu0 %v7037_v52 }
 0x2d1   : > { %v5908_v3 = vpop.f32.mrb[95].mxu1 }
 0x2d2   : > { %v5909_v63 = vadd.f32 %v5908_v3, %v5907_v0  ;;  %v7054_v0 = vld [vmem:[%s8585_s4 + $0x1d0] sm:$0xff]  }
 0x2d3   : > { %6388 = vmatpush3.bf16.msra.mxu0 %v7037_v52 }
 0x2d4   : > { %v2205_v20 = vpack.c.bf16 %v5909_v63, %v5906_v25  ;;  %6389 = vmatprep.subr.bf16.mxu0 %v7038_v19 }
 0x2d6   : > { %v5938_v2 = vpop.f32.mrb[96].mxu1 }
 0x2d7   : > { %6390 = vmatpush3.bf16.msra.mxu0 %v7038_v19  ;;  %v5939_v22 = vpop.f32.mrb[97].mxu1 }
 0x2d8   : > { %v5940_v54 = vadd.f32 %v5939_v22, %v5938_v2  ;;  %v5941_v58 = vpop.f32.mrb[98].mxu1  ;;  %6391 = vmatprep.subr.bf16.mxu0 %v7039_v21 }
 0x2d9   : > { %v5942_v1 = vpop.f32.mrb[99].mxu1 }
 0x2da   : > { %v5943_v39 = vadd.f32 %v5942_v1, %v5941_v58  ;;  %v7058_v58 = vld [vmem:[%s8585_s4 + $0x1e0] sm:$0xff]  }
 0x2db   : > { %6392 = vmatpush3.bf16.msra.mxu0 %v7039_v21 }
 0x2dc   : > { %v2458_v31 = vpack.c.bf16 %v5943_v39, %v5940_v54  ;;  %6393 = vmatprep.subr.bf16.mxu0 %v7040_v59 }
 0x2de   : > { %v5944_v18 = vpop.f32.mrb[100].mxu1 }
 0x2df   : > { %6394 = vmatpush3.bf16.msra.mxu0 %v7040_v59  ;;  %v5945_v24 = vpop.f32.mrb[101].mxu1 }
 0x2e0   : > { %v7977_v8 = vadd.f32 %v5945_v24, %v5944_v18  ;;  %v5947_v53 = vpop.f32.mrb[102].mxu1  ;;  %6395 = vmatprep.subr.bf16.mxu0 %v7041_v23 }
 0x2e1   : > { %v5948_v17 = vpop.f32.mrb[103].mxu1 }
 0x2e2   : > { %v5949_v26 = vadd.f32 %v5948_v17, %v5947_v53  ;;  %v7062_v53 = vld [vmem:[%s8585_s4 + $0x1f0] sm:$0xff]  }
 0x2e3   : > { %6396 = vmatpush3.bf16.msra.mxu0 %v7041_v23 }
 0x2e4   : > { %v2459_v15 = vpack.c.bf16 %v5949_v26, %v7977_v8  ;;  %6405 = vmatprep.subr.bf16.mxu0 %v7042_v47 }
 0x2e6   : > { %6398 = vmatmul.mubr.bf16.vlgmr.msra.gmra.mrb[32].mxu0 %v2203_v6  ;;  %v5950_v28 = vpop.f32.mrb[104].mxu1  ;;  %v7049_v6 = vld [vmem:[%s8585_s4 + $0x1b8] sm:$0xff]  }
 0x2e7   : > { %6401 = vmatprep.mubr.bf16.mxu0 %v2204_v12  ;;  %6406 = vmatpush3.bf16.msra.mxu0 %v7042_v47  ;;  %v5951_v16 = vpop.f32.mrb[105].mxu1  ;;  %v7052_v12 = vld [vmem:[%s8585_s4 + $0x1c8] sm:$0xff]  }
 0x2e8   : > { %v5952_v29 = vadd.f32 %v5951_v16, %v5950_v28  ;;  %v5953_v30 = vpop.f32.mrb[106].mxu1  ;;  %6407 = vmatprep.subr.bf16.mxu0 %v7043_v27 }
 0x2e9   : > { %v5954_v34 = vpop.f32.mrb[107].mxu1 }
 0x2ea   : > { %v5955_v35 = vadd.f32 %v5954_v34, %v5953_v30 }
 0x2eb   : > { %6408 = vmatpush3.bf16.msra.mxu0 %v7043_v27 }
 0x2ec   : > { %v2460_v36 = vpack.c.bf16 %v5955_v35, %v5952_v29  ;;  %6409 = vmatprep.subr.bf16.mxu0 %v7044_v33 }
 0x2ee   : > { %6402 = vmatmul.mubr.bf16.gmra.mrb[36].mxu0 %v2205_v20  ;;  %v5956_v37 = vpop.f32.mrb[108].mxu1  ;;  %v7056_v20 = vld [vmem:[%s8585_s4 + $0x1d8] sm:$0xff]  }
 0x2ef   : > { %6410 = vmatpush3.bf16.msra.mxu0 %v7044_v33  ;;  %6421 = vmatprep.mubr.bf16.mxu0 %v2458_v31  ;;  %v5957_v40 = vpop.f32.mrb[109].mxu1  ;;  %v7060_v31 = vld [vmem:[%s8585_s4 + $0x1e8] sm:$0xff]  }
 0x2f0   : > { %v5958_v42 = vadd.f32 %v5957_v40, %v5956_v37  ;;  %v5959_v43 = vpop.f32.mrb[110].mxu1  ;;  %6411 = vmatprep.subr.bf16.mxu0 %v7045_v9 }
 0x2f1   : > { %v5960_v49 = vpop.f32.mrb[111].mxu1 }
 0x2f2   : > { %v5961_v50 = vadd.f32 %v5960_v49, %v5959_v43 }
 0x2f3   : > { %6412 = vmatpush3.bf16.msra.mxu0 %v7045_v9 }
 0x2f4   : > { %v2461_v51 = vpack.c.bf16 %v5961_v50, %v5958_v42  ;;  %6413 = vmatprep.subr.bf16.mxu0 %v7046_v44 }
 0x2f6   : > { %v5990_v56 = vpop.f32.mrb[112].mxu1 }
 0x2f7   : > { %6414 = vmatpush3.bf16.msra.mxu0 %v7046_v44  ;;  %v5991_v57 = vpop.f32.mrb[113].mxu1 }
 0x2f8   : > { %v5992_v60 = vadd.f32 %v5991_v57, %v5990_v56  ;;  %v5993_v61 = vpop.f32.mrb[114].mxu1  ;;  %6415 = vmatprep.subr.bf16.mxu0 %v7047_v55 }
 0x2f9   : > { %v5994_v32 = vpop.f32.mrb[115].mxu1 }
 0x2fa   : > { %v5995_v4 = vadd.f32 %v5994_v32, %v5993_v61  ;;  %v7068_v61 = vld [vmem:[%s8588_s7] sm:$0xff]   ;;  %v7070_v32 = vld [vmem:[%s8588_s7 + $0x10] sm:$0xff]  }
 0x2fb   : > { %6416 = vmatpush3.bf16.msra.mxu0 %v7047_v55 }
 0x2fc   : > { %v2714_v5 = vpack.c.bf16 %v5995_v4, %v5992_v60  ;;  %6417 = vmatprep.subr.bf16.mxu0 %v7048_v62  ;;  %v7187_v60 = vmov 0.0   ;;  %v7071_v4 = vld [vmem:[%s8588_s7 + $0x18] sm:$0xff]  }
 0x2fd   : > { %6477 = vmatprep.subr.bf16.mxu1 %v7187_v60 }
 0x2fe   : > { %v5996_v38 = vpop.f32.mrb[116].mxu1 }
 0x2ff   : > { %6418 = vmatpush3.bf16.msra.mxu0 %v7048_v62  ;;  %v5997_v7 = vpop.f32.mrb[117].mxu1  ;;  %v7069_v62 = vld [vmem:[%s8588_s7 + $0x8] sm:$0xff]  }
 0x300   : > { %v8004_v48 = vadd.f32 %v5997_v7, %v5996_v38  ;;  %v5999_v41 = vpop.f32.mrb[118].mxu1  ;;  %6419 = vmatprep.subr.bf16.mxu0 %v7049_v6  ;;  %v7077_v38 = vld [vmem:[%s8588_s7 + $0x30] sm:$0xff]  }
 0x301   : > { %v6000_v46 = vpop.f32.mrb[119].mxu1 }
 0x302   : > { %v6001_v10 = vadd.f32 %v6000_v46, %v5999_v41  ;;  %v5323_v41 = vld [vmem:[%s8586_s5] ss:$0 sm:$0xff] }
 0x303   : > { %6420 = vmatpush3.bf16.msra.mxu0 %v7049_v6  ;;  %v7075_v6 = vld [vmem:[%s8588_s7 + $0x28] sm:$0xff]  }
 0x304   : > { %v2715_v11 = vpack.c.bf16 %v6001_v10, %v8004_v48  ;;  %6429 = vmatprep.subr.bf16.mxu0 %v7050_v45 }
 0x306   : > { %6422 = vmatmul.mubr.bf16.vlgmr.msra.gmra.mrb[32].mxu0 %v2459_v15  ;;  %v6002_v52 = vpop.f32.mrb[120].mxu1  ;;  %v7064_v15 = vld [vmem:[%s8585_s4 + $0x1f8] sm:$0xff]  }
 0x307   : > { %6425 = vmatprep.mubr.bf16.mxu0 %v2460_v36  ;;  %6430 = vmatpush3.bf16.msra.mxu0 %v7050_v45  ;;  %v6003_v13 = vpop.f32.mrb[121].mxu1 }
 0x308   : > { %v6004_v14 = vadd.f32 %v6003_v13, %v6002_v52  ;;  %v6005_v25 = vpop.f32.mrb[122].mxu1  ;;  %6431 = vmatprep.subr.bf16.mxu0 %v7052_v12 }
 0x309   : > { %v6006_v19 = vpop.f32.mrb[123].mxu1 }
 0x30a   : > { %v6007_v3 = vadd.f32 %v6006_v19, %v6005_v25 }
 0x30b   : > { %6432 = vmatpush3.bf16.msra.mxu0 %v7052_v12 }
 0x30c   : > { %v2716_v63 = vpack.c.bf16 %v6007_v3, %v6004_v14  ;;  %6433 = vmatprep.subr.bf16.mxu0 %v7054_v0 }
 0x30e   : > { %6426 = vmatmul.mubr.bf16.gmra.mrb[36].mxu0 %v2461_v51  ;;  %v6008_v21 = vpop.f32.mrb[124].mxu1 }
 0x30f   : > { %6434 = vmatpush3.bf16.msra.mxu0 %v7054_v0  ;;  %6445 = vmatprep.mubr.bf16.mxu0 %v2714_v5  ;;  %v6009_v2 = vpop.f32.mrb[125].mxu1  ;;  %v7073_v5 = vld [vmem:[%s8588_s7 + $0x20] sm:$0xff]  }
 0x310   : > { %v6010_v22 = vadd.f32 %v6009_v2, %v6008_v21  ;;  %v6011_v54 = vpop.f32.mrb[126].mxu1  ;;  %6435 = vmatprep.subr.bf16.mxu0 %v7056_v20 }
 0x311   : > { %v6012_v59 = vpop.f32.mrb[127].mxu1 }
 0x312   : > { %v6013_v1 = vadd.f32 %v6012_v59, %v6011_v54 }
 0x313   : > { %6436 = vmatpush3.bf16.msra.mxu0 %v7056_v20 }
 0x314   : > { %v2717_v39 = vpack.c.bf16 %v6013_v1, %v6010_v22  ;;  %6437 = vmatprep.subr.bf16.mxu0 %v7058_v58 }
 0x316   : > { %v6042_v23 = vpop.f32.mrb[128].mxu1 }
 0x317   : > { %6438 = vmatpush3.bf16.msra.mxu0 %v7058_v58  ;;  %v6043_v18 = vpop.f32.mrb[129].mxu1 }
 0x318   : > { %v6044_v24 = vadd.f32 %v6043_v18, %v6042_v23  ;;  %v6045_v8 = vpop.f32.mrb[130].mxu1  ;;  %6439 = vmatprep.subr.bf16.mxu0 %v7060_v31 }
 0x319   : > { %v6046_v47 = vpop.f32.mrb[131].mxu1 }
 0x31a   : > { %v6047_v17 = vadd.f32 %v6046_v47, %v6045_v8 }
 0x31b   : > { %6440 = vmatpush3.bf16.msra.mxu0 %v7060_v31 }
 0x31c   : > { %v2970_v26 = vpack.c.bf16 %v6047_v17, %v6044_v24  ;;  %6441 = vmatprep.subr.bf16.mxu0 %v7062_v53 }
 0x31e   : > { %v6048_v27 = vpop.f32.mrb[132].mxu1  ;;  %6469 = vmatprep.mubr.bf16.mxu1 %v2970_v26 }
 0x31f   : > { %6442 = vmatpush3.bf16.msra.mxu0 %v7062_v53  ;;  %v6049_v28 = vpop.f32.mrb[133].mxu1 }
 0x320   : > { %v6050_v16 = vadd.f32 %v6049_v28, %v6048_v27  ;;  %v6051_v29 = vpop.f32.mrb[134].mxu1  ;;  %6443 = vmatprep.subr.bf16.mxu0 %v7064_v15 }
 0x321   : > { %v6052_v30 = vpop.f32.mrb[135].mxu1 }
 0x322   : > { %v6053_v33 = vadd.f32 %v6052_v30, %v6051_v29 }
 0x323   : > { %6444 = vmatpush3.bf16.msra.mxu0 %v7064_v15 }
 0x324   : > { %v2971_v34 = vpack.c.bf16 %v6053_v33, %v6050_v16  ;;  %6521 = vmatprep.subr.bf16.mxu0 %v7187_v60 }
 0x326   : > { %6446 = vmatmul.mubr.bf16.vlgmr.msra.gmra.mrb[32].mxu0 %v2715_v11  ;;  %v6054_v35 = vpop.f32.mrb[136].mxu1  ;;  %6470 = vmatmul.mubr.bf16.vlgmr.msra.gmra.mrb[144].mxu1 %v2971_v34 }
 0x327   : > { %6449 = vmatprep.mubr.bf16.mxu0 %v2716_v63  ;;  %v6055_v36 = vpop.f32.mrb[137].mxu1  ;;  %6522 = vmatpush3.bf16.msra.mxu0 %v7068_v61 }
 0x328   : > { %v6056_v9 = vadd.f32 %v6055_v36, %v6054_v35  ;;  %v6057_v37 = vpop.f32.mrb[138].mxu1  ;;  %6523 = vmatprep.subr.bf16.mxu0 %v7187_v60 }
 0x329   : > { %v6058_v40 = vpop.f32.mrb[139].mxu1 }
 0x32a   : > { %v6059_v42 = vadd.f32 %v6058_v40, %v6057_v37  ;;  %v7066_v37 = vld [vmem:[%s8587_s6] sm:$0xff]   ;;  %v7067_v40 = vld [vmem:[%s8587_s6 + $0x8] sm:$0xff]  }
 0x32b   : > { %6524 = vmatpush3.bf16.msra.mxu0 %v7069_v62 }
 0x32c   : > { %v2972_v43 = vpack.c.bf16 %v6059_v42, %v6056_v9  ;;  %6525 = vmatprep.subr.bf16.mxu0 %v7187_v60  ;;  %v7072_v42 = vld [vmem:[%s8588_s7 + $0x40] sm:$0xff]  }
 0x32e   : > { %6450 = vmatmul.mubr.bf16.gmra.mrb[36].mxu0 %v2717_v39  ;;  %v6060_v44 = vpop.f32.mrb[140].mxu1  ;;  %6473 = vmatprep.mubr.bf16.mxu1 %v2972_v43  ;;  %v7074_v43 = vld [vmem:[%s8588_s7 + $0x48] sm:$0xff]  }
 0x32f   : > { %v6061_v49 = vpop.f32.mrb[141].mxu1  ;;  %6537 = vmatprep.mubr.msk.bf16.mxu0 %vm7188_vm0, %v7187_v60  ;;  %6526 = vmatpush3.bf16.msra.mxu0 %v7070_v32 }
 0x330   : > { %v6062_v50 = vadd.f32 %v6061_v49, %v6060_v44  ;;  %v6063_v51 = vpop.f32.mrb[142].mxu1  ;;  %6527 = vmatprep.subr.bf16.mxu0 %v7187_v60  ;;  %v7076_v44 = vld [vmem:[%s8588_s7 + $0x50] sm:$0xff]   ;;  %v7078_v49 = vld [vmem:[%s8588_s7 + $0x58] sm:$0xff]  }
 0x331   : > { %v6064_v55 = vpop.f32.mrb[143].mxu1 }
 0x332   : > { %v6065_v56 = vadd.f32 %v6064_v55, %v6063_v51  ;;  %v7080_v51 = vld [vmem:[%s8588_s7 + $0x60] sm:$0xff]   ;;  %v7081_v55 = vld [vmem:[%s8588_s7 + $0x68] sm:$0xff]  }
 0x333   : > { %6528 = vmatpush3.bf16.msra.mxu0 %v7071_v4 }
 0x334   : > { %v2973_v57 = vpack.c.bf16 %v6065_v56, %v6062_v50  ;;  %6529 = vmatprep.subr.bf16.mxu0 %v7187_v60  ;;  %v7079_v50 = vld [vmem:[%s8588_s7 + $0x38] sm:$0xff]   ;;  %v7082_v56 = vld [vmem:[%s8588_s7 + $0x70] sm:$0xff]  }
 0x336   : > { %6474 = vmatmul.mubr.bf16.gmra.mrb[148].mxu1 %v2973_v57  ;;  %v7083_v57 = vld [vmem:[%s8588_s7 + $0x78] sm:$0xff]  }
 0x337   : > { %6485 = vmatprep.mubr.msk.bf16.mxu1 %vm7188_vm0, %v7187_v60  ;;  %6530 = vmatpush3.bf16.msra.mxu0 %v7073_v5 }
 0x338   : > { %6531 = vmatprep.subr.bf16.mxu0 %v7187_v60 }
 0x33b   : > { %6532 = vmatpush3.bf16.msra.mxu0 %v7075_v6 }
 0x33c   : > { %6533 = vmatprep.subr.bf16.mxu0 %v7187_v60 }
 0x33f   : > { %6534 = vmatpush3.bf16.msra.mxu0 %v7077_v38 }
 0x340   : > { %6535 = vmatprep.subr.bf16.mxu0 %v7187_v60 }
 0x343   : > { %6536 = vmatpush3.bf16.msra.mxu0 %v7079_v50  ;;  %v7108_v50 = vld [vmem:[%s8588_s7 + $0x120] sm:$0xff]  }
 0x344   : > { %6553 = vmatprep.subr.bf16.mxu0 %v7187_v60 }
 0x3f9   : > { %v6447_v7 = vpop.f32.mrb[32].mxu0  ;;  %v6471_v48 = vpop.f32.mrb[144].mxu1 }
 0x3fa   : > { %v2817_v45 = vpop.f32.mrb[33].mxu0  ;;  %v6785_v46 = vadd.f32 %v6471_v48, %v6447_v7  ;;  %v3073_v10 = vpop.f32.mrb[145].mxu1 }
 0x3fb   : > { %v6448_v11 = vpop.f32.mrb[34].mxu0  ;;  %v6786_v12 = vadd.f32 %v3073_v10, %v2817_v45  ;;  %v6472_v52 = vpop.f32.mrb[146].mxu1  ;;  %v7084_v45 = vld [vmem:[%s8587_s6 + $0x10] sm:$0xff]   ;;  %v7086_v10 = vld [vmem:[%s8588_s7 + $0x80] sm:$0xff]  }
 0x3fc   : > { %v3121_v13 = vadd.f32 %v6785_v46, %v5323_v41  ;;  %v2820_v14 = vpop.f32.mrb[35].mxu0  ;;  %v6787_v25 = vadd.f32 %v6472_v52, %v6448_v11  ;;  %v3076_v0 = vpop.f32.mrb[147].mxu1  ;;  %v7085_v46 = vld [vmem:[%s8587_s6 + $0x18] sm:$0xff]   ;;  %v7087_v11 = vld [vmem:[%s8588_s7 + $0x88] sm:$0xff]  }
 0x3fd   : > { %v3119_v19 = vadd.f32 %v6786_v12, %v5323_v41  ;;  %v6788_v3 = vadd.f32 %v3076_v0, %v2820_v14  ;;  %v7088_v12 = vld [vmem:[%s8588_s7 + $0x90] sm:$0xff]   ;;  %v7089_v52 = vld [vmem:[%s8588_s7 + $0x98] sm:$0xff]   ;;  %v7091_v14 = vld [vmem:[%s8588_s7 + $0xc0] sm:$0xff]  }
 0x3fe   : > { %v3122_v63 = vadd.f32 %v6787_v25, %v5323_v41  ;;  %v3129_v21 = vmax.f32 %v3121_v13, 0.0  ;;  %v7090_v13 = vld [vmem:[%s8588_s7 + $0xa0] sm:$0xff]   ;;  %v7092_v25 = vld [vmem:[%s8588_s7 + $0xa8] sm:$0xff]  }
 0x3ff   : > { %v3120_v20 = vadd.f32 %v6788_v3, %v5323_v41  ;;  %v3127_v22 = vmax.f32 %v3119_v19, 0.0  ;;  %v7093_v0 = vld [vmem:[%s8588_s7 + $0xc8] sm:$0xff]   ;;  %v7094_v19 = vld [vmem:[%s8588_s7 + $0xb0] sm:$0xff]  }
 0x400   : > { %v3130_v2 = vmax.f32 %v3122_v63, 0.0  ;;  %v7095_v3 = vld [vmem:[%s8588_s7 + $0xd0] sm:$0xff]   ;;  %v7096_v63 = vld [vmem:[%s8588_s7 + $0xb8] sm:$0xff]  }
 0x401   : > { %v3128_v54 = vmax.f32 %v3120_v20, 0.0  ;;  %v6451_v58 = vpop.f32.mrb[36].mxu0  ;;  %v7097_v20 = vld [vmem:[%s8588_s7 + $0xd8] sm:$0xff]  }
 0x402   : > { %v8068_v59 = vpack.c.bf16 %v3130_v2, %v3129_v21  ;;  %v2833_v1 = vpop.f32.mrb[37].mxu0  ;;  %v7098_v21 = vld [vmem:[%s8588_s7 + $0xe0] sm:$0xff]   ;;  %v7099_v2 = vld [vmem:[%s8588_s7 + $0xe8] sm:$0xff]  }
 0x403   : > { %v8070_v39 = vpack.c.bf16 %v3128_v54, %v3127_v22  ;;  %v6452_v31 = vpop.f32.mrb[38].mxu0  ;;  %v7100_v22 = vld [vmem:[%s8588_s7 + $0xf0] sm:$0xff]   ;;  %v7101_v54 = vld [vmem:[%s8588_s7 + $0xf8] sm:$0xff]  }
 0x404   : > { %v2836_v23 = vpop.f32.mrb[39].mxu0 }
 0x405   : > { %6478 = vmatpush3.bf16.msra.mxu1 %v8070_v39 }
 0x406   : > { %6479 = vmatprep.subr.bf16.mxu1 %v7187_v60 }
 0x409   : > { %v6475_v18 = vpop.f32.mrb[148].mxu1  ;;  %6480 = vmatpush3.bf16.msra.mxu1 %v8068_v59 }
 0x40a   : > { %v6789_v24 = vadd.f32 %v6475_v18, %v6451_v58  ;;  %v3089_v8 = vpop.f32.mrb[149].mxu1  ;;  %6481 = vmatprep.subr.bf16.mxu1 %v7187_v60 }
 0x40b   : > { %v6790_v53 = vadd.f32 %v3089_v8, %v2833_v1  ;;  %v6476_v47 = vpop.f32.mrb[150].mxu1 }
 0x40c   : > { %v3125_v17 = vadd.f32 %v6789_v24, %v5323_v41  ;;  %v6791_v26 = vadd.f32 %v6476_v47, %v6452_v31  ;;  %v3092_v15 = vpop.f32.mrb[151].mxu1 }
 0x40d   : > { %v3123_v27 = vadd.f32 %v6790_v53, %v5323_v41  ;;  %v6792_v28 = vadd.f32 %v3092_v15, %v2836_v23 }
 0x40e   : > { %v3126_v16 = vadd.f32 %v6791_v26, %v5323_v41  ;;  %v3133_v30 = vmax.f32 %v3125_v17, 0.0 }
 0x40f   : > { %v3124_v29 = vadd.f32 %v6792_v28, %v5323_v41  ;;  %v3131_v34 = vmax.f32 %v3123_v27, 0.0 }
 0x410   : > { %v3134_v33 = vmax.f32 %v3126_v16, 0.0 }
 0x411   : > { %v3132_v35 = vmax.f32 %v3124_v29, 0.0 }
 0x412   : > { %v8076_v36 = vpack.c.bf16 %v3134_v33, %v3133_v30  ;;  %v7102_v33 = vld [vmem:[%s8587_s6 + $0x20] sm:$0xff]  }
 0x413   : > { %v8078_v9 = vpack.c.bf16 %v3132_v35, %v3131_v34 }
 0x415   : > { %6482 = vmatpush3.bf16.msra.mxu1 %v8078_v9 }
 0x416   : > { %6483 = vmatprep.subr.bf16.mxu1 %v7187_v60 }
 0x419   : > { %6484 = vmatpush3.bf16.msra.mxu1 %v8076_v36 }
 0x41a   : > { %6489 = vmatprep.subr.bf16.mxu1 %v7187_v60 }
 0x41c   : > { %6486 = vmatmul.mubr.msk.bf16.vlgmr.msra.gmra.mrb[152].mxu1 %vm3154_vm1, %v7066_v37  ;;  %v7104_v37 = vld [vmem:[%s8588_s7 + $0x100] sm:$0xff]  }
 0x41d   : > { %6490 = vmatpush3.bf16.msra.mxu1 %v8070_v39  ;;  %6497 = vmatprep.mubr.msk.bf16.mxu1 %vm7188_vm0, %v7187_v60 }
 0x41e   : > { %6491 = vmatprep.subr.bf16.mxu1 %v7187_v60 }
 0x421   : > { %6492 = vmatpush3.bf16.msra.mxu1 %v8068_v59 }
 0x422   : > { %6493 = vmatprep.subr.bf16.mxu1 %v7187_v60 }
 0x425   : > { %6494 = vmatpush3.bf16.msra.mxu1 %v8078_v9 }
 0x426   : > { %6495 = vmatprep.subr.bf16.mxu1 %v7187_v60 }
 0x429   : > { %6496 = vmatpush3.bf16.msra.mxu1 %v8076_v36 }
 0x42a   : > { %6501 = vmatprep.subr.bf16.mxu1 %v7187_v60 }
 0x42c   : > { %6498 = vmatmul.mubr.msk.bf16.vlgmr.msra.gmra.mrb[156].mxu1 %vm3154_vm1, %v7067_v40 }
 0x42d   : > { %6502 = vmatpush3.bf16.msra.mxu1 %v7072_v42  ;;  %6517 = vmatprep.mubr.msk.bf16.mxu1 %vm7188_vm0, %v7187_v60  ;;  %v7105_v42 = vld [vmem:[%s8588_s7 + $0x108] sm:$0xff]  }
 0x42e   : > { %6503 = vmatprep.subr.bf16.mxu1 %v7187_v60 }
 0x431   : > { %6504 = vmatpush3.bf16.msra.mxu1 %v7074_v43  ;;  %v7106_v43 = vld [vmem:[%s8588_s7 + $0x110] sm:$0xff]  }
 0x432   : > { %6505 = vmatprep.subr.bf16.mxu1 %v7187_v60 }
 0x435   : > { %6506 = vmatpush3.bf16.msra.mxu1 %v7076_v44  ;;  %v7103_v44 = vld [vmem:[%s8587_s6 + $0x28] sm:$0xff]  }
 0x436   : > { %6507 = vmatprep.subr.bf16.mxu1 %v7187_v60 }
 0x439   : > { %6508 = vmatpush3.bf16.msra.mxu1 %v7078_v49  ;;  %v7107_v49 = vld [vmem:[%s8588_s7 + $0x118] sm:$0xff]  }
 0x43a   : > { %6509 = vmatprep.subr.bf16.mxu1 %v7187_v60 }
 0x43d   : > { %6510 = vmatpush3.bf16.msra.mxu1 %v7080_v51  ;;  %v7109_v51 = vld [vmem:[%s8588_s7 + $0x140] sm:$0xff]  }
 0x43e   : > { %6511 = vmatprep.subr.bf16.mxu1 %v7187_v60 }
 0x441   : > { %6512 = vmatpush3.bf16.msra.mxu1 %v7081_v55  ;;  %v7110_v55 = vld [vmem:[%s8588_s7 + $0x128] sm:$0xff]  }
 0x442   : > { %6513 = vmatprep.subr.bf16.mxu1 %v7187_v60 }
 0x445   : > { %6514 = vmatpush3.bf16.msra.mxu1 %v7082_v56  ;;  %v7111_v56 = vld [vmem:[%s8588_s7 + $0x148] sm:$0xff]  }
 0x446   : > { %6515 = vmatprep.subr.bf16.mxu1 %v7187_v60 }
 0x449   : > { %6516 = vmatpush3.bf16.msra.mxu1 %v7083_v57  ;;  %v7112_v57 = vld [vmem:[%s8588_s7 + $0x130] sm:$0xff]  }
 0x44a   : > { %6541 = vmatprep.subr.bf16.mxu1 %v7187_v60 }
 0x4ef   : > { %v3192_v61 = vpop.f32.mrb[152].mxu1 }
 0x4f0   : > { %v6487_v62 = vpop.f32.mrb[153].mxu1 }
 0x4f1   : > { %v3195_v32 = vpop.f32.mrb[154].mxu1  ;;  %v7114_v62 = vld [vmem:[%s8588_s7 + $0x138] sm:$0xff]  }
 0x4f2   : > { %v3199_v4 = vpack.c.bf16 %v3195_v32, %v3192_v61  ;;  %v6488_v5 = vpop.f32.mrb[155].mxu1  ;;  %v7113_v61 = vld [vmem:[%s8588_s7 + $0x150] sm:$0xff]   ;;  %v7115_v32 = vld [vmem:[%s8588_s7 + $0x158] sm:$0xff]  }
 0x4f3   : > { %v7117_v5 = vld [vmem:[%s8588_s7 + $0x168] sm:$0xff]  }
 0x4f4   : > { %6538 = vmatmul.mubr.bf16.vlgmr.msra.gmra.mrb[40].mxu0 %v3199_v4  ;;  %v7116_v4 = vld [vmem:[%s8588_s7 + $0x160] sm:$0xff]  }
 0x4f5   : > { %6569 = vmatprep.mubr.msk.bf16.mxu0 %vm7188_vm0, %v7187_v60  ;;  %6554 = vmatpush3.bf16.msra.mxu0 %v7086_v10 }
 0x4f6   : > { %6555 = vmatprep.subr.bf16.mxu0 %v7187_v60 }
 0x4f9   : > { %6556 = vmatpush3.bf16.msra.mxu0 %v7087_v11 }
 0x4fa   : > { %6557 = vmatprep.subr.bf16.mxu0 %v7187_v60 }
 0x4fd   : > { %6558 = vmatpush3.bf16.msra.mxu0 %v7088_v12 }
 0x4fe   : > { %6559 = vmatprep.subr.bf16.mxu0 %v7187_v60 }
 0x4ff   : > { %v3261_v6 = vpop.f32.mrb[156].mxu1 }
 0x500   : > { %v6499_v38 = vpop.f32.mrb[157].mxu1 }
 0x501   : > { %v3264_v7 = vpop.f32.mrb[158].mxu1  ;;  %6560 = vmatpush3.bf16.msra.mxu0 %v7089_v52  ;;  %v7119_v38 = vld [vmem:[%s8588_s7 + $0x178] sm:$0xff]  }
 0x502   : > { %v3268_v48 = vpack.c.bf16 %v3264_v7, %v3261_v6  ;;  %v6500_v41 = vpop.f32.mrb[159].mxu1  ;;  %6561 = vmatprep.subr.bf16.mxu0 %v7187_v60  ;;  %v7118_v6 = vld [vmem:[%s8588_s7 + $0x170] sm:$0xff]  }
 0x504   : > { %6518 = vmatmul.mubr.bf16.vlgmr.msra.gmra.mrb[160].mxu1 %v3268_v48 }
 0x505   : > { %6542 = vmatpush3.bf16.msra.mxu1 %v8070_v39  ;;  %6549 = vmatprep.mubr.msk.bf16.mxu1 %vm7188_vm0, %v7187_v60 }
 0x506   : > { %6543 = vmatprep.subr.bf16.mxu1 %v7187_v60  ;;  %6562 = vmatpush3.bf16.msra.mxu0 %v7090_v13 }
 0x507   : > { %6563 = vmatprep.subr.bf16.mxu0 %v7187_v60 }
 0x509   : > { %6544 = vmatpush3.bf16.msra.mxu1 %v8068_v59 }
 0x50a   : > { %6545 = vmatprep.subr.bf16.mxu1 %v7187_v60  ;;  %6564 = vmatpush3.bf16.msra.mxu0 %v7092_v25 }
 0x50b   : > { %6565 = vmatprep.subr.bf16.mxu0 %v7187_v60 }
 0x50d   : > { %6546 = vmatpush3.bf16.msra.mxu1 %v8078_v9 }
 0x50e   : > { %6547 = vmatprep.subr.bf16.mxu1 %v7187_v60  ;;  %6566 = vmatpush3.bf16.msra.mxu0 %v7094_v19 }
 0x50f   : > { %6567 = vmatprep.subr.bf16.mxu0 %v7187_v60 }
 0x511   : > { %6548 = vmatpush3.bf16.msra.mxu1 %v8076_v36 }
 0x512   : > { %6573 = vmatprep.subr.bf16.mxu1 %v7187_v60  ;;  %6568 = vmatpush3.bf16.msra.mxu0 %v7096_v63 }
 0x513   : > { %6605 = vmatprep.subr.bf16.mxu0 %v7187_v60 }
 0x514   : > { %6550 = vmatmul.mubr.msk.bf16.vlgmr.msra.gmra.mrb[164].mxu1 %vm3154_vm1, %v7084_v45 }
 0x515   : > { %6574 = vmatpush3.bf16.msra.mxu1 %v8070_v39  ;;  %6581 = vmatprep.mubr.msk.bf16.mxu1 %vm7188_vm0, %v7187_v60 }
 0x516   : > { %6575 = vmatprep.subr.bf16.mxu1 %v7187_v60 }
 0x519   : > { %6576 = vmatpush3.bf16.msra.mxu1 %v8068_v59 }
 0x51a   : > { %6577 = vmatprep.subr.bf16.mxu1 %v7187_v60 }
 0x51d   : > { %6578 = vmatpush3.bf16.msra.mxu1 %v8078_v9 }
 0x51e   : > { %6579 = vmatprep.subr.bf16.mxu1 %v7187_v60 }
 0x521   : > { %6580 = vmatpush3.bf16.msra.mxu1 %v8076_v36 }
 0x522   : > { %6585 = vmatprep.subr.bf16.mxu1 %v7187_v60 }
 0x524   : > { %6582 = vmatmul.mubr.msk.bf16.vlgmr.msra.gmra.mrb[168].mxu1 %vm3154_vm1, %v7085_v46 }
 0x525   : > { %6601 = vmatprep.mubr.msk.bf16.mxu1 %vm7188_vm0, %v7187_v60  ;;  %6586 = vmatpush3.bf16.msra.mxu1 %v7091_v14 }
 0x526   : > { %6587 = vmatprep.subr.bf16.mxu1 %v7187_v60 }
 0x529   : > { %6588 = vmatpush3.bf16.msra.mxu1 %v7093_v0 }
 0x52a   : > { %6589 = vmatprep.subr.bf16.mxu1 %v7187_v60 }
 0x52d   : > { %6590 = vmatpush3.bf16.msra.mxu1 %v7095_v3 }
 0x52e   : > { %6591 = vmatprep.subr.bf16.mxu1 %v7187_v60 }
 0x531   : > { %6592 = vmatpush3.bf16.msra.mxu1 %v7097_v20 }
 0x532   : > { %6593 = vmatprep.subr.bf16.mxu1 %v7187_v60 }
 0x535   : > { %6594 = vmatpush3.bf16.msra.mxu1 %v7098_v21 }
 0x536   : > { %6595 = vmatprep.subr.bf16.mxu1 %v7187_v60 }
 0x539   : > { %6596 = vmatpush3.bf16.msra.mxu1 %v7099_v2 }
 0x53a   : > { %6597 = vmatprep.subr.bf16.mxu1 %v7187_v60 }
 0x53d   : > { %6598 = vmatpush3.bf16.msra.mxu1 %v7100_v22  ;;  %v7120_v22 = vld [vmem:[%s8587_s6 + $0x30] sm:$0xff]  }
 0x53e   : > { %6599 = vmatprep.subr.bf16.mxu1 %v7187_v60 }
 0x541   : > { %6600 = vmatpush3.bf16.msra.mxu1 %v7101_v54 }
 0x542   : > { %6637 = vmatprep.subr.bf16.mxu1 %v7187_v60 }
 0x5c7   : > { %v3457_v58 = vpop.f32.mrb[40].mxu0 }
 0x5c8   : > { %v6539_v1 = vpop.f32.mrb[41].mxu0 }
 0x5c9   : > { %v3460_v31 = vpop.f32.mrb[42].mxu0  ;;  %v7122_v1 = vld [vmem:[%s8588_s7 + $0x180] sm:$0xff]  }
 0x5ca   : > { %v6540_v23 = vpop.f32.mrb[43].mxu0 }
 0x5cb   : > { %v7123_v23 = vld [vmem:[%s8588_s7 + $0x188] sm:$0xff]  }
 0x5d7   : > { %v3368_v18 = vpop.f32.mrb[160].mxu1 }
 0x5d8   : > { %v8236_v24 = vadd.f32 %v3457_v58, %v3368_v18  ;;  %v6519_v8 = vpop.f32.mrb[161].mxu1  ;;  %v7124_v18 = vld [vmem:[%s8588_s7 + $0x190] sm:$0xff]  }
 0x5d9   : > { %v3371_v53 = vpop.f32.mrb[162].mxu1  ;;  %v7125_v8 = vld [vmem:[%s8588_s7 + $0x198] sm:$0xff]  }
 0x5da   : > { %v8238_v47 = vadd.f32 %v3460_v31, %v3371_v53  ;;  %v6520_v17 = vpop.f32.mrb[163].mxu1  ;;  %v7126_v53 = vld [vmem:[%s8588_s7 + $0x1a0] sm:$0xff]  }
 0x5db   : > { %v7128_v17 = vld [vmem:[%s8588_s7 + $0x1a8] sm:$0xff]  }
 0x5e7   : > { %v3509_v26 = vpop.f32.mrb[164].mxu1 }
 0x5e8   : > { %v6551_v15 = vpop.f32.mrb[165].mxu1 }
 0x5e9   : > { %v3512_v27 = vpop.f32.mrb[166].mxu1  ;;  %v7130_v15 = vld [vmem:[%s8588_s7 + $0x1b0] sm:$0xff]  }
 0x5ea   : > { %v3516_v28 = vpack.c.bf16 %v3512_v27, %v3509_v26  ;;  %v6552_v16 = vpop.f32.mrb[167].mxu1  ;;  %v7129_v26 = vld [vmem:[%s8588_s7 + $0x1c8] sm:$0xff]   ;;  %v7131_v27 = vld [vmem:[%s8588_s7 + $0x1d0] sm:$0xff]  }
 0x5eb   : > { %v7133_v16 = vld [vmem:[%s8588_s7 + $0x1d8] sm:$0xff]  }
 0x5ec   : > { %6570 = vmatmul.mubr.bf16.vlgmr.msra.gmra.mrb[44].mxu0 %v3516_v28  ;;  %v7132_v28 = vld [vmem:[%s8588_s7 + $0x1b8] sm:$0xff]  }
 0x5ed   : > { %6606 = vmatpush3.bf16.msra.mxu0 %v8070_v39  ;;  %6613 = vmatprep.mubr.msk.bf16.mxu0 %vm7188_vm0, %v7187_v60 }
 0x5ee   : > { %6607 = vmatprep.subr.bf16.mxu0 %v7187_v60 }
 0x5f1   : > { %6608 = vmatpush3.bf16.msra.mxu0 %v8068_v59 }
 0x5f2   : > { %6609 = vmatprep.subr.bf16.mxu0 %v7187_v60 }
 0x5f5   : > { %6610 = vmatpush3.bf16.msra.mxu0 %v8078_v9 }
 0x5f6   : > { %6611 = vmatprep.subr.bf16.mxu0 %v7187_v60 }
 0x5f7   : > { %v3670_v29 = vpop.f32.mrb[168].mxu1 }
 0x5f8   : > { %v6583_v30 = vpop.f32.mrb[169].mxu1 }
 0x5f9   : > { %6612 = vmatpush3.bf16.msra.mxu0 %v8076_v36  ;;  %v3673_v34 = vpop.f32.mrb[170].mxu1  ;;  %v7135_v30 = vld [vmem:[%s8588_s7 + $0x1e8] sm:$0xff]  }
 0x5fa   : > { %v3677_v35 = vpack.c.bf16 %v3673_v34, %v3670_v29  ;;  %6617 = vmatprep.subr.bf16.mxu0 %v7187_v60  ;;  %v6584_v40 = vpop.f32.mrb[171].mxu1  ;;  %v7134_v29 = vld [vmem:[%s8588_s7 + $0x1e0] sm:$0xff]   ;;  %v7137_v34 = vld [vmem:[%s8588_s7 + $0x1f8] sm:$0xff]  }
 0x5fc   : > { %6614 = vmatmul.mubr.msk.bf16.vlgmr.msra.gmra.mrb[48].mxu0 %vm3154_vm1, %v7102_v33  ;;  %6602 = vmatmul.mubr.bf16.vlgmr.msra.gmra.mrb[172].mxu1 %v3677_v35  ;;  %v7136_v33 = vld [vmem:[%s8588_s7 + $0x1f0] sm:$0xff]  }
 0x5fd   : > { %6638 = vmatpush3.bf16.msra.mxu1 %v8070_v39  ;;  %6645 = vmatprep.mubr.msk.bf16.mxu1 %vm7188_vm0, %v7187_v60 }
 0x5fe   : > { %6639 = vmatprep.subr.bf16.mxu1 %v7187_v60  ;;  %6618 = vmatpush3.bf16.msra.mxu0 %v7104_v37 }
 0x5ff   : > { %6619 = vmatprep.subr.bf16.mxu0 %v7187_v60  ;;  %6633 = vmatprep.mubr.msk.bf16.mxu0 %vm7188_vm0, %v7187_v60 }
 0x601   : > { %6640 = vmatpush3.bf16.msra.mxu1 %v8068_v59 }
 0x602   : > { %6641 = vmatprep.subr.bf16.mxu1 %v7187_v60  ;;  %6620 = vmatpush3.bf16.msra.mxu0 %v7105_v42 }
 0x603   : > { %6621 = vmatprep.subr.bf16.mxu0 %v7187_v60 }
 0x605   : > { %6642 = vmatpush3.bf16.msra.mxu1 %v8078_v9 }
 0x606   : > { %6643 = vmatprep.subr.bf16.mxu1 %v7187_v60  ;;  %6622 = vmatpush3.bf16.msra.mxu0 %v7106_v43 }
 0x607   : > { %6623 = vmatprep.subr.bf16.mxu0 %v7187_v60 }
 0x609   : > { %6644 = vmatpush3.bf16.msra.mxu1 %v8076_v36 }
 0x60a   : > { %6649 = vmatprep.subr.bf16.mxu1 %v7187_v60  ;;  %6624 = vmatpush3.bf16.msra.mxu0 %v7107_v49 }
 0x60b   : > { %6625 = vmatprep.subr.bf16.mxu0 %v7187_v60 }
 0x60c   : > { %6646 = vmatmul.mubr.msk.bf16.vlgmr.msra.gmra.mrb[176].mxu1 %vm3154_vm1, %v7103_v44 }
 0x60d   : > { %6665 = vmatprep.mubr.msk.bf16.mxu1 %vm7188_vm0, %v7187_v60  ;;  %6650 = vmatpush3.bf16.msra.mxu1 %v7109_v51 }
 0x60e   : > { %6626 = vmatpush3.bf16.msra.mxu0 %v7108_v50  ;;  %6651 = vmatprep.subr.bf16.mxu1 %v7187_v60 }
 0x60f   : > { %6627 = vmatprep.subr.bf16.mxu0 %v7187_v60 }
 0x611   : > { %6652 = vmatpush3.bf16.msra.mxu1 %v7111_v56 }
 0x612   : > { %6628 = vmatpush3.bf16.msra.mxu0 %v7110_v55  ;;  %6653 = vmatprep.subr.bf16.mxu1 %v7187_v60 }
 0x613   : > { %6629 = vmatprep.subr.bf16.mxu0 %v7187_v60 }
 0x615   : > { %6654 = vmatpush3.bf16.msra.mxu1 %v7113_v61 }
 0x616   : > { %6630 = vmatpush3.bf16.msra.mxu0 %v7112_v57  ;;  %6655 = vmatprep.subr.bf16.mxu1 %v7187_v60 }
 0x617   : > { %6631 = vmatprep.subr.bf16.mxu0 %v7187_v60 }
 0x619   : > { %6656 = vmatpush3.bf16.msra.mxu1 %v7115_v32 }
 0x61a   : > { %6632 = vmatpush3.bf16.msra.mxu0 %v7114_v62  ;;  %6657 = vmatprep.subr.bf16.mxu1 %v7187_v60 }
 0x61b   : > { %6669 = vmatprep.subr.bf16.mxu0 %v7187_v60 }
 0x61d   : > { %6658 = vmatpush3.bf16.msra.mxu1 %v7116_v4 }
 0x61e   : > { %6659 = vmatprep.subr.bf16.mxu1 %v7187_v60 }
 0x621   : > { %6660 = vmatpush3.bf16.msra.mxu1 %v7117_v5 }
 0x622   : > { %6661 = vmatprep.subr.bf16.mxu1 %v7187_v60 }
 0x625   : > { %6662 = vmatpush3.bf16.msra.mxu1 %v7118_v6 }
 0x626   : > { %6663 = vmatprep.subr.bf16.mxu1 %v7187_v60 }
 0x629   : > { %6664 = vmatpush3.bf16.msra.mxu1 %v7119_v38 }
 0x62a   : > { %6701 = vmatprep.subr.bf16.mxu1 %v7187_v60 }
 0x6bf   : > { %v3616_v7 = vpop.f32.mrb[44].mxu0 }
 0x6c0   : > { %v3623_v48 = vadd.f32 %v3616_v7, %v8236_v24  ;;  %v6571_v41 = vpop.f32.mrb[45].mxu0  ;;  %v7121_v24 = vld [vmem:[%s8587_s6 + $0x38] sm:$0xff]   ;;  %v7138_v7 = vld [vmem:[%s8587_s6 + $0x40] sm:$0xff]  }
 0x6c1   : > { %v3619_v45 = vpop.f32.mrb[46].mxu0 }
 0x6c2   : > { %v3624_v46 = vadd.f32 %v3619_v45, %v8238_v47  ;;  %v6572_v10 = vpop.f32.mrb[47].mxu0  ;;  %v7127_v47 = vld [vmem:[%s8588_s7 + $0x1c0] sm:$0xff]   ;;  %v7142_v45 = vld [vmem:[%s8588_s7 + $0x218] sm:$0xff]  }
 0x6c3   : > { %v7144_v10 = vld [vmem:[%s8588_s7 + $0x228] sm:$0xff]  }
 0x6cf   : > { %v3831_v11 = vpop.f32.mrb[48].mxu0  ;;  %v3777_v12 = vpop.f32.mrb[172].mxu1 }
 0x6d0   : > { %v8338_v52 = vadd.f32 %v3777_v12, %v3623_v48  ;;  %v6615_v13 = vpop.f32.mrb[49].mxu0  ;;  %v6603_v14 = vpop.f32.mrb[173].mxu1  ;;  %v7139_v48 = vld [vmem:[%s8588_s7 + $0x200] sm:$0xff]   ;;  %v7146_v12 = vld [vmem:[%s8588_s7 + $0x238] sm:$0xff]  }
 0x6d1   : > { %v3834_v25 = vpop.f32.mrb[50].mxu0  ;;  %v3780_v0 = vpop.f32.mrb[174].mxu1  ;;  %v7149_v13 = vld [vmem:[%s8590_s9 + $0x4] ss:$12 sps:$4 sm:$0xff]   ;;  %v7153_v14 = vld [vmem:[%s8590_s9 + $0x1c] ss:$12 sps:$4 sm:$0xff]  }
 0x6d2   : > { %v3838_v19 = vpack.c.bf16 %v3834_v25, %v3831_v11  ;;  %v8340_v3 = vadd.f32 %v3780_v0, %v3624_v46  ;;  %v6616_v63 = vpop.f32.mrb[51].mxu0  ;;  %v6604_v20 = vpop.f32.mrb[175].mxu1  ;;  %v7143_v46 = vld [vmem:[%s8588_s7 + $0x220] sm:$0xff]   ;;  %v7145_v11 = vld [vmem:[%s8588_s7 + $0x230] sm:$0xff]  }
 0x6d3   : > { %v7151_v25 = vld [vmem:[%s8590_s9 + $0x18] ss:$12 sps:$4 sm:$0xff]  }
 0x6d4   : > { %6634 = vmatmul.mubr.bf16.vlgmr.msra.gmra.mrb[52].mxu0 %v3838_v19 }
 0x6d5   : > { %6670 = vmatpush3.bf16.msra.mxu0 %v8070_v39  ;;  %6677 = vmatprep.mubr.msk.bf16.mxu0 %vm7188_vm0, %v7187_v60 }
 0x6d6   : > { %6671 = vmatprep.subr.bf16.mxu0 %v7187_v60 }
 0x6d9   : > { %6672 = vmatpush3.bf16.msra.mxu0 %v8068_v59 }
 0x6da   : > { %6673 = vmatprep.subr.bf16.mxu0 %v7187_v60 }
 0x6dd   : > { %6674 = vmatpush3.bf16.msra.mxu0 %v8078_v9 }
 0x6de   : > { %6675 = vmatprep.subr.bf16.mxu0 %v7187_v60 }
 0x6df   : > { %v3992_v21 = vpop.f32.mrb[176].mxu1 }
 0x6e0   : > { %v6647_v2 = vpop.f32.mrb[177].mxu1 }
 0x6e1   : > { %6676 = vmatpush3.bf16.msra.mxu0 %v8076_v36  ;;  %v3995_v54 = vpop.f32.mrb[178].mxu1 }
 0x6e2   : > { %v3999_v58 = vpack.c.bf16 %v3995_v54, %v3992_v21  ;;  %6681 = vmatprep.subr.bf16.mxu0 %v7187_v60  ;;  %v6648_v31 = vpop.f32.mrb[179].mxu1 }
 0x6e4   : > { %6678 = vmatmul.mubr.msk.bf16.vlgmr.msra.gmra.mrb[56].mxu0 %vm3154_vm1, %v7120_v22  ;;  %6666 = vmatmul.mubr.bf16.vlgmr.msra.gmra.mrb[180].mxu1 %v3999_v58 }
 0x6e5   : > { %6702 = vmatpush3.bf16.msra.mxu1 %v8070_v39  ;;  %6709 = vmatprep.mubr.msk.bf16.mxu1 %vm7188_vm0, %v7187_v60 }
 0x6e6   : > { %6703 = vmatprep.subr.bf16.mxu1 %v7187_v60  ;;  %6682 = vmatpush3.bf16.msra.mxu0 %v7122_v1 }
 0x6e7   : > { %6683 = vmatprep.subr.bf16.mxu0 %v7187_v60  ;;  %6697 = vmatprep.mubr.msk.bf16.mxu0 %vm7188_vm0, %v7187_v60 }
 0x6e9   : > { %6704 = vmatpush3.bf16.msra.mxu1 %v8068_v59 }
 0x6ea   : > { %6705 = vmatprep.subr.bf16.mxu1 %v7187_v60  ;;  %6684 = vmatpush3.bf16.msra.mxu0 %v7123_v23 }
 0x6eb   : > { %6685 = vmatprep.subr.bf16.mxu0 %v7187_v60 }
 0x6ed   : > { %6706 = vmatpush3.bf16.msra.mxu1 %v8078_v9 }
 0x6ee   : > { %6707 = vmatprep.subr.bf16.mxu1 %v7187_v60  ;;  %6686 = vmatpush3.bf16.msra.mxu0 %v7124_v18  ;;  %v7150_v18 = vld [vmem:[%s8590_s9 + $0x8] ss:$12 sps:$4 sm:$0xff]  }
 0x6ef   : > { %6687 = vmatprep.subr.bf16.mxu0 %v7187_v60 }
 0x6f1   : > { %6708 = vmatpush3.bf16.msra.mxu1 %v8076_v36 }
 0x6f2   : > { %6713 = vmatprep.subr.bf16.mxu1 %v7187_v60  ;;  %6688 = vmatpush3.bf16.msra.mxu0 %v7125_v8 }
 0x6f3   : > { %6689 = vmatprep.subr.bf16.mxu0 %v7187_v60 }
 0x6f4   : > { %6710 = vmatmul.mubr.msk.bf16.vlgmr.msra.gmra.mrb[184].mxu1 %vm3154_vm1, %v7121_v24 }
 0x6f5   : > { %6729 = vmatprep.mubr.msk.bf16.mxu1 %vm7188_vm0, %v7187_v60  ;;  %6714 = vmatpush3.bf16.msra.mxu1 %v7127_v47 }
 0x6f6   : > { %6690 = vmatpush3.bf16.msra.mxu0 %v7126_v53  ;;  %6715 = vmatprep.subr.bf16.mxu1 %v7187_v60 }
 0x6f7   : > { %6691 = vmatprep.subr.bf16.mxu0 %v7187_v60 }
 0x6f9   : > { %6716 = vmatpush3.bf16.msra.mxu1 %v7129_v26  ;;  %v7157_v26 = vld [vmem:[%s8590_s9 + $0x34] ss:$12 sps:$4 sm:$0xff]  }
 0x6fa   : > { %6692 = vmatpush3.bf16.msra.mxu0 %v7128_v17  ;;  %6717 = vmatprep.subr.bf16.mxu1 %v7187_v60  ;;  %v7154_v17 = vld [vmem:[%s8590_s9 + $0x20] ss:$12 sps:$4 sm:$0xff]  }
 0x6fb   : > { %6693 = vmatprep.subr.bf16.mxu0 %v7187_v60 }
 0x6fd   : > { %6718 = vmatpush3.bf16.msra.mxu1 %v7131_v27  ;;  %v7158_v27 = vld [vmem:[%s8590_s9 + $0x38] ss:$12 sps:$4 sm:$0xff]  }
 0x6fe   : > { %6694 = vmatpush3.bf16.msra.mxu0 %v7130_v15  ;;  %6719 = vmatprep.subr.bf16.mxu1 %v7187_v60  ;;  %v7155_v15 = vld [vmem:[%s8590_s9 + $0x30] ss:$12 sps:$4 sm:$0xff]  }
 0x6ff   : > { %6695 = vmatprep.subr.bf16.mxu0 %v7187_v60 }
 0x701   : > { %6720 = vmatpush3.bf16.msra.mxu1 %v7133_v16  ;;  %v7159_v16 = vld [vmem:[%s8590_s9 + $0x48] ss:$12 sps:$4 sm:$0xff]  }
 0x702   : > { %6696 = vmatpush3.bf16.msra.mxu0 %v7132_v28  ;;  %6721 = vmatprep.subr.bf16.mxu1 %v7187_v60  ;;  %v7161_v28 = vld [vmem:[%s8590_s9 + $0x4c] ss:$12 sps:$4 sm:$0xff]  }
 0x703   : > { %6733 = vmatprep.subr.bf16.mxu0 %v7187_v60 }
 0x705   : > { %6722 = vmatpush3.bf16.msra.mxu1 %v7134_v29  ;;  %v7162_v29 = vld [vmem:[%s8590_s9 + $0x50] ss:$12 sps:$4 sm:$0xff]  }
 0x706   : > { %6723 = vmatprep.subr.bf16.mxu1 %v7187_v60 }
 0x709   : > { %6724 = vmatpush3.bf16.msra.mxu1 %v7135_v30  ;;  %v7165_v30 = vld [vmem:[%s8590_s9 + $0x64] ss:$12 sps:$4 sm:$0xff]  }
 0x70a   : > { %6725 = vmatprep.subr.bf16.mxu1 %v7187_v60 }
 0x70d   : > { %6726 = vmatpush3.bf16.msra.mxu1 %v7136_v33  ;;  %v7163_v33 = vld [vmem:[%s8590_s9 + $0x60] ss:$12 sps:$4 sm:$0xff]  }
 0x70e   : > { %6727 = vmatprep.subr.bf16.mxu1 %v7187_v60 }
 0x711   : > { %6728 = vmatpush3.bf16.msra.mxu1 %v7137_v34  ;;  %v7166_v34 = vld [vmem:[%s8590_s9 + $0x68] ss:$12 sps:$4 sm:$0xff]  }
 0x712   : > { %4789 = vmatprep.subr.bf16.mxu1 %v7149_v13  ;;  %v4644_v13 = vld [vmem:[%s8591_s10] sm:$0x7] }
 0x7a7   : > { %v3938_v35 = vpop.f32.mrb[52].mxu0 }
 0x7a8   : > { %v3945_v37 = vadd.f32 %v3938_v35, %v8338_v52  ;;  %v6635_v40 = vpop.f32.mrb[53].mxu0  ;;  %v7147_v52 = vld [vmem:[%s8590_s9] ss:$12 sps:$4 sm:$0xff]   ;;  %v7169_v35 = vld [vmem:[%s8590_s9 + $0x7c] ss:$12 sps:$4 sm:$0xff]  }
 0x7a9   : > { %v3941_v42 = vpop.f32.mrb[54].mxu0  ;;  %v7170_v40 = vld [vmem:[%s8590_s9 + $0x80] ss:$12 sps:$4 sm:$0xff]  }
 0x7aa   : > { %v3946_v43 = vadd.f32 %v3941_v42, %v8340_v3  ;;  %v6636_v44 = vpop.f32.mrb[55].mxu0  ;;  %v7171_v42 = vld [vmem:[%s8590_s9 + $0x90] ss:$12 sps:$4 sm:$0xff]  }
 0x7ab   : > { %v7174_v44 = vld [vmem:[%s8590_s9 + $0x98] ss:$12 sps:$4 sm:$0xff]  }
 0x7b7   : > { %v4153_v49 = vpop.f32.mrb[56].mxu0  ;;  %v4099_v50 = vpop.f32.mrb[180].mxu1 }
 0x7b8   : > { %v4106_v51 = vadd.f32 %v4099_v50, %v3945_v37  ;;  %v6679_v55 = vpop.f32.mrb[57].mxu0  ;;  %v6667_v56 = vpop.f32.mrb[181].mxu1  ;;  %v7167_v37 = vld [vmem:[%s8590_s9 + $0x78] ss:$12 sps:$4 sm:$0xff]   ;;  %v7175_v50 = vld [vmem:[%s8590_s9 + $0xa8] ss:$12 sps:$4 sm:$0xff]  }
 0x7b9   : > { %v4156_v57 = vpop.f32.mrb[58].mxu0  ;;  %v4102_v61 = vpop.f32.mrb[182].mxu1  ;;  %v7189_v55 = vmov 0  }
 0x7ba   : > { %v4160_v62 = vpack.c.bf16 %v4156_v57, %v4153_v49  ;;  %v4107_v32 = vadd.f32 %v4102_v61, %v3946_v43  ;;  %v6680_v4 = vpop.f32.mrb[59].mxu0  ;;  %v6668_v5 = vpop.f32.mrb[183].mxu1  ;;  %v7173_v43 = vld [vmem:[%s8590_s9 + $0x94] ss:$12 sps:$4 sm:$0xff]   ;;  %v7177_v49 = vld [vmem:[%s8590_s9 + $0xac] ss:$12 sps:$4 sm:$0xff]  }
 0x7bb   : > { %v5558_v57 = vld [vmem:[%s8589_s8] ss:$0 sm:$0xff] }
 0x7bc   : > { %6698 = vmatmul.mubr.bf16.vlgmr.msra.gmra.mrb[60].mxu0 %v4160_v62 }
 0x7bd   : > { %6734 = vmatpush3.bf16.msra.mxu0 %v8070_v39  ;;  %6741 = vmatprep.mubr.msk.bf16.mxu0 %vm7188_vm0, %v7187_v60 }
 0x7be   : > { %6735 = vmatprep.subr.bf16.mxu0 %v7187_v60 }
 0x7c1   : > { %6736 = vmatpush3.bf16.msra.mxu0 %v8068_v59 }
 0x7c2   : > { %6737 = vmatprep.subr.bf16.mxu0 %v7187_v60 }
 0x7c5   : > { %6738 = vmatpush3.bf16.msra.mxu0 %v8078_v9  ;;  %v7140_v9 = vld [vmem:[%s8588_s7 + $0x208] sm:$0xff]  }
 0x7c6   : > { %6739 = vmatprep.subr.bf16.mxu0 %v7187_v60 }
 0x7c7   : > { %v4314_v6 = vpop.f32.mrb[184].mxu1 }
 0x7c8   : > { %v6711_v38 = vpop.f32.mrb[185].mxu1 }
 0x7c9   : > { %6740 = vmatpush3.bf16.msra.mxu0 %v8076_v36  ;;  %v4317_v39 = vpop.f32.mrb[186].mxu1  ;;  %v7141_v36 = vld [vmem:[%s8588_s7 + $0x210] sm:$0xff]  }
 0x7ca   : > { %v4321_v59 = vpack.c.bf16 %v4317_v39, %v4314_v6  ;;  %6745 = vmatprep.subr.bf16.mxu0 %v7187_v60  ;;  %v6712_v41 = vpop.f32.mrb[187].mxu1 }
 0x7cc   : > { %6742 = vmatmul.mubr.msk.bf16.vlgmr.msra.gmra.mrb[64].mxu0 %vm3154_vm1, %v7138_v7  ;;  %6730 = vmatmul.mubr.bf16.vlgmr.msra.gmra.mrb[188].mxu1 %v4321_v59 }
 0x7cd   : > { %6746 = vmatpush3.bf16.msra.mxu0 %v7139_v48  ;;  %6761 = vmatprep.mubr.msk.bf16.mxu0 %vm7188_vm0, %v7187_v60 }
 0x7ce   : > { %6747 = vmatprep.subr.bf16.mxu0 %v7187_v60  ;;  %4790 = vmatpush1.bf16.msra.mxu1 %v7147_v52 }
 0x7cf   : > { %4791 = vmatprep.subr.bf16.mxu1 %v7153_v14  ;;  %4821 = vmatprep.mubr.bf16.mxu1 %v7189_v55 }
 0x7d1   : > { %6748 = vmatpush3.bf16.msra.mxu0 %v7140_v9 }
 0x7d2   : > { %6749 = vmatprep.subr.bf16.mxu0 %v7187_v60  ;;  %4792 = vmatpush1.bf16.msra.mxu1 %v7151_v25  ;;  %v7190_v25 = vmov 1966171168  }
 0x7d3   : > { %4793 = vmatprep.subr.bf16.mxu1 %v7157_v26 }
 0x7d5   : > { %6750 = vmatpush3.bf16.msra.mxu0 %v7141_v36 }
 0x7d6   : > { %6751 = vmatprep.subr.bf16.mxu0 %v7187_v60  ;;  %4794 = vmatpush1.bf16.msra.mxu1 %v7155_v15 }
 0x7d7   : > { %4795 = vmatprep.subr.bf16.mxu1 %v7161_v28 }
 0x7d9   : > { %6752 = vmatpush3.bf16.msra.mxu0 %v7142_v45 }
 0x7da   : > { %6753 = vmatprep.subr.bf16.mxu0 %v7187_v60  ;;  %4796 = vmatpush1.bf16.msra.mxu1 %v7159_v16 }
 0x7db   : > { %4797 = vmatprep.subr.bf16.mxu1 %v7165_v30 }
 0x7dd   : > { %6754 = vmatpush3.bf16.msra.mxu0 %v7143_v46 }
 0x7de   : > { %6755 = vmatprep.subr.bf16.mxu0 %v7187_v60  ;;  %4798 = vmatpush1.bf16.msra.mxu1 %v7163_v33 }
 0x7df   : > { %4799 = vmatprep.subr.bf16.mxu1 %v7169_v35 }
 0x7e1   : > { %6756 = vmatpush3.bf16.msra.mxu0 %v7144_v10 }
 0x7e2   : > { %6757 = vmatprep.subr.bf16.mxu0 %v7187_v60  ;;  %4800 = vmatpush1.bf16.msra.mxu1 %v7167_v37 }
 0x7e3   : > { %4801 = vmatprep.subr.bf16.mxu1 %v7173_v43 }
 0x7e5   : > { %6758 = vmatpush3.bf16.msra.mxu0 %v7145_v11  ;;  %v4774_v11 = vlaneseq }
 0x7e6   : > { %6759 = vmatprep.subr.bf16.mxu0 %v7187_v60  ;;  %4802 = vmatpush1.bf16.msra.mxu1 %v7171_v42 }
 0x7e7   : > { %4803 = vmatprep.subr.bf16.mxu1 %v7177_v49  ;;  %vm4899_vm2 = vcmp.lt.s32.totalorder %v4774_v11, 384 }
 0x7e9   : > { %6760 = vmatpush3.bf16.msra.mxu0 %v7146_v12  ;;  %v4775_v12 = vshrl.u32 %v4774_v11, 7 }
 0x7ea   : > { %6765 = vmatprep.subr.bf16.mxu0 %v7187_v60  ;;  %4804 = vmatpush1.bf16.msra.mxu1 %v7175_v50 }
 0x7eb   : > { %v4776_v52 = vsub.s32 0, %v4775_v12  ;;  %v4784_v14 = vsub.s32 2, %v4775_v12 }
 0x88f   : > { %v4260_v0 = vpop.f32.mrb[60].mxu0 }
 0x890   : > { %v4267_v19 = vadd.f32 %v4260_v0, %v4106_v51  ;;  %v6699_v3 = vpop.f32.mrb[61].mxu0  ;;  %v7178_v51 = vld [vmem:[%s8590_s9 + $0xb0] ss:$12 sps:$4 sm:$0xff]   ;;  %v4875_v0 = vunpack.c.l.s4 %v7190_v25 }
 0x891   : > { %v4263_v63 = vpop.f32.mrb[62].mxu0  ;;  %v4777_v3 = vrot.slane %v4644_v13, %v4776_v52 }
 0x892   : > { %v4268_v20 = vadd.f32 %v4263_v63, %v4107_v32  ;;  %v6700_v21 = vpop.f32.mrb[63].mxu0  ;;  %v4785_v63 = vrot.slane %v4644_v13, %v4784_v14 }
 0x89f   : > { %v4475_v2 = vpop.f32.mrb[64].mxu0  ;;  %v4421_v22 = vpop.f32.mrb[188].mxu1 }
 0x8a0   : > { %v4428_v54 = vadd.f32 %v4421_v22, %v4267_v19  ;;  %v6743_v58 = vpop.f32.mrb[65].mxu0  ;;  %v6731_v1 = vpop.f32.mrb[189].mxu1  ;;  %v4780_v19 = vsub.s32 1, %v4775_v12 }
 0x8a1   : > { %v4478_v31 = vpop.f32.mrb[66].mxu0  ;;  %v4424_v23 = vpop.f32.mrb[190].mxu1 }
 0x8a2   : > { %v4482_v24 = vpack.c.bf16 %v4478_v31, %v4475_v2  ;;  %v4429_v8 = vadd.f32 %v4424_v23, %v4268_v20  ;;  %v6744_v53 = vpop.f32.mrb[67].mxu0  ;;  %v6732_v47 = vpop.f32.mrb[191].mxu1  ;;  %v4876_v20 = vunpack.c.0.s8 %v4875_v0  ;;  %v4781_v21 = vrot.slane %v4644_v13, %v4780_v19 }
 0x8a4   : > { %6762 = vmatmul.mubr.bf16.vlgmr.msra.gmra.mrb[68].mxu0 %v4482_v24  ;;  %v4879_v23 = vsub.s32 %v4876_v20, %v4775_v12 }
 0x8a5   : > { %6766 = vmatpush3.bf16.msra.mxu0 %v7150_v18  ;;  %6781 = vmatprep.mubr.msk.bf16.mxu0 %vm7188_vm0, %v7187_v60 }
 0x8a6   : > { %6767 = vmatprep.subr.bf16.mxu0 %v7187_v60 }
 0x8a9   : > { %6768 = vmatpush3.bf16.msra.mxu0 %v7154_v17 }
 0x8aa   : > { %6769 = vmatprep.subr.bf16.mxu0 %v7187_v60 }
 0x8ad   : > { %6770 = vmatpush3.bf16.msra.mxu0 %v7158_v27 }
 0x8ae   : > { %6771 = vmatprep.subr.bf16.mxu0 %v7187_v60 }
 0x8b1   : > { %6772 = vmatpush3.bf16.msra.mxu0 %v7162_v29 }
 0x8b2   : > { %6773 = vmatprep.subr.bf16.mxu0 %v7187_v60 }
 0x8b5   : > { %6774 = vmatpush3.bf16.msra.mxu0 %v7166_v34 }
 0x8b6   : > { %6775 = vmatprep.subr.bf16.mxu0 %v7187_v60 }
 0x8b9   : > { %6776 = vmatpush3.bf16.msra.mxu0 %v7170_v40 }
 0x8ba   : > { %6777 = vmatprep.subr.bf16.mxu0 %v7187_v60 }
 0x8bd   : > { %6778 = vmatpush3.bf16.msra.mxu0 %v7174_v44 }
 0x8be   : > { %6779 = vmatprep.subr.bf16.mxu0 %v7187_v60 }
 0x8c1   : > { %6780 = vmatpush3.bf16.msra.mxu0 %v7178_v51 }
 0x977   : > { %v4582_v56 = vpop.f32.mrb[68].mxu0 }
 0x978   : > { %v4589_v61 = vadd.f32 %v4582_v56, %v4428_v54  ;;  %v6763_v62 = vpop.f32.mrb[69].mxu0 }
 0x979   : > { %v4585_v32 = vpop.f32.mrb[70].mxu0 }
 0x97a   : > { %v4598_v4 = vadd.f32 %v5558_v57, %v4589_v61  ;;  %v4590_v5 = vadd.f32 %v4585_v32, %v4429_v8  ;;  %v6764_v6 = vpop.f32.mrb[71].mxu0 }
 0x97c   : > { %v4599_v38 = vadd.f32 %v5558_v57, %v4590_v5  ;;  %v4600_v7 = vmax.f32 %v4598_v4, 0.0 }
 0x97e   : > { %v4601_v39 = vmax.f32 %v4599_v38, 0.0 }
 0x980   : > { %v4602_v48 = vadd.f32 %v4601_v39, %v4600_v7 }
 0x982   : > { %v4603_v60 = vrot.slane %v4602_v48, 4 }
 0x984   : > { %v4604_v59 = vadd.f32 %v4603_v60, %v4602_v48 }
 0x986   : > { %v4605_v41 = vrot.slane %v4604_v59, 2 }
 0x988   : > { %v4606_v9 = vadd.f32 %v4605_v41, %v4604_v59 }
 0x98a   : > { %v4607_v36 = vrot.slane %v4606_v9, 1 }
 0x98c   : > { %v4608_v45 = vadd.f32 %v4607_v36, %v4606_v9 }
 0x98e   : > { %v4610_v46 = vmul.f32 0.0625, %v4608_v45 }
 0x990   : > { %v4611_v10 = vpack.c.bf16 %v4610_v46, %v4610_v46 }
 0x992   : > { %4822 = vmatmul.mubr.bf16.vlgmr.msra.gmra.mrb[192].mxu1 %v4611_v10  ;;  %6782 = vmatmul.mubr.bf16.vlgmr.msra.gmra.mrb[72].mxu0 %v4611_v10 }
 0xa65   : > { %v4823_v2 = vpop.f32.mrb[192].mxu1  ;;  %v4864_v22 = vpop.f32.mrb[72].mxu0 }
 0xa66   : > { %v4824_v54 = vadd.f32 %v4823_v2, %v4777_v3  ;;  %v4825_v58 = vpop.f32.mrb[193].mxu1  ;;  %v6783_v1 = vpop.f32.mrb[73].mxu0  ;;  %v4865_v31 = vadd.f32 %v4864_v22, %v4785_v63 }
 0xa67   : > { %v4826_v18 = vadd.f32 %v4825_v58, %v4781_v21  ;;  %v4827_v24 = vpop.f32.mrb[194].mxu1  ;;  %v4867_v8 = vpop.f32.mrb[74].mxu0 }
 0xa68   : > { %v4828_v53 = vpop.f32.mrb[195].mxu1  ;;  %v6784_v47 = vpop.f32.mrb[75].mxu0  ;;  %v4887_v26 = vrot.slane %v4865_v31, %v4879_v23 }
 0xa69   : > { %v4873_v17 = vcombine.low %v4824_v54, %v4826_v18 }
 0xa6b   : > { %v4880_v15 = vrot.slane %v4873_v17, %v4879_v23 }
 0xa6d   : > { %v4888_v27 = vcombine.low %v4880_v15, %v4887_v26 }
 0xa6f   : > { %v4895_v28 = vrot.slane %v4888_v27, %v4879_v23 }
 0xa71   : > { %4901 = vst.msk [vmem:[%s384_s21] sm:$0x7] %vm4899_vm2, %v4895_v28 }
 0xa72 PF: > { %s21_s17 = sadd.s32 1, %s7185_s17  }
 0xa73   : > { %p18_p4 = scmp.ge.s32.totalorder %s21_s17, 4  }
 0xa75   :  { %20 = sbr.rel (!%p18_p4) target bundleno = 1 (0x1), region = 126 }

</bundles_post_ra>
